<compile_context>
chip_gen: v7x
topology: tpu7x:2x2x1
jax: 0.10.0
libtpu: 0.0.40
codegen_flags: <defaults>
</compile_context>

<pallas_src>
import jax
import jax.numpy as jnp
from jax.experimental import pallas as pl
from jax.experimental.pallas import tpu as pltpu

_LANE = 128


def _round_up(x, m):
    return ((x + m - 1) // m) * m


def _sampler_kernel(zrep_ref, o_ref, d_ref, pts_ref):
    """One tile of rays.

    zrep_ref : (1, 3D)  zrep[d*3 + c] = z[d]           (resident, constant block)
    o_ref    : (T, 3)   ray origins  (rays on sublanes)
    d_ref    : (T, 3)   ray directions
    pts_ref  : (T, 3D)  pts[r, d*3 + c] = o[r, c] + z[d] * dir[r, c]
    """
    lanes = pts_ref.shape[-1]                                        # 3 * D (static)
    lane_c = jax.lax.broadcasted_iota(jnp.int32, (1, lanes), 1) % 3  # channel of each lane
    zrep = zrep_ref[...]                                             # (1, 3D)

    # Candidate value per channel, broadcast over (rays, lanes); select by lane % 3.
    vx = o_ref[:, 0:1] + zrep * d_ref[:, 0:1]                        # (T, 3D)
    vy = o_ref[:, 1:2] + zrep * d_ref[:, 1:2]
    vz = o_ref[:, 2:3] + zrep * d_ref[:, 2:3]
    pts_ref[...] = jnp.where(lane_c == 0, vx, jnp.where(lane_c == 1, vy, vz))


def stratified_raysampler(origins, directions, *, n_pts_per_ray, min_depth, max_depth,
                          vmem_budget_bytes=12 << 20):
    """origins/directions: (N, 3) float32.

    Returns (sample_points (N, D, 3), sample_lengths (N, D, 1)) — identical to the
    PyTorch module's forward outputs.
    """
    N, C = origins.shape
    assert C == 3 and directions.shape == (N, 3)
    D = int(n_pts_per_ray)
    L = 3 * D

    origins = origins.astype(jnp.float32)
    directions = directions.astype(jnp.float32)

    # z computed once; both points (via the kernel) and lengths use these exact floats.
    step = (max_depth - min_depth) / (D - 1) if D > 1 else 0.0
    z_vals = jnp.float32(min_depth) + jnp.float32(step) * jnp.arange(D, dtype=jnp.float32)
    zrep = jnp.repeat(z_vals, 3)[None, :]                            # (1, 3D)

    # ---- ray tile: derived from VMEM budget, multiple of 128, >= 2 grid steps ----
    out_lane_pad = _round_up(L, _LANE)          # output block lane padding in VMEM
    in_lane_pad = _LANE                         # each (T, 3) input block pads to 128 lanes
    bytes_per_ray_db = 2 * (out_lane_pad + 2 * in_lane_pad) * 4      # double-buffered
    max_tile = max(_LANE, (int(vmem_budget_bytes) // bytes_per_ray_db) // _LANE * _LANE)

    num_steps = max(pl.cdiv(N, max_tile), 1)
    if N >= 2 * _LANE:
        num_steps = max(num_steps, 2)           # keep both v7x TensorCores busy
    ray_tile = min(max_tile, _round_up(pl.cdiv(N, num_steps), _LANE))
    grid = (pl.cdiv(N, ray_tile),)              # ragged N -> last block is partial

    cost = pl.CostEstimate(
        flops=6 * D * N,                        # mul + add per output element
        transcendentals=0,
        bytes_accessed=2 * N * 3 * 4 + N * L * 4 + L * 4,
    )

    pts_flat = pl.pallas_call(
        _sampler_kernel,
        out_shape=jax.ShapeDtypeStruct((N, L), jnp.float32),
        grid=grid,
        in_specs=[
            pl.BlockSpec((1, L), lambda i: (0, 0)),          # zrep (constant block)
            pl.BlockSpec((ray_tile, 3), lambda i: (i, 0)),   # origins
            pl.BlockSpec((ray_tile, 3), lambda i: (i, 0)),   # directions
        ],
        out_specs=pl.BlockSpec((ray_tile, L), lambda i: (i, 0)),
        compiler_params=pltpu.CompilerParams(
            dimension_semantics=("parallel",),               # rays are independent
            vmem_limit_bytes=24 * 1024 * 1024,               # safe on v5e/v6e/v7x
        ),
        cost_estimate=cost,
    )(zrep, origins, directions)

    # (N, D*3) -> (N, D, 3): contiguous reshape, no data movement.
    pts = pts_flat.reshape(N, D, 3)
    # sample_lengths is a pure broadcast of z (ray-independent); built in the wrapper.
    lens = jnp.broadcast_to(z_vals[None, :, None], (N, D, 1))
    return pts, lens


if __name__ == "__main__":
    # Module config (its __init__ only stores these scalars).
    n_pts_per_ray = 8
    min_depth = 0.5
    max_depth = 4.0

    # N deliberately not a multiple of the ray tile -> exercises the partial-block path.
    N = 1000
    key = jax.random.PRNGKey(0)
    k_o, k_d = jax.random.split(key)
    origins = jax.random.normal(k_o, (N, 3), dtype=jnp.float32)
    directions = jax.random.normal(k_d, (N, 3), dtype=jnp.float32)

    pts, lens = stratified_raysampler(
        origins, directions,
        n_pts_per_ray=n_pts_per_ray,
        min_depth=min_depth,
        max_depth=max_depth,
    )
    pts = jax.block_until_ready(pts)
    lens = jax.block_until_ready(lens)

    # Pure-JAX reference (mirrors the PyTorch forward).
    z_ref = jnp.linspace(min_depth, max_depth, n_pts_per_ray, dtype=jnp.float32)
    ref_pts = origins[:, None, :] + z_ref[None, :, None] * directions[:, None, :]
    ref_lens = jnp.broadcast_to(z_ref[None, :, None], (N, n_pts_per_ray, 1))

    assert pts.shape == (N, n_pts_per_ray, 3)
    assert lens.shape == (N, n_pts_per_ray, 1)
    assert jnp.allclose(pts, ref_pts, atol=1e-5, rtol=1e-5)
    assert jnp.allclose(lens, ref_lens, atol=1e-5, rtol=1e-5)

    print("KERNEL_OK")
</pallas_src>

<mosaic_0001>
module attributes {stable_mosaic.version = 11 : i64} {
  func.func @_sampler_kernel(%arg0: i32, %arg1: memref<1x24xf32, #tpu.memory_space<vmem>>, %arg2: memref<512x3xf32, #tpu.memory_space<vmem>>, %arg3: memref<512x3xf32, #tpu.memory_space<vmem>>, %arg4: memref<512x24xf32, #tpu.memory_space<vmem>>) attributes {dimension_semantics = [#tpu.dimension_semantics<parallel>], iteration_bounds = array<i64: 2>, scalar_prefetch = 0 : i64, scratch_operands = 0 : i64, tpu.core_type = #tpu.core_type<tc>, window_params = [{pipeline_mode = #tpu.pipeline_mode<synchronous>, transform_indices = @transform_0, window_bounds = array<i64: 1, 24>}, {transform_indices = @transform_1, window_bounds = array<i64: 512, 3>}, {transform_indices = @transform_2, window_bounds = array<i64: 512, 3>}, {transform_indices = @transform_3, window_bounds = array<i64: 512, 24>}]} {
    %0 = tpu.iota {dimensions = array<i32: 1>} : vector<1x24xi32>
    %c3_i32 = arith.constant 3 : i32
    %c0_i32 = arith.constant 0 : i32
    %1 = arith.cmpi eq, %c3_i32, %c0_i32 : i32
    %c1_i32 = arith.constant 1 : i32
    %2 = arith.select %1, %c1_i32, %c3_i32 : i32
    %3 = vector.broadcast %2 : i32 to vector<1x24xi32>
    %4 = arith.remsi %0, %3 : vector<1x24xi32>
    %c0_i32_0 = arith.constant 0 : i32
    %5 = vector.broadcast %c0_i32_0 : i32 to vector<1x24xi32>
    %6 = arith.cmpi ne, %4, %5 : vector<1x24xi32>
    %c0_i32_1 = arith.constant 0 : i32
    %7 = vector.broadcast %c0_i32_1 : i32 to vector<1x24xi32>
    %8 = arith.cmpi slt, %4, %7 : vector<1x24xi32>
    %c0_i32_2 = arith.constant 0 : i32
    %9 = arith.cmpi slt, %2, %c0_i32_2 : i32
    %10 = vector.broadcast %9 : i1 to vector<1x24xi1>
    %11 = vector.broadcast %10 : vector<1x24xi1> to vector<1x24xi1>
    %12 = arith.xori %8, %11 : vector<1x24xi1>
    %13 = arith.andi %12, %6 : vector<1x24xi1>
    %14 = vector.broadcast %2 : i32 to vector<1x24xi32>
    %15 = arith.addi %4, %14 : vector<1x24xi32>
    %16 = arith.select %13, %15, %4 : vector<1x24xi1>, vector<1x24xi32>
    %c0 = arith.constant 0 : index
    %c0_3 = arith.constant 0 : index
    %17 = vector.load %arg1[%c0, %c0_3] : memref<1x24xf32, #tpu.memory_space<vmem>>, vector<1x24xf32>
    %c0_4 = arith.constant 0 : index
    %c0_5 = arith.constant 0 : index
    %18 = vector.load %arg2[%c0_4, %c0_5] : memref<512x3xf32, #tpu.memory_space<vmem>>, vector<512x1xf32>
    %c0_6 = arith.constant 0 : index
    %c0_7 = arith.constant 0 : index
    %19 = vector.load %arg3[%c0_6, %c0_7] : memref<512x3xf32, #tpu.memory_space<vmem>>, vector<512x1xf32>
    %20 = vector.broadcast %17 : vector<1x24xf32> to vector<512x24xf32>
    %21 = vector.broadcast %19 : vector<512x1xf32> to vector<512x24xf32>
    %22 = arith.mulf %20, %21 : vector<512x24xf32>
    %23 = vector.broadcast %18 : vector<512x1xf32> to vector<512x24xf32>
    %24 = arith.addf %23, %22 : vector<512x24xf32>
    %c0_8 = arith.constant 0 : index
    %c1 = arith.constant 1 : index
    %25 = vector.load %arg2[%c0_8, %c1] : memref<512x3xf32, #tpu.memory_space<vmem>>, vector<512x1xf32>
    %c0_9 = arith.constant 0 : index
    %c1_10 = arith.constant 1 : index
    %26 = vector.load %arg3[%c0_9, %c1_10] : memref<512x3xf32, #tpu.memory_space<vmem>>, vector<512x1xf32>
    %27 = vector.broadcast %17 : vector<1x24xf32> to vector<512x24xf32>
    %28 = vector.broadcast %26 : vector<512x1xf32> to vector<512x24xf32>
    %29 = arith.mulf %27, %28 : vector<512x24xf32>
    %30 = vector.broadcast %25 : vector<512x1xf32> to vector<512x24xf32>
    %31 = arith.addf %30, %29 : vector<512x24xf32>
    %c0_11 = arith.constant 0 : index
    %c2 = arith.constant 2 : index
    %32 = vector.load %arg2[%c0_11, %c2] : memref<512x3xf32, #tpu.memory_space<vmem>>, vector<512x1xf32>
    %c0_12 = arith.constant 0 : index
    %c2_13 = arith.constant 2 : index
    %33 = vector.load %arg3[%c0_12, %c2_13] : memref<512x3xf32, #tpu.memory_space<vmem>>, vector<512x1xf32>
    %34 = vector.broadcast %17 : vector<1x24xf32> to vector<512x24xf32>
    %35 = vector.broadcast %33 : vector<512x1xf32> to vector<512x24xf32>
    %36 = arith.mulf %34, %35 : vector<512x24xf32>
    %37 = vector.broadcast %32 : vector<512x1xf32> to vector<512x24xf32>
    %38 = arith.addf %37, %36 : vector<512x24xf32>
    %c0_i32_14 = arith.constant 0 : i32
    %39 = vector.broadcast %c0_i32_14 : i32 to vector<1x24xi32>
    %40 = arith.cmpi eq, %16, %39 : vector<1x24xi32>
    %c1_i32_15 = arith.constant 1 : i32
    %41 = vector.broadcast %c1_i32_15 : i32 to vector<1x24xi32>
    %42 = arith.cmpi eq, %16, %41 : vector<1x24xi32>
    %43 = vector.shape_cast %42 : vector<1x24xi1> to vector<1x24xi1>
    %44 = vector.broadcast %43 : vector<1x24xi1> to vector<512x24xi1>
    %45 = arith.select %44, %31, %38 : vector<512x24xi1>, vector<512x24xf32>
    %46 = vector.shape_cast %40 : vector<1x24xi1> to vector<1x24xi1>
    %47 = vector.broadcast %46 : vector<1x24xi1> to vector<512x24xi1>
    %48 = arith.select %47, %24, %45 : vector<512x24xi1>, vector<512x24xf32>
    %c0_16 = arith.constant 0 : index
    %c0_17 = arith.constant 0 : index
    %49 = vector.load %arg4[%c0_16, %c0_17] : memref<512x24xf32, #tpu.memory_space<vmem>>, vector<512x24xf32>
    tpu.vector_store %arg4[%c0_16, %c0_17], %48 {strides = array<i32>} : memref<512x24xf32, #tpu.memory_space<vmem>>, vector<512x24xf32>,
    return
  }
  func.func @transform_0(%arg0: i32) -> (i32, i32) {
    %c0_i32 = arith.constant 0 : i32
    %c0_i32_0 = arith.constant 0 : i32
    %c0_i32_1 = arith.constant 0 : i32
    return %c0_i32, %c0_i32_0 : i32, i32
  }
  func.func @transform_1(%arg0: i32) -> (i32, i32) {
    %c0_i32 = arith.constant 0 : i32
    %c0_i32_0 = arith.constant 0 : i32
    return %arg0, %c0_i32 : i32, i32
  }
  func.func @transform_2(%arg0: i32) -> (i32, i32) {
    %c0_i32 = arith.constant 0 : i32
    %c0_i32_0 = arith.constant 0 : i32
    return %arg0, %c0_i32 : i32, i32
  }
  func.func @transform_3(%arg0: i32) -> (i32, i32) {
    %c0_i32 = arith.constant 0 : i32
    %c0_i32_0 = arith.constant 0 : i32
    return %arg0, %c0_i32 : i32, i32
  }
}

</mosaic_0001>

<bundles_post_ra>
// kernel: tpu_custom_call.1
= control target key start
LH: loop header
LB: loop body
LE: loop exit
PB: predicated region body
PF: predicated region fallthrough
CT: control target
= control target key end

     0   :  { %s3482_s12 = smov 0   ;;  %s3484_s13 = smov 0   ;;  %s6064_s0 = inlined_call_operand.vmem [shape: f32[1,24], index: 0, kind: input, shape index: {}]   ;;  %s6065_s1 = inlined_call_operand.vmem [shape: f32[1000,3], index: 1, kind: input, shape index: {}]   ;;  %s6066_s2 = inlined_call_operand.vmem [shape: f32[1000,3], index: 2, kind: input, shape index: {}]   ;;  %s6067_s3 = inlined_call_operand.vmem [shape: f32[1000,24], index: 3, kind: output, shape index: {}]  }
   0x1   :  { %s3486_s14 = smov 0  }
   0x2 LB: > { %s3495_s15 = sadd.s32 4294967295, %s3425_s14   ;;  %s3497_s16 = sadd.s32 1, %s3425_s14   ;;  %s3425_s14 = sphi %s3486_s14, %s6820_s14   ;;  %s3421_s13 = sphi %s3484_s13, %s6819_s13   ;;  %s3417_s12 = sphi %s3482_s12, %s6818_s12  }
   0x3   : > { %s90_s17 = ssub.s32 %s3425_s14, %s3497_s16  ;;  %s93_s18 = sadd.s32 1, %s3421_s13 }
   0x4   : > { %p91_p0 = scmp.eq.s32.totalorder %s90_s17, 0  ;;  %p103_p1 = scmp.ne.s32.totalorder %s3421_s13, %s3417_s12 }
   0x5   : > { %p104_p2 = scmp.eq.s32.totalorder %s3495_s15, 1  ;;  %p3116_p3 = scmp.ge.s32.totalorder %s3425_s14, 1 }
   0x6   : > { %s3505_s19 = scalar_select %p91_p0, %s3421_s13, %s93_s18  }
   0x7   : > { %p3507_p4 = por %p104_p2, %p103_p1  ;;  %p165_p5 = scmp.lt.s32.totalorder %s3425_s14, 3 }
   0x9   : > { %p166_p6 = pnand %p3116_p3, %p165_p5 }
   0xb   : > { %169 = sbr.rel (%p166_p6) target bundleno = 1001 (0x3e9), region = 32 }
  0x12   : > { %s3512_s21 = sshll.u32 %s3495_s15, 6  ;;  %v3459_v0 = vmov 0   ;;  %s198_s30 = sand.u32 1, %s3417_s12   ;;  %vm2569_vm5 = vcmask 195584  }
  0x13   : > { %3237 = vset.pattern.permute.xlu1 %v3459_v0  ;;  %3236 = vset.pattern.permute.xlu0 %v3459_v0  ;;  %p206_p7 = scmp.lt.s32.totalorder %s3512_s21, 124  ;;  %s3117_s6 = sshll.u32 %s198_s30, 9 }
  0x14   : > { %s4973_s7 = scalar_lea.vmem [#allocation2], %s3117_s6   ;;  %s2642_s10 = ssub.s32 (%p3507_p4), 125, %s3512_s21 }
  0x15   : > { %s3516_s22 = scalar_select %p206_p7, %s3512_s21, 124 }
  0x16   : > { %s3140_s11 = sshll.u32 (%p3507_p4), %s3495_s15, 9  ;;  %p2643_p8 = scmp.lt.s32.totalorder (%p3507_p4), %s2642_s10, 64 }
  0x17   : > { %s3119_s23 = sshll.u32 %s3516_s22, 3  ;;  %s5865_s17 = scalar_lea.vmem (%p3507_p4), %s6067_s3, %s3140_s11  }
  0x18   : > { %s3524_s26 = scalar_lea.vmem %s6066_s2, %s3119_s23  ;;  %s3785_s29 = scalar_lea.vmem %s6065_s1, %s3119_s23 }
  0x19   : > { %v3527_v1 = vld [vmem:[%s3524_s26 + $0x10] sm:$0xff]  ;;  %v3530_v2 = vld [vmem:[%s3524_s26] sm:$0xff]  ;;  %v3535_v3 = vld [vmem:[%s3524_s26 + $0x18] sm:$0xff] }
  0x1a   : > { %399 = vperm.xlu1 %3237, %v3527_v1   ;;  %389 = vperm.xlu0 %3236, %v3530_v2   ;;  %v3538_v4 = vld [vmem:[%s3524_s26 + $0x8] sm:$0xff]  ;;  %v3546_v6 = vld [vmem:[%s3524_s26 + $0x20] sm:$0xff]  ;;  %v3551_v7 = vld [vmem:[%s3524_s26 + $0x38] sm:$0xff] }
  0x1b   : > { %v3543_v5 = vld [vmem:[%s3524_s26 + $0x28] sm:$0xff]  ;;  %v3554_v8 = vld [vmem:[%s3524_s26 + $0x30] sm:$0xff]  ;;  %v3562_v10 = vld [vmem:[%s3524_s26 + $0x40] sm:$0xff] }
  0x1c   : > { %v3559_v9 = vld [vmem:[%s3524_s26 + $0x48] sm:$0xff]  ;;  %v3567_v11 = vld [vmem:[%s3524_s26 + $0x58] sm:$0xff]  ;;  %v3570_v12 = vld [vmem:[%s3524_s26 + $0x50] sm:$0xff] }
  0x1d   : > { %v3575_v13 = vld [vmem:[%s3524_s26 + $0x68] sm:$0xff]  ;;  %v3578_v14 = vld [vmem:[%s3524_s26 + $0x60] sm:$0xff]  ;;  %v3583_v15 = vld [vmem:[%s3524_s26 + $0x78] sm:$0xff] }
  0x1e   : > { %404 = vperm.xlu1 %3237, %v3535_v3   ;;  %394 = vperm.xlu0 %3236, %v3538_v4   ;;  %v3586_v16 = vld [vmem:[%s3524_s26 + $0x70] sm:$0xff]  ;;  %v3591_v17 = vld [vmem:[%s3524_s26 + $0x88] sm:$0xff]  ;;  %v3594_v18 = vld [vmem:[%s3524_s26 + $0x80] sm:$0xff] }
  0x1f   : > { %v3599_v19 = vld [vmem:[%s3524_s26 + $0x98] sm:$0xff]  ;;  %v3602_v20 = vld [vmem:[%s3524_s26 + $0x90] sm:$0xff]  ;;  %v3607_v21 = vld [vmem:[%s3524_s26 + $0xa8] sm:$0xff] }
  0x20   : > { %v3610_v22 = vld [vmem:[%s3524_s26 + $0xa0] sm:$0xff]  ;;  %v3615_v23 = vld [vmem:[%s3524_s26 + $0xb8] sm:$0xff]  ;;  %v3618_v24 = vld [vmem:[%s3524_s26 + $0xb0] sm:$0xff] }
  0x21   : > { %v3623_v25 = vld [vmem:[%s3524_s26 + $0xc8] sm:$0xff]  ;;  %v3626_v26 = vld [vmem:[%s3524_s26 + $0xc0] sm:$0xff]  ;;  %v3631_v27 = vld [vmem:[%s3524_s26 + $0xd8] sm:$0xff] }
  0x22   : > { %414 = vperm.xlu1 %3237, %v3543_v5   ;;  %409 = vperm.xlu0 %3236, %v3546_v6   ;;  %v3634_v28 = vld [vmem:[%s3524_s26 + $0xd0] sm:$0xff]  ;;  %v3639_v29 = vld [vmem:[%s3524_s26 + $0xe8] sm:$0xff]  ;;  %v3642_v30 = vld [vmem:[%s3524_s26 + $0xe0] sm:$0xff] }
  0x23   : > { %v3647_v31 = vld [vmem:[%s3524_s26 + $0xf8] sm:$0xff]  ;;  %v3650_v32 = vld [vmem:[%s3524_s26 + $0xf0] sm:$0xff]  ;;  %v3655_v33 = vld [vmem:[%s3524_s26 + $0x108] sm:$0xff] }
  0x24   : > { %v3658_v34 = vld [vmem:[%s3524_s26 + $0x100] sm:$0xff]  ;;  %v3663_v35 = vld [vmem:[%s3524_s26 + $0x118] sm:$0xff]  ;;  %v3666_v36 = vld [vmem:[%s3524_s26 + $0x110] sm:$0xff] }
  0x25   : > { %v3671_v37 = vld [vmem:[%s3524_s26 + $0x128] sm:$0xff]  ;;  %v3674_v38 = vld [vmem:[%s3524_s26 + $0x120] sm:$0xff]  ;;  %v3679_v39 = vld [vmem:[%s3524_s26 + $0x138] sm:$0xff] }
  0x26   : > { %424 = vperm.xlu1 %3237, %v3551_v7   ;;  %419 = vperm.xlu0 %3236, %v3554_v8   ;;  %v3682_v40 = vld [vmem:[%s3524_s26 + $0x130] sm:$0xff]  ;;  %v3687_v41 = vld [vmem:[%s3524_s26 + $0x148] sm:$0xff]  ;;  %v3690_v42 = vld [vmem:[%s3524_s26 + $0x140] sm:$0xff] }
  0x27   : > { %v3695_v43 = vld [vmem:[%s3524_s26 + $0x158] sm:$0xff]  ;;  %v3698_v44 = vld [vmem:[%s3524_s26 + $0x150] sm:$0xff]  ;;  %v3703_v45 = vld [vmem:[%s3524_s26 + $0x168] sm:$0xff] }
  0x28   : > { %v3706_v46 = vld [vmem:[%s3524_s26 + $0x160] sm:$0xff]  ;;  %v3711_v47 = vld [vmem:[%s3524_s26 + $0x178] sm:$0xff]  ;;  %v3714_v48 = vld [vmem:[%s3524_s26 + $0x170] sm:$0xff] }
  0x29   : > { %v3719_v49 = vld [vmem:[%s3524_s26 + $0x188] sm:$0xff]  ;;  %v3722_v50 = vld [vmem:[%s3524_s26 + $0x180] sm:$0xff]  ;;  %v3727_v51 = vld [vmem:[%s3524_s26 + $0x198] sm:$0xff] }
  0x2a   : > { %434 = vperm.xlu1 %3237, %v3559_v9   ;;  %429 = vperm.xlu0 %3236, %v3562_v10   ;;  %v3730_v52 = vld [vmem:[%s3524_s26 + $0x190] sm:$0xff]  ;;  %v3735_v53 = vld [vmem:[%s3524_s26 + $0x1a8] sm:$0xff]  ;;  %v3738_v54 = vld [vmem:[%s3524_s26 + $0x1a0] sm:$0xff] }
  0x2b   : > { %v3743_v55 = vld [vmem:[%s3524_s26 + $0x1b8] sm:$0xff]  ;;  %v3746_v56 = vld [vmem:[%s3524_s26 + $0x1b0] sm:$0xff]  ;;  %v3751_v57 = vld [vmem:[%s3524_s26 + $0x1c8] sm:$0xff] }
  0x2c   : > { %6139 = vst [vmem:[#allocation3_spill] sm:$0xff] %v3743_v55  ;;  %6140 = vst [vmem:[#allocation4_spill] sm:$0xff] %v3751_v57  ;;  %v3754_v58 = vld [vmem:[%s3524_s26 + $0x1c0] sm:$0xff]  ;;  %v3759_v59 = vld [vmem:[%s3524_s26 + $0x1d8] sm:$0xff] }
  0x2d   : > { %6141 = vst [vmem:[#allocation5_spill] sm:$0xff] %v3754_v58  ;;  %6142 = vst [vmem:[#allocation6_spill] sm:$0xff] %v3759_v59  ;;  %v3762_v60 = vld [vmem:[%s3524_s26 + $0x1d0] sm:$0xff]  ;;  %v3767_v61 = vld [vmem:[%s3524_s26 + $0x1e8] sm:$0xff] }
  0x2e   : > { %444 = vperm.xlu1 %3237, %v3567_v11   ;;  %439 = vperm.xlu0 %3236, %v3570_v12   ;;  %6143 = vst [vmem:[#allocation7_spill] sm:$0xff] %v3762_v60  ;;  %6144 = vst [vmem:[#allocation8_spill] sm:$0xff] %v3767_v61  ;;  %v3770_v62 = vld [vmem:[%s3524_s26 + $0x1e0] sm:$0xff]  ;;  %v3775_v63 = vld [vmem:[%s3524_s26 + $0x1f8] sm:$0xff] }
  0x2f   : > { %6145 = vst [vmem:[#allocation9_spill] sm:$0xff] %v3770_v62  ;;  %6146 = vst [vmem:[#allocation10_spill] sm:$0xff] %v3775_v63  ;;  %v3778_v0 = vld [vmem:[%s3524_s26 + $0x1f0] sm:$0xff] }
  0x30   : > { %6147 = vst [vmem:[#allocation11_spill] sm:$0xff] %v3778_v0 }
  0x32   : > { %454 = vperm.xlu1 %3237, %v3575_v13   ;;  %449 = vperm.xlu0 %3236, %v3578_v14  }
  0x36   : > { %464 = vperm.xlu1 %3237, %v3583_v15   ;;  %459 = vperm.xlu0 %3236, %v3586_v16  }
  0x3a   : > { %474 = vperm.xlu1 %3237, %v3591_v17   ;;  %469 = vperm.xlu0 %3236, %v3594_v18  }
  0x3e   : > { %484 = vperm.xlu1 %3237, %v3599_v19   ;;  %479 = vperm.xlu0 %3236, %v3602_v20  }
  0x42   : > { %494 = vperm.xlu1 %3237, %v3607_v21   ;;  %489 = vperm.xlu0 %3236, %v3610_v22  }
  0x46   : > { %504 = vperm.xlu1 %3237, %v3615_v23   ;;  %499 = vperm.xlu0 %3236, %v3618_v24  }
  0x4a   : > { %514 = vperm.xlu1 %3237, %v3623_v25   ;;  %509 = vperm.xlu0 %3236, %v3626_v26  }
  0x4e   : > { %524 = vperm.xlu1 %3237, %v3631_v27   ;;  %519 = vperm.xlu0 %3236, %v3634_v28  }
  0x52   : > { %534 = vperm.xlu1 %3237, %v3639_v29   ;;  %529 = vperm.xlu0 %3236, %v3642_v30  }
  0x56   : > { %544 = vperm.xlu1 %3237, %v3647_v31   ;;  %539 = vperm.xlu0 %3236, %v3650_v32  }
  0x5a   : > { %554 = vperm.xlu1 %3237, %v3655_v33   ;;  %549 = vperm.xlu0 %3236, %v3658_v34  }
  0x5e   : > { %564 = vperm.xlu1 %3237, %v3663_v35   ;;  %559 = vperm.xlu0 %3236, %v3666_v36  }
  0x62   : > { %574 = vperm.xlu1 %3237, %v3671_v37   ;;  %569 = vperm.xlu0 %3236, %v3674_v38  }
  0x66   : > { %584 = vperm.xlu1 %3237, %v3679_v39   ;;  %579 = vperm.xlu0 %3236, %v3682_v40  }
  0x6a   : > { %594 = vperm.xlu1 %3237, %v3687_v41   ;;  %589 = vperm.xlu0 %3236, %v3690_v42  }
  0x6e   : > { %604 = vperm.xlu1 %3237, %v3695_v43   ;;  %599 = vperm.xlu0 %3236, %v3698_v44  }
  0x72   : > { %614 = vperm.xlu1 %3237, %v3703_v45   ;;  %609 = vperm.xlu0 %3236, %v3706_v46  }
  0x76   : > { %624 = vperm.xlu1 %3237, %v3711_v47   ;;  %619 = vperm.xlu0 %3236, %v3714_v48  }
  0x7a   : > { %634 = vperm.xlu1 %3237, %v3719_v49   ;;  %629 = vperm.xlu0 %3236, %v3722_v50  }
  0x7e   : > { %644 = vperm.xlu1 %3237, %v3727_v51   ;;  %639 = vperm.xlu0 %3236, %v3730_v52  }
  0x82   : > { %654 = vperm.xlu1 %3237, %v3735_v53   ;;  %649 = vperm.xlu0 %3236, %v3738_v54  }
  0x86   : > { %664 = vperm.xlu1 %3237, %v3743_v55   ;;  %659 = vperm.xlu0 %3236, %v3746_v56  }
  0x8a   : > { %674 = vperm.xlu1 %3237, %v3751_v57   ;;  %669 = vperm.xlu0 %3236, %v3754_v58   ;;  %v3802_v57 = vld [vmem:[%s3785_s29 + $0x18] sm:$0xff]  ;;  %v3805_v58 = vld [vmem:[%s3785_s29 + $0x10] sm:$0xff] }
  0x8b   : > { %6152 = vst [vmem:[#allocation16_spill] sm:$0xff] %v3802_v57  ;;  %6153 = vst [vmem:[#allocation17_spill] sm:$0xff] %v3805_v58 }
  0x8e   : > { %684 = vperm.xlu1 %3237, %v3759_v59   ;;  %679 = vperm.xlu0 %3236, %v3762_v60  }
  0x92   : > { %694 = vperm.xlu1 %3237, %v3767_v61   ;;  %689 = vperm.xlu0 %3236, %v3770_v62   ;;  %v3790_v61 = vld [vmem:[%s3785_s29 + $0x8] sm:$0xff]  ;;  %v3793_v62 = vld [vmem:[%s3785_s29] sm:$0xff] }
  0x93   : > { %6148 = vst [vmem:[#allocation12_spill] sm:$0xff] %v3790_v61  ;;  %6149 = vst [vmem:[#allocation13_spill] sm:$0xff] %v3793_v62 }
  0x96   : > { %704 = vperm.xlu1 %3237, %v3775_v63   ;;  %699 = vperm.xlu0 %3236, %v3778_v0  }
  0x99   : > { %v3795_v59 = vpop.permute.xlu1 %399  ;;  %v3797_v60 = vpop.permute.xlu0 %389 }
  0x9a   : > { %6150 = vst [vmem:[#allocation14_spill] sm:$0xff] %v3795_v59  ;;  %6151 = vst [vmem:[#allocation15_spill] sm:$0xff] %v3797_v60  ;;  %778 = vperm.xlu1 %3237, %v3790_v61   ;;  %773 = vperm.xlu0 %3236, %v3793_v62   ;;  %v3814_v59 = vld [vmem:[%s3785_s29 + $0x28] sm:$0xff]  ;;  %v3817_v60 = vld [vmem:[%s3785_s29 + $0x20] sm:$0xff] }
  0x9b   : > { %6156 = vst [vmem:[#allocation20_spill] sm:$0xff] %v3814_v59  ;;  %6157 = vst [vmem:[#allocation21_spill] sm:$0xff] %v3817_v60 }
  0x9d   : > { %v3807_v63 = vpop.permute.xlu1 %404  ;;  %v3809_v0 = vpop.permute.xlu0 %394 }
  0x9e   : > { %6154 = vst [vmem:[#allocation18_spill] sm:$0xff] %v3807_v63  ;;  %6155 = vst [vmem:[#allocation19_spill] sm:$0xff] %v3809_v0  ;;  %788 = vperm.xlu1 %3237, %v3802_v57   ;;  %783 = vperm.xlu0 %3236, %v3805_v58   ;;  %v3826_v63 = vld [vmem:[%s3785_s29 + $0x38] sm:$0xff]  ;;  %v3829_v0 = vld [vmem:[%s3785_s29 + $0x30] sm:$0xff] }
  0x9f   : > { %6160 = vst [vmem:[#allocation24_spill] sm:$0xff] %v3826_v63  ;;  %6161 = vst [vmem:[#allocation25_spill] sm:$0xff] %v3829_v0 }
  0xa1   : > { %v3819_v61 = vpop.permute.xlu1 %414  ;;  %v3821_v62 = vpop.permute.xlu0 %409 }
  0xa2   : > { %6158 = vst [vmem:[#allocation22_spill] sm:$0xff] %v3819_v61  ;;  %6159 = vst [vmem:[#allocation23_spill] sm:$0xff] %v3821_v62  ;;  %798 = vperm.xlu1 %3237, %v3814_v59   ;;  %793 = vperm.xlu0 %3236, %v3817_v60   ;;  %v3838_v61 = vld [vmem:[%s3785_s29 + $0x48] sm:$0xff]  ;;  %v3841_v62 = vld [vmem:[%s3785_s29 + $0x40] sm:$0xff] }
  0xa3   : > { %6164 = vst [vmem:[#allocation28_spill] sm:$0xff] %v3838_v61  ;;  %6165 = vst [vmem:[#allocation29_spill] sm:$0xff] %v3841_v62 }
  0xa5   : > { %v3831_v57 = vpop.permute.xlu1 %424  ;;  %v3833_v58 = vpop.permute.xlu0 %419 }
  0xa6   : > { %6162 = vst [vmem:[#allocation26_spill] sm:$0xff] %v3831_v57  ;;  %6163 = vst [vmem:[#allocation27_spill] sm:$0xff] %v3833_v58  ;;  %808 = vperm.xlu1 %3237, %v3826_v63   ;;  %803 = vperm.xlu0 %3236, %v3829_v0   ;;  %v3850_v57 = vld [vmem:[%s3785_s29 + $0x58] sm:$0xff]  ;;  %v3853_v58 = vld [vmem:[%s3785_s29 + $0x50] sm:$0xff] }
  0xa7   : > { %6168 = vst [vmem:[#allocation32_spill] sm:$0xff] %v3850_v57  ;;  %6169 = vst [vmem:[#allocation33_spill] sm:$0xff] %v3853_v58 }
  0xa9   : > { %v3843_v59 = vpop.permute.xlu1 %434  ;;  %v3845_v60 = vpop.permute.xlu0 %429 }
  0xaa   : > { %6166 = vst [vmem:[#allocation30_spill] sm:$0xff] %v3843_v59  ;;  %6167 = vst [vmem:[#allocation31_spill] sm:$0xff] %v3845_v60  ;;  %818 = vperm.xlu1 %3237, %v3838_v61   ;;  %813 = vperm.xlu0 %3236, %v3841_v62   ;;  %v3862_v59 = vld [vmem:[%s3785_s29 + $0x68] sm:$0xff]  ;;  %v3865_v60 = vld [vmem:[%s3785_s29 + $0x60] sm:$0xff] }
  0xab   : > { %6172 = vst [vmem:[#allocation36_spill] sm:$0xff] %v3862_v59  ;;  %6173 = vst [vmem:[#allocation37_spill] sm:$0xff] %v3865_v60 }
  0xad   : > { %v3855_v63 = vpop.permute.xlu1 %444  ;;  %v3857_v0 = vpop.permute.xlu0 %439 }
  0xae   : > { %6170 = vst [vmem:[#allocation34_spill] sm:$0xff] %v3855_v63  ;;  %6171 = vst [vmem:[#allocation35_spill] sm:$0xff] %v3857_v0  ;;  %828 = vperm.xlu1 %3237, %v3850_v57   ;;  %823 = vperm.xlu0 %3236, %v3853_v58   ;;  %v3874_v63 = vld [vmem:[%s3785_s29 + $0x78] sm:$0xff]  ;;  %v3877_v0 = vld [vmem:[%s3785_s29 + $0x70] sm:$0xff] }
  0xaf   : > { %6176 = vst [vmem:[#allocation40_spill] sm:$0xff] %v3874_v63  ;;  %6177 = vst [vmem:[#allocation41_spill] sm:$0xff] %v3877_v0 }
  0xb1   : > { %v3867_v61 = vpop.permute.xlu1 %454  ;;  %v3869_v62 = vpop.permute.xlu0 %449 }
  0xb2   : > { %6174 = vst [vmem:[#allocation38_spill] sm:$0xff] %v3867_v61  ;;  %6175 = vst [vmem:[#allocation39_spill] sm:$0xff] %v3869_v62  ;;  %838 = vperm.xlu1 %3237, %v3862_v59   ;;  %833 = vperm.xlu0 %3236, %v3865_v60   ;;  %v3886_v61 = vld [vmem:[%s3785_s29 + $0x88] sm:$0xff]  ;;  %v3889_v62 = vld [vmem:[%s3785_s29 + $0x80] sm:$0xff] }
  0xb3   : > { %6180 = vst [vmem:[#allocation44_spill] sm:$0xff] %v3886_v61  ;;  %6181 = vst [vmem:[#allocation45_spill] sm:$0xff] %v3889_v62 }
  0xb5   : > { %v3879_v57 = vpop.permute.xlu1 %464  ;;  %v3881_v58 = vpop.permute.xlu0 %459 }
  0xb6   : > { %6178 = vst [vmem:[#allocation42_spill] sm:$0xff] %v3879_v57  ;;  %6179 = vst [vmem:[#allocation43_spill] sm:$0xff] %v3881_v58  ;;  %848 = vperm.xlu1 %3237, %v3874_v63   ;;  %843 = vperm.xlu0 %3236, %v3877_v0   ;;  %v3898_v57 = vld [vmem:[%s3785_s29 + $0x98] sm:$0xff]  ;;  %v3901_v58 = vld [vmem:[%s3785_s29 + $0x90] sm:$0xff] }
  0xb7   : > { %6184 = vst [vmem:[#allocation48_spill] sm:$0xff] %v3898_v57  ;;  %6185 = vst [vmem:[#allocation49_spill] sm:$0xff] %v3901_v58 }
  0xb9   : > { %v3891_v59 = vpop.permute.xlu1 %474  ;;  %v3893_v60 = vpop.permute.xlu0 %469 }
  0xba   : > { %6182 = vst [vmem:[#allocation46_spill] sm:$0xff] %v3891_v59  ;;  %6183 = vst [vmem:[#allocation47_spill] sm:$0xff] %v3893_v60  ;;  %858 = vperm.xlu1 %3237, %v3886_v61   ;;  %853 = vperm.xlu0 %3236, %v3889_v62   ;;  %v3910_v59 = vld [vmem:[%s3785_s29 + $0xa8] sm:$0xff]  ;;  %v3913_v60 = vld [vmem:[%s3785_s29 + $0xa0] sm:$0xff] }
  0xbb   : > { %6188 = vst [vmem:[#allocation52_spill] sm:$0xff] %v3910_v59  ;;  %6189 = vst [vmem:[#allocation53_spill] sm:$0xff] %v3913_v60 }
  0xbd   : > { %v3903_v63 = vpop.permute.xlu1 %484  ;;  %v3905_v0 = vpop.permute.xlu0 %479 }
  0xbe   : > { %6186 = vst [vmem:[#allocation50_spill] sm:$0xff] %v3903_v63  ;;  %6187 = vst [vmem:[#allocation51_spill] sm:$0xff] %v3905_v0  ;;  %868 = vperm.xlu1 %3237, %v3898_v57   ;;  %863 = vperm.xlu0 %3236, %v3901_v58   ;;  %v3922_v63 = vld [vmem:[%s3785_s29 + $0xb8] sm:$0xff]  ;;  %v3925_v0 = vld [vmem:[%s3785_s29 + $0xb0] sm:$0xff] }
  0xbf   : > { %6192 = vst [vmem:[#allocation56_spill] sm:$0xff] %v3922_v63  ;;  %6193 = vst [vmem:[#allocation57_spill] sm:$0xff] %v3925_v0 }
  0xc1   : > { %v3915_v61 = vpop.permute.xlu1 %494  ;;  %v3917_v62 = vpop.permute.xlu0 %489 }
  0xc2   : > { %6190 = vst [vmem:[#allocation54_spill] sm:$0xff] %v3915_v61  ;;  %6191 = vst [vmem:[#allocation55_spill] sm:$0xff] %v3917_v62  ;;  %878 = vperm.xlu1 %3237, %v3910_v59   ;;  %873 = vperm.xlu0 %3236, %v3913_v60   ;;  %v3934_v61 = vld [vmem:[%s3785_s29 + $0xc8] sm:$0xff]  ;;  %v3937_v62 = vld [vmem:[%s3785_s29 + $0xc0] sm:$0xff] }
  0xc3   : > { %6196 = vst [vmem:[#allocation60_spill] sm:$0xff] %v3934_v61  ;;  %6197 = vst [vmem:[#allocation61_spill] sm:$0xff] %v3937_v62 }
  0xc5   : > { %v3927_v57 = vpop.permute.xlu1 %504  ;;  %v3929_v58 = vpop.permute.xlu0 %499 }
  0xc6   : > { %6194 = vst [vmem:[#allocation58_spill] sm:$0xff] %v3927_v57  ;;  %6195 = vst [vmem:[#allocation59_spill] sm:$0xff] %v3929_v58  ;;  %888 = vperm.xlu1 %3237, %v3922_v63   ;;  %883 = vperm.xlu0 %3236, %v3925_v0   ;;  %v3946_v57 = vld [vmem:[%s3785_s29 + $0xd8] sm:$0xff]  ;;  %v3949_v58 = vld [vmem:[%s3785_s29 + $0xd0] sm:$0xff] }
  0xc7   : > { %6200 = vst [vmem:[#allocation64_spill] sm:$0xff] %v3946_v57  ;;  %6201 = vst [vmem:[#allocation65_spill] sm:$0xff] %v3949_v58 }
  0xc9   : > { %v3939_v59 = vpop.permute.xlu1 %514  ;;  %v3941_v60 = vpop.permute.xlu0 %509 }
  0xca   : > { %6198 = vst [vmem:[#allocation62_spill] sm:$0xff] %v3939_v59  ;;  %6199 = vst [vmem:[#allocation63_spill] sm:$0xff] %v3941_v60  ;;  %898 = vperm.xlu1 %3237, %v3934_v61   ;;  %893 = vperm.xlu0 %3236, %v3937_v62   ;;  %v3958_v59 = vld [vmem:[%s3785_s29 + $0xe8] sm:$0xff]  ;;  %v3961_v60 = vld [vmem:[%s3785_s29 + $0xe0] sm:$0xff] }
  0xcb   : > { %6204 = vst [vmem:[#allocation68_spill] sm:$0xff] %v3958_v59  ;;  %6205 = vst [vmem:[#allocation69_spill] sm:$0xff] %v3961_v60 }
  0xcd   : > { %v3951_v63 = vpop.permute.xlu1 %524  ;;  %v3953_v0 = vpop.permute.xlu0 %519 }
  0xce   : > { %6202 = vst [vmem:[#allocation66_spill] sm:$0xff] %v3951_v63  ;;  %6203 = vst [vmem:[#allocation67_spill] sm:$0xff] %v3953_v0  ;;  %908 = vperm.xlu1 %3237, %v3946_v57   ;;  %903 = vperm.xlu0 %3236, %v3949_v58   ;;  %v3970_v63 = vld [vmem:[%s3785_s29 + $0xf8] sm:$0xff]  ;;  %v3973_v0 = vld [vmem:[%s3785_s29 + $0xf0] sm:$0xff] }
  0xcf   : > { %6208 = vst [vmem:[#allocation72_spill] sm:$0xff] %v3970_v63  ;;  %6209 = vst [vmem:[#allocation73_spill] sm:$0xff] %v3973_v0 }
  0xd1   : > { %v3963_v61 = vpop.permute.xlu1 %534  ;;  %v3965_v62 = vpop.permute.xlu0 %529 }
  0xd2   : > { %6206 = vst [vmem:[#allocation70_spill] sm:$0xff] %v3963_v61  ;;  %6207 = vst [vmem:[#allocation71_spill] sm:$0xff] %v3965_v62  ;;  %918 = vperm.xlu1 %3237, %v3958_v59   ;;  %913 = vperm.xlu0 %3236, %v3961_v60   ;;  %v3982_v61 = vld [vmem:[%s3785_s29 + $0x108] sm:$0xff]  ;;  %v3985_v62 = vld [vmem:[%s3785_s29 + $0x100] sm:$0xff] }
  0xd3   : > { %6212 = vst [vmem:[#allocation76_spill] sm:$0xff] %v3982_v61  ;;  %6213 = vst [vmem:[#allocation77_spill] sm:$0xff] %v3985_v62 }
  0xd5   : > { %v3975_v57 = vpop.permute.xlu1 %544  ;;  %v3977_v58 = vpop.permute.xlu0 %539 }
  0xd6   : > { %6210 = vst [vmem:[#allocation74_spill] sm:$0xff] %v3975_v57  ;;  %6211 = vst [vmem:[#allocation75_spill] sm:$0xff] %v3977_v58  ;;  %928 = vperm.xlu1 %3237, %v3970_v63   ;;  %923 = vperm.xlu0 %3236, %v3973_v0   ;;  %v3994_v57 = vld [vmem:[%s3785_s29 + $0x118] sm:$0xff]  ;;  %v3997_v58 = vld [vmem:[%s3785_s29 + $0x110] sm:$0xff] }
  0xd7   : > { %6216 = vst [vmem:[#allocation80_spill] sm:$0xff] %v3994_v57  ;;  %6217 = vst [vmem:[#allocation81_spill] sm:$0xff] %v3997_v58 }
  0xd9   : > { %v3987_v59 = vpop.permute.xlu1 %554  ;;  %v3989_v60 = vpop.permute.xlu0 %549 }
  0xda   : > { %6214 = vst [vmem:[#allocation78_spill] sm:$0xff] %v3987_v59  ;;  %6215 = vst [vmem:[#allocation79_spill] sm:$0xff] %v3989_v60  ;;  %938 = vperm.xlu1 %3237, %v3982_v61   ;;  %933 = vperm.xlu0 %3236, %v3985_v62   ;;  %v4006_v59 = vld [vmem:[%s3785_s29 + $0x128] sm:$0xff]  ;;  %v4009_v60 = vld [vmem:[%s3785_s29 + $0x120] sm:$0xff] }
  0xdb   : > { %6220 = vst [vmem:[#allocation84_spill] sm:$0xff] %v4006_v59  ;;  %6221 = vst [vmem:[#allocation85_spill] sm:$0xff] %v4009_v60 }
  0xdd   : > { %v3999_v63 = vpop.permute.xlu1 %564  ;;  %v4001_v0 = vpop.permute.xlu0 %559 }
  0xde   : > { %6218 = vst [vmem:[#allocation82_spill] sm:$0xff] %v3999_v63  ;;  %6219 = vst [vmem:[#allocation83_spill] sm:$0xff] %v4001_v0  ;;  %948 = vperm.xlu1 %3237, %v3994_v57   ;;  %943 = vperm.xlu0 %3236, %v3997_v58   ;;  %v4018_v63 = vld [vmem:[%s3785_s29 + $0x138] sm:$0xff]  ;;  %v4021_v0 = vld [vmem:[%s3785_s29 + $0x130] sm:$0xff] }
  0xdf   : > { %6224 = vst [vmem:[#allocation88_spill] sm:$0xff] %v4018_v63  ;;  %6225 = vst [vmem:[#allocation89_spill] sm:$0xff] %v4021_v0 }
  0xe1   : > { %v4011_v61 = vpop.permute.xlu1 %574  ;;  %v4013_v62 = vpop.permute.xlu0 %569 }
  0xe2   : > { %6222 = vst [vmem:[#allocation86_spill] sm:$0xff] %v4011_v61  ;;  %6223 = vst [vmem:[#allocation87_spill] sm:$0xff] %v4013_v62  ;;  %958 = vperm.xlu1 %3237, %v4006_v59   ;;  %953 = vperm.xlu0 %3236, %v4009_v60   ;;  %v4030_v61 = vld [vmem:[%s3785_s29 + $0x148] sm:$0xff]  ;;  %v4033_v62 = vld [vmem:[%s3785_s29 + $0x140] sm:$0xff] }
  0xe3   : > { %6228 = vst [vmem:[#allocation92_spill] sm:$0xff] %v4030_v61  ;;  %6229 = vst [vmem:[#allocation93_spill] sm:$0xff] %v4033_v62 }
  0xe5   : > { %v4023_v57 = vpop.permute.xlu1 %584  ;;  %v4025_v58 = vpop.permute.xlu0 %579 }
  0xe6   : > { %6226 = vst [vmem:[#allocation90_spill] sm:$0xff] %v4023_v57  ;;  %6227 = vst [vmem:[#allocation91_spill] sm:$0xff] %v4025_v58  ;;  %968 = vperm.xlu1 %3237, %v4018_v63   ;;  %963 = vperm.xlu0 %3236, %v4021_v0   ;;  %v4042_v57 = vld [vmem:[%s3785_s29 + $0x158] sm:$0xff]  ;;  %v4045_v58 = vld [vmem:[%s3785_s29 + $0x150] sm:$0xff] }
  0xe7   : > { %6232 = vst [vmem:[#allocation96_spill] sm:$0xff] %v4042_v57  ;;  %6233 = vst [vmem:[#allocation97_spill] sm:$0xff] %v4045_v58 }
  0xe9   : > { %v4035_v59 = vpop.permute.xlu1 %594  ;;  %v4037_v60 = vpop.permute.xlu0 %589 }
  0xea   : > { %6230 = vst [vmem:[#allocation94_spill] sm:$0xff] %v4035_v59  ;;  %6231 = vst [vmem:[#allocation95_spill] sm:$0xff] %v4037_v60  ;;  %978 = vperm.xlu1 %3237, %v4030_v61   ;;  %973 = vperm.xlu0 %3236, %v4033_v62   ;;  %v4054_v59 = vld [vmem:[%s3785_s29 + $0x168] sm:$0xff]  ;;  %v4057_v60 = vld [vmem:[%s3785_s29 + $0x160] sm:$0xff] }
  0xeb   : > { %6236 = vst [vmem:[#allocation100_spill] sm:$0xff] %v4054_v59  ;;  %6237 = vst [vmem:[#allocation101_spill] sm:$0xff] %v4057_v60 }
  0xed   : > { %v4047_v63 = vpop.permute.xlu1 %604  ;;  %v4049_v0 = vpop.permute.xlu0 %599 }
  0xee   : > { %6234 = vst [vmem:[#allocation98_spill] sm:$0xff] %v4047_v63  ;;  %6235 = vst [vmem:[#allocation99_spill] sm:$0xff] %v4049_v0  ;;  %988 = vperm.xlu1 %3237, %v4042_v57   ;;  %983 = vperm.xlu0 %3236, %v4045_v58   ;;  %v4066_v63 = vld [vmem:[%s3785_s29 + $0x178] sm:$0xff]  ;;  %v4069_v0 = vld [vmem:[%s3785_s29 + $0x170] sm:$0xff] }
  0xef   : > { %6240 = vst [vmem:[#allocation104_spill] sm:$0xff] %v4066_v63  ;;  %6241 = vst [vmem:[#allocation105_spill] sm:$0xff] %v4069_v0 }
  0xf1   : > { %v4059_v61 = vpop.permute.xlu1 %614  ;;  %v4061_v62 = vpop.permute.xlu0 %609 }
  0xf2   : > { %6238 = vst [vmem:[#allocation102_spill] sm:$0xff] %v4059_v61  ;;  %6239 = vst [vmem:[#allocation103_spill] sm:$0xff] %v4061_v62  ;;  %998 = vperm.xlu1 %3237, %v4054_v59   ;;  %993 = vperm.xlu0 %3236, %v4057_v60   ;;  %v4078_v61 = vld [vmem:[%s3785_s29 + $0x188] sm:$0xff]  ;;  %v4081_v62 = vld [vmem:[%s3785_s29 + $0x180] sm:$0xff] }
  0xf3   : > { %6244 = vst [vmem:[#allocation108_spill] sm:$0xff] %v4078_v61  ;;  %6245 = vst [vmem:[#allocation109_spill] sm:$0xff] %v4081_v62 }
  0xf5   : > { %v4071_v57 = vpop.permute.xlu1 %624  ;;  %v4073_v58 = vpop.permute.xlu0 %619 }
  0xf6   : > { %6242 = vst [vmem:[#allocation106_spill] sm:$0xff] %v4071_v57  ;;  %6243 = vst [vmem:[#allocation107_spill] sm:$0xff] %v4073_v58  ;;  %1008 = vperm.xlu1 %3237, %v4066_v63   ;;  %1003 = vperm.xlu0 %3236, %v4069_v0   ;;  %v4090_v57 = vld [vmem:[%s3785_s29 + $0x198] sm:$0xff]  ;;  %v4093_v58 = vld [vmem:[%s3785_s29 + $0x190] sm:$0xff] }
  0xf7   : > { %6248 = vst [vmem:[#allocation112_spill] sm:$0xff] %v4090_v57  ;;  %6249 = vst [vmem:[#allocation113_spill] sm:$0xff] %v4093_v58 }
  0xf9   : > { %v4083_v59 = vpop.permute.xlu1 %634  ;;  %v4085_v60 = vpop.permute.xlu0 %629 }
  0xfa   : > { %6246 = vst [vmem:[#allocation110_spill] sm:$0xff] %v4083_v59  ;;  %6247 = vst [vmem:[#allocation111_spill] sm:$0xff] %v4085_v60  ;;  %1018 = vperm.xlu1 %3237, %v4078_v61   ;;  %1013 = vperm.xlu0 %3236, %v4081_v62   ;;  %v4102_v59 = vld [vmem:[%s3785_s29 + $0x1a8] sm:$0xff]  ;;  %v4105_v60 = vld [vmem:[%s3785_s29 + $0x1a0] sm:$0xff] }
  0xfb   : > { %6252 = vst [vmem:[#allocation116_spill] sm:$0xff] %v4102_v59  ;;  %6253 = vst [vmem:[#allocation117_spill] sm:$0xff] %v4105_v60 }
  0xfd   : > { %v4095_v63 = vpop.permute.xlu1 %644  ;;  %v4097_v0 = vpop.permute.xlu0 %639 }
  0xfe   : > { %6250 = vst [vmem:[#allocation114_spill] sm:$0xff] %v4095_v63  ;;  %6251 = vst [vmem:[#allocation115_spill] sm:$0xff] %v4097_v0  ;;  %1028 = vperm.xlu1 %3237, %v4090_v57   ;;  %1023 = vperm.xlu0 %3236, %v4093_v58   ;;  %v4114_v63 = vld [vmem:[%s3785_s29 + $0x1b8] sm:$0xff]  ;;  %v4117_v0 = vld [vmem:[%s3785_s29 + $0x1b0] sm:$0xff] }
  0xff   : > { %6256 = vst [vmem:[#allocation120_spill] sm:$0xff] %v4114_v63  ;;  %6257 = vst [vmem:[#allocation121_spill] sm:$0xff] %v4117_v0 }
 0x101   : > { %v4107_v61 = vpop.permute.xlu1 %654  ;;  %v4109_v62 = vpop.permute.xlu0 %649 }
 0x102   : > { %6254 = vst [vmem:[#allocation118_spill] sm:$0xff] %v4107_v61  ;;  %6255 = vst [vmem:[#allocation119_spill] sm:$0xff] %v4109_v62  ;;  %1038 = vperm.xlu1 %3237, %v4102_v59   ;;  %1033 = vperm.xlu0 %3236, %v4105_v60   ;;  %v4126_v61 = vld [vmem:[%s3785_s29 + $0x1c8] sm:$0xff]  ;;  %v4129_v62 = vld [vmem:[%s3785_s29 + $0x1c0] sm:$0xff] }
 0x103   : > { %6260 = vst [vmem:[#allocation124_spill] sm:$0xff] %v4126_v61  ;;  %6261 = vst [vmem:[#allocation125_spill] sm:$0xff] %v4129_v62 }
 0x105   : > { %v4119_v57 = vpop.permute.xlu1 %664  ;;  %v4121_v58 = vpop.permute.xlu0 %659 }
 0x106   : > { %6258 = vst [vmem:[#allocation122_spill] sm:$0xff] %v4119_v57  ;;  %6259 = vst [vmem:[#allocation123_spill] sm:$0xff] %v4121_v58  ;;  %1048 = vperm.xlu1 %3237, %v4114_v63   ;;  %1043 = vperm.xlu0 %3236, %v4117_v0   ;;  %v4138_v57 = vld [vmem:[%s3785_s29 + $0x1d8] sm:$0xff]  ;;  %v4141_v58 = vld [vmem:[%s3785_s29 + $0x1d0] sm:$0xff] }
 0x107   : > { %6264 = vst [vmem:[#allocation128_spill] sm:$0xff] %v4138_v57  ;;  %6265 = vst [vmem:[#allocation129_spill] sm:$0xff] %v4141_v58 }
 0x109   : > { %v4131_v59 = vpop.permute.xlu1 %674  ;;  %v4133_v60 = vpop.permute.xlu0 %669 }
 0x10a   : > { %6262 = vst [vmem:[#allocation126_spill] sm:$0xff] %v4131_v59  ;;  %6263 = vst [vmem:[#allocation127_spill] sm:$0xff] %v4133_v60  ;;  %1058 = vperm.xlu1 %3237, %v4126_v61   ;;  %1053 = vperm.xlu0 %3236, %v4129_v62   ;;  %v4150_v59 = vld [vmem:[%s3785_s29 + $0x1e8] sm:$0xff]  ;;  %v4153_v60 = vld [vmem:[%s3785_s29 + $0x1e0] sm:$0xff] }
 0x10b   : > { %6268 = vst [vmem:[#allocation132_spill] sm:$0xff] %v4150_v59  ;;  %v4162_v62 = vld [vmem:[%s3785_s29 + $0x1f8] sm:$0xff] }
 0x10d   : > { %v4143_v63 = vpop.permute.xlu1 %684  ;;  %v4145_v0 = vpop.permute.xlu0 %679 }
 0x10e   : > { %6266 = vst [vmem:[#allocation130_spill] sm:$0xff] %v4143_v63  ;;  %6267 = vst [vmem:[#allocation131_spill] sm:$0xff] %v4145_v0  ;;  %1068 = vperm.xlu1 %3237, %v4138_v57   ;;  %1063 = vperm.xlu0 %3236, %v4141_v58   ;;  %v4165_v63 = vld [vmem:[%s3785_s29 + $0x1f0] sm:$0xff] }
 0x111   : > { %v4155_v55 = vpop.permute.xlu1 %694  ;;  %v4157_v61 = vpop.permute.xlu0 %689 }
 0x112   : > { %6269 = vst [vmem:[#allocation133_spill] sm:$0xff] %v4155_v55  ;;  %6270 = vst [vmem:[#allocation134_spill] sm:$0xff] %v4157_v61  ;;  %1078 = vperm.xlu1 %3237, %v4150_v59   ;;  %1073 = vperm.xlu0 %3236, %v4153_v60   ;;  %v3460_v61 = vmov 1  }
 0x115   : > { %v4167_v0 = vpop.permute.xlu1 %704  ;;  %v4169_v57 = vpop.permute.xlu0 %699 }
 0x116   : > { %6271 = vst [vmem:[#allocation135_spill] sm:$0xff] %v4167_v0  ;;  %6272 = vst [vmem:[#allocation136_spill] sm:$0xff] %v4169_v57  ;;  %1088 = vperm.xlu1 %3237, %v4162_v62   ;;  %1083 = vperm.xlu0 %3236, %v4165_v63  }
 0x119   : > { %v4173_v58 = vpop.permute.xlu1 %778  ;;  %v4175_v55 = vpop.permute.xlu0 %773 }
 0x11a   : > { %6273 = vst [vmem:[#allocation137_spill] sm:$0xff] %v4173_v58  ;;  %3239 = vset.pattern.permute.xlu1 %v3460_v61  ;;  %3238 = vset.pattern.permute.xlu0 %v3460_v61 }
 0x11b   : > { %1160 = vperm.xlu1 %3239, %v3538_v4   ;;  %1156 = vperm.xlu0 %3238, %v3530_v2  }
 0x11d   : > { %v4179_v59 = vpop.permute.xlu1 %788  ;;  %v4181_v0 = vpop.permute.xlu0 %783 }
 0x11f   : > { %1164 = vperm.xlu1 %3239, %v3527_v1   ;;  %1168 = vperm.xlu0 %3238, %v3535_v3  }
 0x121   : > { %v4185_v57 = vpop.permute.xlu1 %798  ;;  %v4187_v58 = vpop.permute.xlu0 %793 }
 0x123   : > { %1172 = vperm.xlu1 %3239, %v3546_v6   ;;  %1176 = vperm.xlu0 %3238, %v3543_v5  }
 0x125   : > { %v4191_v61 = vpop.permute.xlu1 %808  ;;  %v4193_v4 = vpop.permute.xlu0 %803 }
 0x127   : > { %1180 = vperm.xlu1 %3239, %v3554_v8   ;;  %1184 = vperm.xlu0 %3238, %v3551_v7  }
 0x129   : > { %v4197_v2 = vpop.permute.xlu1 %818  ;;  %v4199_v1 = vpop.permute.xlu0 %813 }
 0x12b   : > { %1188 = vperm.xlu1 %3239, %v3562_v10   ;;  %1192 = vperm.xlu0 %3238, %v3559_v9  }
 0x12d   : > { %v4203_v3 = vpop.permute.xlu1 %828  ;;  %v4205_v6 = vpop.permute.xlu0 %823 }
 0x12e   : > { %6274 = vst [vmem:[#allocation138_spill] sm:$0xff] %v4203_v3 }
 0x12f   : > { %1196 = vperm.xlu1 %3239, %v3570_v12   ;;  %1200 = vperm.xlu0 %3238, %v3567_v11  }
 0x131   : > { %v4209_v5 = vpop.permute.xlu1 %838  ;;  %v4211_v8 = vpop.permute.xlu0 %833 }
 0x132   : > { %6275 = vst [vmem:[#allocation139_spill] sm:$0xff] %v4209_v5  ;;  %v3318_v5 = vld [vmem:[%s3785_s29 + $0x58] sm:$0xff] }
 0x133   : > { %1204 = vperm.xlu1 %3239, %v3578_v14   ;;  %1208 = vperm.xlu0 %3238, %v3575_v13  }
 0x135   : > { %v4215_v7 = vpop.permute.xlu1 %848  ;;  %v4217_v10 = vpop.permute.xlu0 %843 }
 0x136   : > { %6276 = vst [vmem:[#allocation140_spill] sm:$0xff] %v4215_v7  ;;  %6277 = vst [vmem:[#allocation141_spill] sm:$0xff] %v4217_v10  ;;  %v3312_v7 = vld [vmem:[%s3785_s29 + $0x28] sm:$0xff] }
 0x137   : > { %1212 = vperm.xlu1 %3239, %v3586_v16   ;;  %1216 = vperm.xlu0 %3238, %v3583_v15  }
 0x139   : > { %v4221_v9 = vpop.permute.xlu1 %858  ;;  %v4223_v12 = vpop.permute.xlu0 %853 }
 0x13a   : > { %6278 = vst [vmem:[#allocation142_spill] sm:$0xff] %v4221_v9  ;;  %6279 = vst [vmem:[#allocation143_spill] sm:$0xff] %v4223_v12  ;;  %v3262_v9 = vld [vmem:[%s3524_s26 + $0x98] sm:$0xff] }
 0x13b   : > { %1220 = vperm.xlu1 %3239, %v3594_v18   ;;  %1224 = vperm.xlu0 %3238, %v3591_v17  }
 0x13d   : > { %v4227_v11 = vpop.permute.xlu1 %868  ;;  %v4229_v14 = vpop.permute.xlu0 %863 }
 0x13e   : > { %6280 = vst [vmem:[#allocation144_spill] sm:$0xff] %v4227_v11  ;;  %6281 = vst [vmem:[#allocation145_spill] sm:$0xff] %v4229_v14  ;;  %v3258_v11 = vld [vmem:[%s3524_s26 + $0x78] sm:$0xff] }
 0x13f   : > { %1228 = vperm.xlu1 %3239, %v3602_v20   ;;  %1232 = vperm.xlu0 %3238, %v3599_v19  }
 0x141   : > { %v4233_v13 = vpop.permute.xlu1 %878  ;;  %v4235_v16 = vpop.permute.xlu0 %873 }
 0x142   : > { %6282 = vst [vmem:[#allocation146_spill] sm:$0xff] %v4233_v13  ;;  %6283 = vst [vmem:[#allocation147_spill] sm:$0xff] %v4235_v16  ;;  %v3254_v13 = vld [vmem:[%s3524_s26 + $0x58] sm:$0xff] }
 0x143   : > { %1236 = vperm.xlu1 %3239, %v3610_v22   ;;  %1240 = vperm.xlu0 %3238, %v3607_v21  }
 0x145   : > { %v4239_v15 = vpop.permute.xlu1 %888  ;;  %v4241_v18 = vpop.permute.xlu0 %883 }
 0x146   : > { %6284 = vst [vmem:[#allocation148_spill] sm:$0xff] %v4239_v15  ;;  %6285 = vst [vmem:[#allocation149_spill] sm:$0xff] %v4241_v18  ;;  %v3250_v15 = vld [vmem:[%s3524_s26 + $0x38] sm:$0xff] }
 0x147   : > { %1244 = vperm.xlu1 %3239, %v3618_v24   ;;  %1248 = vperm.xlu0 %3238, %v3615_v23  }
 0x149   : > { %v4245_v17 = vpop.permute.xlu1 %898  ;;  %v4247_v20 = vpop.permute.xlu0 %893 }
 0x14a   : > { %6286 = vst [vmem:[#allocation150_spill] sm:$0xff] %v4245_v17  ;;  %6287 = vst [vmem:[#allocation151_spill] sm:$0xff] %v4247_v20  ;;  %v6380_v17 = vld [vmem:[#allocation68_spill] sm:$0xff] }
 0x14b   : > { %1252 = vperm.xlu1 %3239, %v3626_v26   ;;  %1256 = vperm.xlu0 %3238, %v3623_v25  }
 0x14d   : > { %v4251_v19 = vpop.permute.xlu1 %908  ;;  %v4253_v22 = vpop.permute.xlu0 %903 }
 0x14e   : > { %6288 = vst [vmem:[#allocation152_spill] sm:$0xff] %v4251_v19  ;;  %6289 = vst [vmem:[#allocation153_spill] sm:$0xff] %v4253_v22  ;;  %v6376_v19 = vld [vmem:[#allocation64_spill] sm:$0xff] }
 0x14f   : > { %1260 = vperm.xlu1 %3239, %v3634_v28   ;;  %1264 = vperm.xlu0 %3238, %v3631_v27   ;;  %v6384_v22 = vld [vmem:[#allocation72_spill] sm:$0xff] }
 0x151   : > { %v4257_v21 = vpop.permute.xlu1 %918  ;;  %v4259_v24 = vpop.permute.xlu0 %913 }
 0x152   : > { %6290 = vst [vmem:[#allocation154_spill] sm:$0xff] %v4257_v21  ;;  %6291 = vst [vmem:[#allocation155_spill] sm:$0xff] %v4259_v24  ;;  %v6372_v21 = vld [vmem:[#allocation60_spill] sm:$0xff] }
 0x153   : > { %1268 = vperm.xlu1 %3239, %v3642_v30   ;;  %1272 = vperm.xlu0 %3238, %v3639_v29  }
 0x155   : > { %v4263_v23 = vpop.permute.xlu1 %928  ;;  %v4265_v26 = vpop.permute.xlu0 %923 }
 0x156   : > { %6292 = vst [vmem:[#allocation156_spill] sm:$0xff] %v4263_v23  ;;  %6293 = vst [vmem:[#allocation157_spill] sm:$0xff] %v4265_v26  ;;  %v6368_v23 = vld [vmem:[#allocation56_spill] sm:$0xff] }
 0x157   : > { %1276 = vperm.xlu1 %3239, %v3650_v32   ;;  %1280 = vperm.xlu0 %3238, %v3647_v31  }
 0x159   : > { %v4269_v25 = vpop.permute.xlu1 %938  ;;  %v4271_v28 = vpop.permute.xlu0 %933 }
 0x15a   : > { %6294 = vst [vmem:[#allocation158_spill] sm:$0xff] %v4269_v25  ;;  %6295 = vst [vmem:[#allocation159_spill] sm:$0xff] %v4271_v28  ;;  %v6364_v25 = vld [vmem:[#allocation52_spill] sm:$0xff] }
 0x15b   : > { %1284 = vperm.xlu1 %3239, %v3658_v34   ;;  %1288 = vperm.xlu0 %3238, %v3655_v33  }
 0x15d   : > { %v4275_v27 = vpop.permute.xlu1 %948  ;;  %v4277_v30 = vpop.permute.xlu0 %943 }
 0x15e   : > { %6296 = vst [vmem:[#allocation160_spill] sm:$0xff] %v4275_v27  ;;  %6297 = vst [vmem:[#allocation161_spill] sm:$0xff] %v4277_v30  ;;  %v6360_v27 = vld [vmem:[#allocation48_spill] sm:$0xff] }
 0x15f   : > { %1292 = vperm.xlu1 %3239, %v3666_v36   ;;  %1296 = vperm.xlu0 %3238, %v3663_v35  }
 0x161   : > { %v4281_v29 = vpop.permute.xlu1 %958  ;;  %v4283_v32 = vpop.permute.xlu0 %953 }
 0x162   : > { %6298 = vst [vmem:[#allocation162_spill] sm:$0xff] %v4281_v29  ;;  %6299 = vst [vmem:[#allocation163_spill] sm:$0xff] %v4283_v32  ;;  %v6356_v29 = vld [vmem:[#allocation44_spill] sm:$0xff] }
 0x163   : > { %1300 = vperm.xlu1 %3239, %v3674_v38   ;;  %1304 = vperm.xlu0 %3238, %v3671_v37  }
 0x165   : > { %v4287_v31 = vpop.permute.xlu1 %968  ;;  %v4289_v34 = vpop.permute.xlu0 %963 }
 0x166   : > { %6300 = vst [vmem:[#allocation164_spill] sm:$0xff] %v4287_v31  ;;  %6301 = vst [vmem:[#allocation165_spill] sm:$0xff] %v4289_v34  ;;  %v6352_v31 = vld [vmem:[#allocation40_spill] sm:$0xff] }
 0x167   : > { %1308 = vperm.xlu1 %3239, %v3682_v40   ;;  %1312 = vperm.xlu0 %3238, %v3679_v39  }
 0x169   : > { %v4293_v33 = vpop.permute.xlu1 %978  ;;  %v4295_v36 = vpop.permute.xlu0 %973 }
 0x16a   : > { %6302 = vst [vmem:[#allocation166_spill] sm:$0xff] %v4293_v33  ;;  %6303 = vst [vmem:[#allocation167_spill] sm:$0xff] %v4295_v36  ;;  %v6349_v33 = vld [vmem:[#allocation36_spill] sm:$0xff] }
 0x16b   : > { %1316 = vperm.xlu1 %3239, %v3690_v42   ;;  %1320 = vperm.xlu0 %3238, %v3687_v41  }
 0x16d   : > { %v4299_v35 = vpop.permute.xlu1 %988  ;;  %v4301_v38 = vpop.permute.xlu0 %983 }
 0x16e   : > { %6304 = vst [vmem:[#allocation168_spill] sm:$0xff] %v4299_v35  ;;  %6305 = vst [vmem:[#allocation169_spill] sm:$0xff] %v4301_v38  ;;  %v6346_v35 = vld [vmem:[#allocation32_spill] sm:$0xff] }
 0x16f   : > { %1324 = vperm.xlu1 %3239, %v3698_v44   ;;  %1328 = vperm.xlu0 %3238, %v3695_v43  }
 0x171   : > { %v4305_v37 = vpop.permute.xlu1 %998  ;;  %v4307_v40 = vpop.permute.xlu0 %993 }
 0x172   : > { %6306 = vst [vmem:[#allocation170_spill] sm:$0xff] %v4305_v37  ;;  %6307 = vst [vmem:[#allocation171_spill] sm:$0xff] %v4307_v40  ;;  %v6344_v37 = vld [vmem:[#allocation28_spill] sm:$0xff] }
 0x173   : > { %1332 = vperm.xlu1 %3239, %v3706_v46   ;;  %1336 = vperm.xlu0 %3238, %v3703_v45  }
 0x175   : > { %v4311_v39 = vpop.permute.xlu1 %1008  ;;  %v4313_v42 = vpop.permute.xlu0 %1003 }
 0x176   : > { %6308 = vst [vmem:[#allocation172_spill] sm:$0xff] %v4311_v39  ;;  %6309 = vst [vmem:[#allocation173_spill] sm:$0xff] %v4313_v42  ;;  %v6342_v39 = vld [vmem:[#allocation24_spill] sm:$0xff] }
 0x177   : > { %1340 = vperm.xlu1 %3239, %v3714_v48   ;;  %1344 = vperm.xlu0 %3238, %v3711_v47  }
 0x179   : > { %v4317_v41 = vpop.permute.xlu1 %1018  ;;  %v4319_v44 = vpop.permute.xlu0 %1013 }
 0x17a   : > { %6310 = vst [vmem:[#allocation174_spill] sm:$0xff] %v4317_v41  ;;  %6311 = vst [vmem:[#allocation175_spill] sm:$0xff] %v4319_v44  ;;  %v6340_v41 = vld [vmem:[#allocation20_spill] sm:$0xff] }
 0x17b   : > { %1348 = vperm.xlu1 %3239, %v3722_v50   ;;  %1352 = vperm.xlu0 %3238, %v3719_v49   ;;  %v6318_v49 = vld [vmem:[#allocation3_spill] sm:$0xff] }
 0x17d   : > { %v4323_v43 = vpop.permute.xlu1 %1028  ;;  %v4325_v46 = vpop.permute.xlu0 %1023 }
 0x17e   : > { %6312 = vst [vmem:[#allocation176_spill] sm:$0xff] %v4323_v43  ;;  %6313 = vst [vmem:[#allocation177_spill] sm:$0xff] %v4325_v46 }
 0x17f   : > { %1356 = vperm.xlu1 %3239, %v3730_v52   ;;  %1360 = vperm.xlu0 %3238, %v3727_v51   ;;  %v6321_v51 = vld [vmem:[#allocation5_spill] sm:$0xff] }
 0x181   : > { %v4329_v45 = vpop.permute.xlu1 %1038  ;;  %v4331_v48 = vpop.permute.xlu0 %1033 }
 0x182   : > { %6314 = vst [vmem:[#allocation178_spill] sm:$0xff] %v4329_v45  ;;  %6315 = vst [vmem:[#allocation179_spill] sm:$0xff] %v4331_v48  ;;  %v6322_v45 = vld [vmem:[#allocation4_spill] sm:$0xff] }
 0x183   : > { %1364 = vperm.xlu1 %3239, %v3738_v54   ;;  %1368 = vperm.xlu0 %3238, %v3735_v53   ;;  %v6325_v53 = vld [vmem:[#allocation7_spill] sm:$0xff] }
 0x185   : > { %v4335_v47 = vpop.permute.xlu1 %1048  ;;  %v4337_v50 = vpop.permute.xlu0 %1043 }
 0x186   : > { %6316 = vst [vmem:[#allocation180_spill] sm:$0xff] %v4335_v47  ;;  %6317 = vst [vmem:[#allocation181_spill] sm:$0xff] %v4337_v50  ;;  %v6326_v47 = vld [vmem:[#allocation6_spill] sm:$0xff] }
 0x187   : > { %1372 = vperm.xlu1 %3239, %v3746_v56   ;;  %1376 = vperm.xlu0 %3238, %v6318_v49   ;;  %v6329_v49 = vld [vmem:[#allocation9_spill] sm:$0xff] }
 0x189   : > { %v4341_v43 = vpop.permute.xlu1 %1058  ;;  %v4343_v52 = vpop.permute.xlu0 %1053 }
 0x18a   : > { %6319 = vst [vmem:[#allocation3_spill] sm:$0xff] %v4341_v43  ;;  %6320 = vst [vmem:[#allocation182_spill] sm:$0xff] %v4343_v52  ;;  %v6330_v43 = vld [vmem:[#allocation8_spill] sm:$0xff] }
 0x18b   : > { %1380 = vperm.xlu1 %3239, %v6321_v51   ;;  %1384 = vperm.xlu0 %3238, %v6322_v45   ;;  %v6333_v45 = vld [vmem:[#allocation11_spill] sm:$0xff] }
 0x18d   : > { %v4347_v48 = vpop.permute.xlu1 %1068  ;;  %v4349_v54 = vpop.permute.xlu0 %1063 }
 0x18e   : > { %6323 = vst [vmem:[#allocation5_spill] sm:$0xff] %v4347_v48  ;;  %6324 = vst [vmem:[#allocation4_spill] sm:$0xff] %v4349_v54  ;;  %v6334_v48 = vld [vmem:[#allocation10_spill] sm:$0xff] }
 0x18f   : > { %1388 = vperm.xlu1 %3239, %v6325_v53   ;;  %1392 = vperm.xlu0 %3238, %v6326_v47   ;;  %v6335_v47 = vld [vmem:[#allocation13_spill] sm:$0xff] }
 0x191   : > { %v4353_v50 = vpop.permute.xlu1 %1078  ;;  %v4355_v56 = vpop.permute.xlu0 %1073 }
 0x192   : > { %6327 = vst [vmem:[#allocation7_spill] sm:$0xff] %v4353_v50  ;;  %6328 = vst [vmem:[#allocation6_spill] sm:$0xff] %v4355_v56  ;;  %v6336_v50 = vld [vmem:[#allocation12_spill] sm:$0xff] }
 0x193   : > { %1396 = vperm.xlu1 %3239, %v6329_v49   ;;  %1400 = vperm.xlu0 %3238, %v6330_v43   ;;  %v6337_v43 = vld [vmem:[#allocation17_spill] sm:$0xff] }
 0x195   : > { %v4359_v52 = vpop.permute.xlu1 %1088  ;;  %v4361_v51 = vpop.permute.xlu0 %1083 }
 0x196   : > { %6331 = vst [vmem:[#allocation9_spill] sm:$0xff] %v4359_v52  ;;  %6332 = vst [vmem:[#allocation8_spill] sm:$0xff] %v4361_v51  ;;  %v6338_v52 = vld [vmem:[#allocation16_spill] sm:$0xff] }
 0x197   : > { %1404 = vperm.xlu1 %3239, %v6333_v45   ;;  %1408 = vperm.xlu0 %3238, %v6334_v48   ;;  %v6339_v48 = vld [vmem:[#allocation21_spill] sm:$0xff] }
 0x19a   : > { %v4365_v54 = vpop.permute.xlu1 %1160  ;;  %v4367_v53 = vpop.permute.xlu0 %1156 }
 0x19b   : > { %1476 = vperm.xlu1 %3239, %v6335_v47   ;;  %1480 = vperm.xlu0 %3238, %v6336_v50   ;;  %v6341_v50 = vld [vmem:[#allocation25_spill] sm:$0xff] }
 0x19e   : > { %v4371_v56 = vpop.permute.xlu1 %1164  ;;  %v4373_v49 = vpop.permute.xlu0 %1168 }
 0x19f   : > { %1484 = vperm.xlu1 %3239, %v6337_v43   ;;  %1488 = vperm.xlu0 %3238, %v6338_v52   ;;  %v6343_v52 = vld [vmem:[#allocation29_spill] sm:$0xff] }
 0x1a2   : > { %v4377_v51 = vpop.permute.xlu1 %1172  ;;  %v4379_v45 = vpop.permute.xlu0 %1176 }
 0x1a3   : > { %1492 = vperm.xlu1 %3239, %v6339_v48   ;;  %1496 = vperm.xlu0 %3238, %v6340_v41   ;;  %v6345_v41 = vld [vmem:[#allocation33_spill] sm:$0xff] }
 0x1a6   : > { %v4383_v46 = vpop.permute.xlu1 %1180  ;;  %v4385_v47 = vpop.permute.xlu0 %1184 }
 0x1a7   : > { %1500 = vperm.xlu1 %3239, %v6341_v50   ;;  %1504 = vperm.xlu0 %3238, %v6342_v39   ;;  %v6348_v39 = vld [vmem:[#allocation37_spill] sm:$0xff] }
 0x1aa   : > { %v4389_v44 = vpop.permute.xlu1 %1188  ;;  %v4391_v43 = vpop.permute.xlu0 %1192 }
 0x1ab   : > { %1508 = vperm.xlu1 %3239, %v6343_v52   ;;  %1512 = vperm.xlu0 %3238, %v6344_v37   ;;  %v6351_v37 = vld [vmem:[#allocation41_spill] sm:$0xff] }
 0x1ae   : > { %v4395_v42 = vpop.permute.xlu1 %1196  ;;  %v4397_v48 = vpop.permute.xlu0 %1200 }
 0x1af   : > { %1516 = vperm.xlu1 %3239, %v6345_v41   ;;  %1520 = vperm.xlu0 %3238, %v6346_v35   ;;  %v6355_v35 = vld [vmem:[#allocation45_spill] sm:$0xff] }
 0x1b2   : > { %v4401_v40 = vpop.permute.xlu1 %1204  ;;  %v4403_v50 = vpop.permute.xlu0 %1208 }
 0x1b3   : > { %6347 = vst [vmem:[#allocation11_spill] sm:$0xff] %v4403_v50  ;;  %1524 = vperm.xlu1 %3239, %v6348_v39   ;;  %1528 = vperm.xlu0 %3238, %v6349_v33   ;;  %v6359_v33 = vld [vmem:[#allocation49_spill] sm:$0xff]  ;;  %v3322_v50 = vld [vmem:[%s3785_s29 + $0x78] sm:$0xff] }
 0x1b6   : > { %v4407_v38 = vpop.permute.xlu1 %1212  ;;  %v4409_v52 = vpop.permute.xlu0 %1216 }
 0x1b7   : > { %6350 = vst [vmem:[#allocation10_spill] sm:$0xff] %v4409_v52  ;;  %1532 = vperm.xlu1 %3239, %v6351_v37   ;;  %1536 = vperm.xlu0 %3238, %v6352_v31   ;;  %v6363_v31 = vld [vmem:[#allocation53_spill] sm:$0xff]  ;;  %v3316_v52 = vld [vmem:[%s3785_s29 + $0x48] sm:$0xff] }
 0x1ba   : > { %v4413_v36 = vpop.permute.xlu1 %1220  ;;  %v4415_v41 = vpop.permute.xlu0 %1224 }
 0x1bb   : > { %6353 = vst [vmem:[#allocation13_spill] sm:$0xff] %v4413_v36  ;;  %6354 = vst [vmem:[#allocation12_spill] sm:$0xff] %v4415_v41  ;;  %1540 = vperm.xlu1 %3239, %v6355_v35   ;;  %1544 = vperm.xlu0 %3238, %v6356_v29   ;;  %v6367_v29 = vld [vmem:[#allocation57_spill] sm:$0xff]  ;;  %v3310_v41 = vld [vmem:[%s3785_s29 + $0x18] sm:$0xff] }
 0x1be   : > { %v4419_v34 = vpop.permute.xlu1 %1228  ;;  %v4421_v39 = vpop.permute.xlu0 %1232 }
 0x1bf   : > { %6357 = vst [vmem:[#allocation17_spill] sm:$0xff] %v4419_v34  ;;  %6358 = vst [vmem:[#allocation16_spill] sm:$0xff] %v4421_v39  ;;  %1548 = vperm.xlu1 %3239, %v6359_v33   ;;  %1552 = vperm.xlu0 %3238, %v6360_v27   ;;  %v6371_v27 = vld [vmem:[#allocation61_spill] sm:$0xff]  ;;  %v3260_v39 = vld [vmem:[%s3524_s26 + $0x88] sm:$0xff] }
 0x1c2   : > { %v4425_v32 = vpop.permute.xlu1 %1236  ;;  %v4427_v37 = vpop.permute.xlu0 %1240 }
 0x1c3   : > { %6361 = vst [vmem:[#allocation21_spill] sm:$0xff] %v4425_v32  ;;  %6362 = vst [vmem:[#allocation20_spill] sm:$0xff] %v4427_v37  ;;  %1556 = vperm.xlu1 %3239, %v6363_v31   ;;  %1560 = vperm.xlu0 %3238, %v6364_v25   ;;  %v6375_v25 = vld [vmem:[#allocation65_spill] sm:$0xff]  ;;  %v3256_v37 = vld [vmem:[%s3524_s26 + $0x68] sm:$0xff] }
 0x1c6   : > { %v4431_v30 = vpop.permute.xlu1 %1244  ;;  %v4433_v35 = vpop.permute.xlu0 %1248 }
 0x1c7   : > { %6365 = vst [vmem:[#allocation25_spill] sm:$0xff] %v4431_v30  ;;  %6366 = vst [vmem:[#allocation24_spill] sm:$0xff] %v4433_v35  ;;  %1564 = vperm.xlu1 %3239, %v6367_v29   ;;  %1568 = vperm.xlu0 %3238, %v6368_v23   ;;  %v6379_v23 = vld [vmem:[#allocation69_spill] sm:$0xff]  ;;  %v3252_v35 = vld [vmem:[%s3524_s26 + $0x48] sm:$0xff] }
 0x1ca   : > { %v4437_v28 = vpop.permute.xlu1 %1252  ;;  %v4439_v33 = vpop.permute.xlu0 %1256 }
 0x1cb   : > { %6369 = vst [vmem:[#allocation29_spill] sm:$0xff] %v4437_v28  ;;  %6370 = vst [vmem:[#allocation28_spill] sm:$0xff] %v4439_v33  ;;  %1572 = vperm.xlu1 %3239, %v6371_v27   ;;  %1576 = vperm.xlu0 %3238, %v6372_v21   ;;  %v6383_v21 = vld [vmem:[#allocation73_spill] sm:$0xff] }
 0x1ce   : > { %v4443_v26 = vpop.permute.xlu1 %1260  ;;  %v4445_v31 = vpop.permute.xlu0 %1264 }
 0x1cf   : > { %6373 = vst [vmem:[#allocation33_spill] sm:$0xff] %v4443_v26  ;;  %6374 = vst [vmem:[#allocation32_spill] sm:$0xff] %v4445_v31  ;;  %1580 = vperm.xlu1 %3239, %v6375_v25   ;;  %1584 = vperm.xlu0 %3238, %v6376_v19   ;;  %v6387_v19 = vld [vmem:[#allocation77_spill] sm:$0xff] }
 0x1d2   : > { %v4449_v24 = vpop.permute.xlu1 %1268  ;;  %v4451_v29 = vpop.permute.xlu0 %1272 }
 0x1d3   : > { %6377 = vst [vmem:[#allocation37_spill] sm:$0xff] %v4449_v24  ;;  %6378 = vst [vmem:[#allocation36_spill] sm:$0xff] %v4451_v29  ;;  %1588 = vperm.xlu1 %3239, %v6379_v23   ;;  %1592 = vperm.xlu0 %3238, %v6380_v17   ;;  %v6388_v24 = vld [vmem:[#allocation76_spill] sm:$0xff]  ;;  %v6391_v17 = vld [vmem:[#allocation81_spill] sm:$0xff] }
 0x1d6   : > { %v4455_v33 = vpop.permute.xlu1 %1276  ;;  %v4457_v27 = vpop.permute.xlu0 %1280 }
 0x1d7   : > { %6381 = vst [vmem:[#allocation41_spill] sm:$0xff] %v4455_v33  ;;  %6382 = vst [vmem:[#allocation40_spill] sm:$0xff] %v4457_v27  ;;  %1596 = vperm.xlu1 %3239, %v6383_v21   ;;  %1600 = vperm.xlu0 %3238, %v6384_v22   ;;  %v6392_v33 = vld [vmem:[#allocation80_spill] sm:$0xff]  ;;  %v6395_v22 = vld [vmem:[#allocation85_spill] sm:$0xff] }
 0x1da   : > { %v4461_v31 = vpop.permute.xlu1 %1284  ;;  %v4463_v25 = vpop.permute.xlu0 %1288 }
 0x1db   : > { %6385 = vst [vmem:[#allocation45_spill] sm:$0xff] %v4461_v31  ;;  %6386 = vst [vmem:[#allocation44_spill] sm:$0xff] %v4463_v25  ;;  %1604 = vperm.xlu1 %3239, %v6387_v19   ;;  %1608 = vperm.xlu0 %3238, %v6388_v24   ;;  %v6396_v31 = vld [vmem:[#allocation84_spill] sm:$0xff]  ;;  %v6399_v24 = vld [vmem:[#allocation89_spill] sm:$0xff] }
 0x1de   : > { %v4467_v29 = vpop.permute.xlu1 %1292  ;;  %v4469_v23 = vpop.permute.xlu0 %1296 }
 0x1df   : > { %6389 = vst [vmem:[#allocation49_spill] sm:$0xff] %v4467_v29  ;;  %6390 = vst [vmem:[#allocation48_spill] sm:$0xff] %v4469_v23  ;;  %1612 = vperm.xlu1 %3239, %v6391_v17   ;;  %1616 = vperm.xlu0 %3238, %v6392_v33   ;;  %v6400_v29 = vld [vmem:[#allocation88_spill] sm:$0xff]  ;;  %v6403_v33 = vld [vmem:[#allocation93_spill] sm:$0xff] }
 0x1e2   : > { %v4473_v27 = vpop.permute.xlu1 %1300  ;;  %v4475_v21 = vpop.permute.xlu0 %1304 }
 0x1e3   : > { %6393 = vst [vmem:[#allocation53_spill] sm:$0xff] %v4473_v27  ;;  %6394 = vst [vmem:[#allocation52_spill] sm:$0xff] %v4475_v21  ;;  %1620 = vperm.xlu1 %3239, %v6395_v22   ;;  %1624 = vperm.xlu0 %3238, %v6396_v31   ;;  %v6404_v27 = vld [vmem:[#allocation92_spill] sm:$0xff]  ;;  %v6407_v31 = vld [vmem:[#allocation97_spill] sm:$0xff] }
 0x1e6   : > { %v4479_v25 = vpop.permute.xlu1 %1308  ;;  %v4481_v19 = vpop.permute.xlu0 %1312 }
 0x1e7   : > { %6397 = vst [vmem:[#allocation57_spill] sm:$0xff] %v4479_v25  ;;  %6398 = vst [vmem:[#allocation56_spill] sm:$0xff] %v4481_v19  ;;  %1628 = vperm.xlu1 %3239, %v6399_v24   ;;  %1632 = vperm.xlu0 %3238, %v6400_v29   ;;  %v6408_v25 = vld [vmem:[#allocation96_spill] sm:$0xff]  ;;  %v6411_v29 = vld [vmem:[#allocation101_spill] sm:$0xff] }
 0x1ea   : > { %v4485_v23 = vpop.permute.xlu1 %1316  ;;  %v4487_v17 = vpop.permute.xlu0 %1320 }
 0x1eb   : > { %6401 = vst [vmem:[#allocation61_spill] sm:$0xff] %v4485_v23  ;;  %6402 = vst [vmem:[#allocation60_spill] sm:$0xff] %v4487_v17  ;;  %1636 = vperm.xlu1 %3239, %v6403_v33   ;;  %1640 = vperm.xlu0 %3238, %v6404_v27   ;;  %v6412_v23 = vld [vmem:[#allocation100_spill] sm:$0xff]  ;;  %v6415_v27 = vld [vmem:[#allocation105_spill] sm:$0xff] }
 0x1ee   : > { %v4491_v21 = vpop.permute.xlu1 %1324  ;;  %v4493_v22 = vpop.permute.xlu0 %1328 }
 0x1ef   : > { %6405 = vst [vmem:[#allocation65_spill] sm:$0xff] %v4491_v21  ;;  %6406 = vst [vmem:[#allocation64_spill] sm:$0xff] %v4493_v22  ;;  %1644 = vperm.xlu1 %3239, %v6407_v31   ;;  %1648 = vperm.xlu0 %3238, %v6408_v25   ;;  %v6416_v21 = vld [vmem:[#allocation104_spill] sm:$0xff]  ;;  %v6419_v25 = vld [vmem:[#allocation109_spill] sm:$0xff] }
 0x1f2   : > { %v4497_v19 = vpop.permute.xlu1 %1332  ;;  %v4499_v24 = vpop.permute.xlu0 %1336 }
 0x1f3   : > { %6409 = vst [vmem:[#allocation69_spill] sm:$0xff] %v4497_v19  ;;  %6410 = vst [vmem:[#allocation68_spill] sm:$0xff] %v4499_v24  ;;  %1652 = vperm.xlu1 %3239, %v6411_v29   ;;  %1656 = vperm.xlu0 %3238, %v6412_v23   ;;  %v6420_v19 = vld [vmem:[#allocation108_spill] sm:$0xff]  ;;  %v6423_v23 = vld [vmem:[#allocation113_spill] sm:$0xff] }
 0x1f6   : > { %v4503_v17 = vpop.permute.xlu1 %1340  ;;  %v4505_v33 = vpop.permute.xlu0 %1344 }
 0x1f7   : > { %6413 = vst [vmem:[#allocation73_spill] sm:$0xff] %v4503_v17  ;;  %6414 = vst [vmem:[#allocation72_spill] sm:$0xff] %v4505_v33  ;;  %1660 = vperm.xlu1 %3239, %v6415_v27   ;;  %1664 = vperm.xlu0 %3238, %v6416_v21   ;;  %v6424_v17 = vld [vmem:[#allocation112_spill] sm:$0xff]  ;;  %v6427_v21 = vld [vmem:[#allocation117_spill] sm:$0xff] }
 0x1fa   : > { %v4509_v22 = vpop.permute.xlu1 %1348  ;;  %v4511_v31 = vpop.permute.xlu0 %1352 }
 0x1fb   : > { %6417 = vst [vmem:[#allocation77_spill] sm:$0xff] %v4509_v22  ;;  %6418 = vst [vmem:[#allocation76_spill] sm:$0xff] %v4511_v31  ;;  %1668 = vperm.xlu1 %3239, %v6419_v25   ;;  %1672 = vperm.xlu0 %3238, %v6420_v19   ;;  %v6428_v22 = vld [vmem:[#allocation116_spill] sm:$0xff]  ;;  %v6431_v19 = vld [vmem:[#allocation121_spill] sm:$0xff] }
 0x1fe   : > { %v4515_v24 = vpop.permute.xlu1 %1356  ;;  %v4517_v29 = vpop.permute.xlu0 %1360 }
 0x1ff   : > { %6421 = vst [vmem:[#allocation81_spill] sm:$0xff] %v4515_v24  ;;  %6422 = vst [vmem:[#allocation80_spill] sm:$0xff] %v4517_v29  ;;  %1676 = vperm.xlu1 %3239, %v6423_v23   ;;  %1680 = vperm.xlu0 %3238, %v6424_v17   ;;  %v6432_v24 = vld [vmem:[#allocation120_spill] sm:$0xff]  ;;  %v6435_v17 = vld [vmem:[#allocation125_spill] sm:$0xff] }
 0x202   : > { %v4521_v33 = vpop.permute.xlu1 %1364  ;;  %v4523_v27 = vpop.permute.xlu0 %1368 }
 0x203   : > { %6425 = vst [vmem:[#allocation85_spill] sm:$0xff] %v4521_v33  ;;  %6426 = vst [vmem:[#allocation84_spill] sm:$0xff] %v4523_v27  ;;  %1684 = vperm.xlu1 %3239, %v6427_v21   ;;  %1688 = vperm.xlu0 %3238, %v6428_v22   ;;  %v6436_v33 = vld [vmem:[#allocation124_spill] sm:$0xff]  ;;  %v6439_v22 = vld [vmem:[#allocation129_spill] sm:$0xff] }
 0x206   : > { %v4527_v31 = vpop.permute.xlu1 %1372  ;;  %v4529_v25 = vpop.permute.xlu0 %1376 }
 0x207   : > { %6429 = vst [vmem:[#allocation89_spill] sm:$0xff] %v4527_v31  ;;  %6430 = vst [vmem:[#allocation88_spill] sm:$0xff] %v4529_v25  ;;  %1692 = vperm.xlu1 %3239, %v6431_v19   ;;  %1696 = vperm.xlu0 %3238, %v6432_v24   ;;  %v6440_v25 = vld [vmem:[#allocation128_spill] sm:$0xff] }
 0x20a   : > { %v4533_v29 = vpop.permute.xlu1 %1380  ;;  %v4535_v23 = vpop.permute.xlu0 %1384 }
 0x20b   : > { %6433 = vst [vmem:[#allocation93_spill] sm:$0xff] %v4533_v29  ;;  %6434 = vst [vmem:[#allocation92_spill] sm:$0xff] %v4535_v23  ;;  %1700 = vperm.xlu1 %3239, %v6435_v17   ;;  %1704 = vperm.xlu0 %3238, %v6436_v33   ;;  %v6443_v23 = vld [vmem:[#allocation132_spill] sm:$0xff] }
 0x20c   : > { %v3248_v29 = vld [vmem:[%s3524_s26 + $0x28] sm:$0xff] }
 0x20e   : > { %v4539_v27 = vpop.permute.xlu1 %1388  ;;  %v4541_v21 = vpop.permute.xlu0 %1392 }
 0x20f   : > { %6437 = vst [vmem:[#allocation97_spill] sm:$0xff] %v4539_v27  ;;  %6438 = vst [vmem:[#allocation96_spill] sm:$0xff] %v4541_v21  ;;  %1708 = vperm.xlu1 %3239, %v6439_v22   ;;  %1712 = vperm.xlu0 %3238, %v6440_v25  }
 0x212   : > { %v4545_v19 = vpop.permute.xlu1 %1396  ;;  %v4547_v24 = vpop.permute.xlu0 %1400 }
 0x213   : > { %6441 = vst [vmem:[#allocation101_spill] sm:$0xff] %v4545_v19  ;;  %6442 = vst [vmem:[#allocation100_spill] sm:$0xff] %v4547_v24  ;;  %1716 = vperm.xlu1 %3239, %v4153_v60   ;;  %1720 = vperm.xlu0 %3238, %v6443_v23   ;;  %v3461_v24 = vmov 2   ;;  %v3242_v60 = vld [vmem:[%s3524_s26] sm:$0xff]  ;;  %v3243_v23 = vld [vmem:[%s3524_s26 + $0x8] sm:$0xff] }
 0x216   : > { %v4551_v33 = vpop.permute.xlu1 %1404  ;;  %v4553_v17 = vpop.permute.xlu0 %1408 }
 0x217   : > { %6444 = vst [vmem:[#allocation105_spill] sm:$0xff] %v4551_v33  ;;  %6445 = vst [vmem:[#allocation104_spill] sm:$0xff] %v4553_v17  ;;  %1724 = vperm.xlu1 %3239, %v4165_v63   ;;  %1728 = vperm.xlu0 %3238, %v4162_v62   ;;  %v3244_v62 = vld [vmem:[%s3524_s26 + $0x10] sm:$0xff]  ;;  %v3245_v33 = vld [vmem:[%s3524_s26 + $0x20] sm:$0xff] }
 0x21a   : > { %v4557_v25 = vpop.permute.xlu1 %1476  ;;  %v4559_v22 = vpop.permute.xlu0 %1480 }
 0x21b   : > { %3240 = vset.pattern.permute.xlu1 %v3461_v24  ;;  %3241 = vset.pattern.permute.xlu0 %v3461_v24  ;;  %v3246_v24 = vld [vmem:[%s3524_s26 + $0x18] sm:$0xff] }
 0x21c   : > { %1796 = vperm.xlu1 %3240, %v3242_v60   ;;  %1800 = vperm.xlu0 %3241, %v3243_v23   ;;  %v3247_v60 = vld [vmem:[%s3524_s26 + $0x30] sm:$0xff] }
 0x21e   : > { %v4563_v17 = vpop.permute.xlu1 %1484  ;;  %v4565_v63 = vpop.permute.xlu0 %1488 }
 0x220   : > { %1804 = vperm.xlu1 %3240, %v3244_v62   ;;  %1812 = vperm.xlu0 %3241, %v3245_v33   ;;  %v3249_v62 = vld [vmem:[%s3524_s26 + $0x40] sm:$0xff] }
 0x222   : > { %v4569_v21 = vpop.permute.xlu1 %1492  ;;  %v4571_v19 = vpop.permute.xlu0 %1496 }
 0x224   : > { %1808 = vperm.xlu1 %3240, %v3246_v24   ;;  %1820 = vperm.xlu0 %3241, %v3247_v60   ;;  %v3251_v24 = vld [vmem:[%s3524_s26 + $0x50] sm:$0xff] }
 0x226   : > { %v4575_v23 = vpop.permute.xlu1 %1500  ;;  %v4577_v27 = vpop.permute.xlu0 %1504 }
 0x228   : > { %1816 = vperm.xlu1 %3240, %v3248_v29   ;;  %1828 = vperm.xlu0 %3241, %v3249_v62   ;;  %v3253_v29 = vld [vmem:[%s3524_s26 + $0x60] sm:$0xff] }
 0x22a   : > { %v4581_v33 = vpop.permute.xlu1 %1508  ;;  %v4583_v31 = vpop.permute.xlu0 %1512 }
 0x22c   : > { %1824 = vperm.xlu1 %3240, %v3250_v15   ;;  %1836 = vperm.xlu0 %3241, %v3251_v24   ;;  %v3255_v15 = vld [vmem:[%s3524_s26 + $0x70] sm:$0xff] }
 0x22e   : > { %v4587_v60 = vpop.permute.xlu1 %1516  ;;  %v4589_v26 = vpop.permute.xlu0 %1520 }
 0x22f   : > { %6446 = vst [vmem:[#allocation109_spill] sm:$0xff] %v4589_v26  ;;  %v3362_v26 = vld [vmem:[%s3785_s29 + $0x1b8] sm:$0xff] }
 0x230   : > { %1832 = vperm.xlu1 %3240, %v3252_v35   ;;  %1844 = vperm.xlu0 %3241, %v3253_v29   ;;  %v3257_v35 = vld [vmem:[%s3524_s26 + $0x80] sm:$0xff] }
 0x232   : > { %v4593_v62 = vpop.permute.xlu1 %1524  ;;  %v4595_v20 = vpop.permute.xlu0 %1528 }
 0x233   : > { %6447 = vst [vmem:[#allocation108_spill] sm:$0xff] %v4595_v20  ;;  %v3320_v20 = vld [vmem:[%s3785_s29 + $0x68] sm:$0xff] }
 0x234   : > { %1840 = vperm.xlu1 %3240, %v3254_v13   ;;  %1852 = vperm.xlu0 %3241, %v3255_v15   ;;  %v3259_v13 = vld [vmem:[%s3524_s26 + $0x90] sm:$0xff] }
 0x236   : > { %v4599_v24 = vpop.permute.xlu1 %1532  ;;  %v4601_v28 = vpop.permute.xlu0 %1536 }
 0x237   : > { %6448 = vst [vmem:[#allocation113_spill] sm:$0xff] %v4599_v24  ;;  %6449 = vst [vmem:[#allocation112_spill] sm:$0xff] %v4601_v28  ;;  %v3314_v28 = vld [vmem:[%s3785_s29 + $0x38] sm:$0xff] }
 0x238   : > { %1848 = vperm.xlu1 %3240, %v3256_v37   ;;  %1860 = vperm.xlu0 %3241, %v3257_v35   ;;  %v3261_v37 = vld [vmem:[%s3524_s26 + $0xa0] sm:$0xff] }
 0x23a   : > { %v4605_v29 = vpop.permute.xlu1 %1540  ;;  %v4607_v18 = vpop.permute.xlu0 %1544 }
 0x23b   : > { %6450 = vst [vmem:[#allocation117_spill] sm:$0xff] %v4605_v29  ;;  %6451 = vst [vmem:[#allocation116_spill] sm:$0xff] %v4607_v18 }
 0x23c   : > { %1856 = vperm.xlu1 %3240, %v3258_v11   ;;  %1868 = vperm.xlu0 %3241, %v3259_v13   ;;  %v3263_v11 = vld [vmem:[%s3524_s26 + $0xb0] sm:$0xff] }
 0x23e   : > { %v4611_v15 = vpop.permute.xlu1 %1548  ;;  %v4613_v30 = vpop.permute.xlu0 %1552 }
 0x23f   : > { %6452 = vst [vmem:[#allocation121_spill] sm:$0xff] %v4611_v15  ;;  %6453 = vst [vmem:[#allocation120_spill] sm:$0xff] %v4613_v30  ;;  %v3264_v30 = vld [vmem:[%s3524_s26 + $0xa8] sm:$0xff] }
 0x240   : > { %1864 = vperm.xlu1 %3240, %v3260_v39   ;;  %1876 = vperm.xlu0 %3241, %v3261_v37   ;;  %v3265_v39 = vld [vmem:[%s3524_s26 + $0xc0] sm:$0xff] }
 0x242   : > { %v4617_v35 = vpop.permute.xlu1 %1556  ;;  %v4619_v16 = vpop.permute.xlu0 %1560 }
 0x243   : > { %6454 = vst [vmem:[#allocation125_spill] sm:$0xff] %v4617_v35  ;;  %6455 = vst [vmem:[#allocation124_spill] sm:$0xff] %v4619_v16  ;;  %v3266_v16 = vld [vmem:[%s3524_s26 + $0xb8] sm:$0xff] }
 0x244   : > { %1872 = vperm.xlu1 %3240, %v3262_v9   ;;  %1884 = vperm.xlu0 %3241, %v3263_v11   ;;  %v3267_v9 = vld [vmem:[%s3524_s26 + $0xd0] sm:$0xff] }
 0x246   : > { %v4623_v13 = vpop.permute.xlu1 %1564  ;;  %v4625_v18 = vpop.permute.xlu0 %1568 }
 0x247   : > { %6456 = vst [vmem:[#allocation129_spill] sm:$0xff] %v4623_v13  ;;  %6457 = vst [vmem:[#allocation128_spill] sm:$0xff] %v4625_v18  ;;  %v3268_v18 = vld [vmem:[%s3524_s26 + $0xc8] sm:$0xff] }
 0x248   : > { %1880 = vperm.xlu1 %3240, %v3264_v30   ;;  %1892 = vperm.xlu0 %3241, %v3265_v39   ;;  %v3269_v30 = vld [vmem:[%s3524_s26 + $0xe0] sm:$0xff] }
 0x24a   : > { %v4629_v37 = vpop.permute.xlu1 %1572  ;;  %v4631_v35 = vpop.permute.xlu0 %1576 }
 0x24b   : > { %6458 = vst [vmem:[#allocation132_spill] sm:$0xff] %v4629_v37  ;;  %6459 = vst [vmem:[#allocation183_spill] sm:$0xff] %v4631_v35  ;;  %v3270_v35 = vld [vmem:[%s3524_s26 + $0xd8] sm:$0xff] }
 0x24c   : > { %1888 = vperm.xlu1 %3240, %v3266_v16   ;;  %1900 = vperm.xlu0 %3241, %v3267_v9   ;;  %v3271_v16 = vld [vmem:[%s3524_s26 + $0xf0] sm:$0xff] }
 0x24e   : > { %v4635_v11 = vpop.permute.xlu1 %1580  ;;  %v4637_v13 = vpop.permute.xlu0 %1584 }
 0x24f   : > { %6460 = vst [vmem:[#allocation184_spill] sm:$0xff] %v4635_v11  ;;  %6461 = vst [vmem:[#allocation185_spill] sm:$0xff] %v4637_v13  ;;  %v3272_v13 = vld [vmem:[%s3524_s26 + $0xe8] sm:$0xff] }
 0x250   : > { %1896 = vperm.xlu1 %3240, %v3268_v18   ;;  %1908 = vperm.xlu0 %3241, %v3269_v30   ;;  %v3273_v18 = vld [vmem:[%s3524_s26 + $0x100] sm:$0xff] }
 0x252   : > { %v4641_v39 = vpop.permute.xlu1 %1588  ;;  %v4643_v37 = vpop.permute.xlu0 %1592 }
 0x253   : > { %6462 = vst [vmem:[#allocation186_spill] sm:$0xff] %v4641_v39  ;;  %6463 = vst [vmem:[#allocation187_spill] sm:$0xff] %v4643_v37  ;;  %v3274_v37 = vld [vmem:[%s3524_s26 + $0xf8] sm:$0xff] }
 0x254   : > { %1904 = vperm.xlu1 %3240, %v3270_v35   ;;  %1916 = vperm.xlu0 %3241, %v3271_v16   ;;  %v3275_v35 = vld [vmem:[%s3524_s26 + $0x110] sm:$0xff] }
 0x256   : > { %v4647_v9 = vpop.permute.xlu1 %1596  ;;  %v4649_v11 = vpop.permute.xlu0 %1600 }
 0x257   : > { %6464 = vst [vmem:[#allocation188_spill] sm:$0xff] %v4647_v9  ;;  %6465 = vst [vmem:[#allocation189_spill] sm:$0xff] %v4649_v11  ;;  %v3276_v11 = vld [vmem:[%s3524_s26 + $0x108] sm:$0xff] }
 0x258   : > { %1912 = vperm.xlu1 %3240, %v3272_v13   ;;  %1924 = vperm.xlu0 %3241, %v3273_v18   ;;  %v3277_v13 = vld [vmem:[%s3524_s26 + $0x120] sm:$0xff] }
 0x25a   : > { %v4653_v30 = vpop.permute.xlu1 %1604  ;;  %v4655_v39 = vpop.permute.xlu0 %1608 }
 0x25b   : > { %6466 = vst [vmem:[#allocation190_spill] sm:$0xff] %v4653_v30  ;;  %6467 = vst [vmem:[#allocation191_spill] sm:$0xff] %v4655_v39  ;;  %v3278_v39 = vld [vmem:[%s3524_s26 + $0x118] sm:$0xff] }
 0x25c   : > { %1920 = vperm.xlu1 %3240, %v3274_v37   ;;  %1932 = vperm.xlu0 %3241, %v3275_v35   ;;  %v3279_v37 = vld [vmem:[%s3524_s26 + $0x130] sm:$0xff] }
 0x25e   : > { %v4659_v16 = vpop.permute.xlu1 %1612  ;;  %v4661_v9 = vpop.permute.xlu0 %1616 }
 0x25f   : > { %6468 = vst [vmem:[#allocation192_spill] sm:$0xff] %v4659_v16  ;;  %6469 = vst [vmem:[#allocation193_spill] sm:$0xff] %v4661_v9  ;;  %v3280_v9 = vld [vmem:[%s3524_s26 + $0x128] sm:$0xff] }
 0x260   : > { %1928 = vperm.xlu1 %3240, %v3276_v11   ;;  %1940 = vperm.xlu0 %3241, %v3277_v13   ;;  %v3281_v11 = vld [vmem:[%s3524_s26 + $0x140] sm:$0xff] }
 0x262   : > { %v4665_v18 = vpop.permute.xlu1 %1620  ;;  %v4667_v30 = vpop.permute.xlu0 %1624 }
 0x263   : > { %6470 = vst [vmem:[#allocation194_spill] sm:$0xff] %v4665_v18  ;;  %6471 = vst [vmem:[#allocation195_spill] sm:$0xff] %v4667_v30  ;;  %v3282_v30 = vld [vmem:[%s3524_s26 + $0x138] sm:$0xff] }
 0x264   : > { %1936 = vperm.xlu1 %3240, %v3278_v39   ;;  %1948 = vperm.xlu0 %3241, %v3279_v37   ;;  %v3283_v39 = vld [vmem:[%s3524_s26 + $0x150] sm:$0xff] }
 0x266   : > { %v4671_v35 = vpop.permute.xlu1 %1628  ;;  %v4673_v16 = vpop.permute.xlu0 %1632 }
 0x267   : > { %6472 = vst [vmem:[#allocation196_spill] sm:$0xff] %v4671_v35  ;;  %6473 = vst [vmem:[#allocation197_spill] sm:$0xff] %v4673_v16  ;;  %v3284_v16 = vld [vmem:[%s3524_s26 + $0x148] sm:$0xff] }
 0x268   : > { %1944 = vperm.xlu1 %3240, %v3280_v9   ;;  %1956 = vperm.xlu0 %3241, %v3281_v11   ;;  %v3285_v9 = vld [vmem:[%s3524_s26 + $0x160] sm:$0xff] }
 0x26a   : > { %v4677_v13 = vpop.permute.xlu1 %1636  ;;  %v4679_v18 = vpop.permute.xlu0 %1640 }
 0x26b   : > { %6474 = vst [vmem:[#allocation198_spill] sm:$0xff] %v4677_v13  ;;  %6475 = vst [vmem:[#allocation199_spill] sm:$0xff] %v4679_v18  ;;  %v3286_v18 = vld [vmem:[%s3524_s26 + $0x158] sm:$0xff] }
 0x26c   : > { %1952 = vperm.xlu1 %3240, %v3282_v30   ;;  %1964 = vperm.xlu0 %3241, %v3283_v39   ;;  %v3287_v30 = vld [vmem:[%s3524_s26 + $0x170] sm:$0xff] }
 0x26e   : > { %v4683_v37 = vpop.permute.xlu1 %1644  ;;  %v4685_v35 = vpop.permute.xlu0 %1648 }
 0x26f   : > { %6476 = vst [vmem:[#allocation200_spill] sm:$0xff] %v4683_v37  ;;  %6477 = vst [vmem:[#allocation201_spill] sm:$0xff] %v4685_v35  ;;  %v3288_v35 = vld [vmem:[%s3524_s26 + $0x168] sm:$0xff] }
 0x270   : > { %1960 = vperm.xlu1 %3240, %v3284_v16   ;;  %1972 = vperm.xlu0 %3241, %v3285_v9   ;;  %v3289_v16 = vld [vmem:[%s3524_s26 + $0x180] sm:$0xff] }
 0x272   : > { %v4689_v11 = vpop.permute.xlu1 %1652  ;;  %v4691_v13 = vpop.permute.xlu0 %1656 }
 0x273   : > { %6478 = vst [vmem:[#allocation202_spill] sm:$0xff] %v4689_v11  ;;  %6479 = vst [vmem:[#allocation203_spill] sm:$0xff] %v4691_v13  ;;  %v3290_v13 = vld [vmem:[%s3524_s26 + $0x178] sm:$0xff] }
 0x274   : > { %1968 = vperm.xlu1 %3240, %v3286_v18   ;;  %1980 = vperm.xlu0 %3241, %v3287_v30   ;;  %v3291_v18 = vld [vmem:[%s3524_s26 + $0x190] sm:$0xff] }
 0x276   : > { %v4695_v39 = vpop.permute.xlu1 %1660  ;;  %v4697_v37 = vpop.permute.xlu0 %1664 }
 0x277   : > { %6480 = vst [vmem:[#allocation204_spill] sm:$0xff] %v4695_v39  ;;  %6481 = vst [vmem:[#allocation205_spill] sm:$0xff] %v4697_v37  ;;  %v3292_v37 = vld [vmem:[%s3524_s26 + $0x188] sm:$0xff] }
 0x278   : > { %1976 = vperm.xlu1 %3240, %v3288_v35   ;;  %1988 = vperm.xlu0 %3241, %v3289_v16   ;;  %v3293_v35 = vld [vmem:[%s3524_s26 + $0x1a0] sm:$0xff] }
 0x27a   : > { %v4701_v9 = vpop.permute.xlu1 %1668  ;;  %v4703_v11 = vpop.permute.xlu0 %1672 }
 0x27b   : > { %6482 = vst [vmem:[#allocation206_spill] sm:$0xff] %v4701_v9  ;;  %6483 = vst [vmem:[#allocation207_spill] sm:$0xff] %v4703_v11  ;;  %v3294_v11 = vld [vmem:[%s3524_s26 + $0x198] sm:$0xff] }
 0x27c   : > { %1984 = vperm.xlu1 %3240, %v3290_v13   ;;  %1996 = vperm.xlu0 %3241, %v3291_v18   ;;  %v3295_v13 = vld [vmem:[%s3524_s26 + $0x1b0] sm:$0xff] }
 0x27e   : > { %v4707_v30 = vpop.permute.xlu1 %1676  ;;  %v4709_v39 = vpop.permute.xlu0 %1680 }
 0x27f   : > { %6484 = vst [vmem:[#allocation208_spill] sm:$0xff] %v4707_v30  ;;  %6485 = vst [vmem:[#allocation209_spill] sm:$0xff] %v4709_v39  ;;  %v3296_v39 = vld [vmem:[%s3524_s26 + $0x1a8] sm:$0xff] }
 0x280   : > { %1992 = vperm.xlu1 %3240, %v3292_v37   ;;  %2004 = vperm.xlu0 %3241, %v3293_v35   ;;  %v3297_v37 = vld [vmem:[%s3524_s26 + $0x1c0] sm:$0xff] }
 0x282   : > { %v4713_v16 = vpop.permute.xlu1 %1684  ;;  %v4715_v9 = vpop.permute.xlu0 %1688 }
 0x283   : > { %6486 = vst [vmem:[#allocation210_spill] sm:$0xff] %v4713_v16  ;;  %6487 = vst [vmem:[#allocation211_spill] sm:$0xff] %v4715_v9  ;;  %v3298_v9 = vld [vmem:[%s3524_s26 + $0x1b8] sm:$0xff] }
 0x284   : > { %2000 = vperm.xlu1 %3240, %v3294_v11   ;;  %2012 = vperm.xlu0 %3241, %v3295_v13   ;;  %v3299_v11 = vld [vmem:[%s3524_s26 + $0x1d0] sm:$0xff] }
 0x286   : > { %v4719_v18 = vpop.permute.xlu1 %1692  ;;  %v4721_v30 = vpop.permute.xlu0 %1696 }
 0x287   : > { %6488 = vst [vmem:[#allocation212_spill] sm:$0xff] %v4719_v18  ;;  %6489 = vst [vmem:[#allocation213_spill] sm:$0xff] %v4721_v30  ;;  %v3300_v30 = vld [vmem:[%s3524_s26 + $0x1c8] sm:$0xff] }
 0x288   : > { %2008 = vperm.xlu1 %3240, %v3296_v39   ;;  %2020 = vperm.xlu0 %3241, %v3297_v37   ;;  %v3301_v39 = vld [vmem:[%s3524_s26 + $0x1e0] sm:$0xff] }
 0x28a   : > { %v4725_v35 = vpop.permute.xlu1 %1700  ;;  %v4727_v16 = vpop.permute.xlu0 %1704 }
 0x28b   : > { %6490 = vst [vmem:[#allocation214_spill] sm:$0xff] %v4725_v35  ;;  %6491 = vst [vmem:[#allocation215_spill] sm:$0xff] %v4727_v16  ;;  %v3302_v16 = vld [vmem:[%s3524_s26 + $0x1d8] sm:$0xff] }
 0x28c   : > { %2016 = vperm.xlu1 %3240, %v3298_v9   ;;  %2028 = vperm.xlu0 %3241, %v3299_v11   ;;  %v3303_v9 = vld [vmem:[%s3524_s26 + $0x1f0] sm:$0xff] }
 0x28e   : > { %v4731_v13 = vpop.permute.xlu1 %1708  ;;  %v4733_v18 = vpop.permute.xlu0 %1712 }
 0x28f   : > { %6492 = vst [vmem:[#allocation216_spill] sm:$0xff] %v4731_v13  ;;  %6493 = vst [vmem:[#allocation217_spill] sm:$0xff] %v4733_v18  ;;  %v3304_v18 = vld [vmem:[%s3524_s26 + $0x1e8] sm:$0xff] }
 0x290   : > { %2024 = vperm.xlu1 %3240, %v3300_v30   ;;  %2036 = vperm.xlu0 %3241, %v3301_v39   ;;  %v3305_v30 = vld [vmem:[%s3785_s29] sm:$0xff] }
 0x292   : > { %v4737_v37 = vpop.permute.xlu1 %1716  ;;  %v4739_v35 = vpop.permute.xlu0 %1720 }
 0x293   : > { %6494 = vst [vmem:[#allocation218_spill] sm:$0xff] %v4737_v37  ;;  %6495 = vst [vmem:[#allocation219_spill] sm:$0xff] %v4739_v35  ;;  %v3306_v35 = vld [vmem:[%s3524_s26 + $0x1f8] sm:$0xff] }
 0x294   : > { %2032 = vperm.xlu1 %3240, %v3302_v16   ;;  %2044 = vperm.xlu0 %3241, %v3303_v9   ;;  %v3307_v16 = vld [vmem:[%s3785_s29 + $0x10] sm:$0xff] }
 0x296   : > { %v4743_v11 = vpop.permute.xlu1 %1724  ;;  %v4745_v13 = vpop.permute.xlu0 %1728 }
 0x297   : > { %6496 = vst [vmem:[#allocation220_spill] sm:$0xff] %v4743_v11  ;;  %6497 = vst [vmem:[#allocation221_spill] sm:$0xff] %v4745_v13  ;;  %v3308_v13 = vld [vmem:[%s3785_s29 + $0x8] sm:$0xff] }
 0x298   : > { %2040 = vperm.xlu1 %3240, %v3304_v18   ;;  %2116 = vperm.xlu0 %3241, %v3305_v30   ;;  %v3309_v18 = vld [vmem:[%s3785_s29 + $0x20] sm:$0xff] }
 0x29b   : > { %v4749_v39 = vpop.permute.xlu1 %1796  ;;  %v4751_v37 = vpop.permute.xlu0 %1800 }
 0x29c   : > { %2048 = vperm.xlu1 %3240, %v3306_v35   ;;  %2124 = vperm.xlu0 %3241, %v3307_v16   ;;  %v3311_v35 = vld [vmem:[%s3785_s29 + $0x30] sm:$0xff] }
 0x29f   : > { %v4755_v9 = vpop.permute.xlu1 %1804  ;;  %v4757_v11 = vpop.permute.xlu0 %1812 }
 0x2a0   : > { %2120 = vperm.xlu1 %3240, %v3308_v13   ;;  %2132 = vperm.xlu0 %3241, %v3309_v18   ;;  %v3313_v13 = vld [vmem:[%s3785_s29 + $0x40] sm:$0xff] }
 0x2a3   : > { %v4761_v30 = vpop.permute.xlu1 %1808  ;;  %v4763_v32 = vpop.permute.xlu0 %1820 }
 0x2a4   : > { %2128 = vperm.xlu1 %3240, %v3310_v41   ;;  %2140 = vperm.xlu0 %3241, %v3311_v35   ;;  %v3315_v41 = vld [vmem:[%s3785_s29 + $0x50] sm:$0xff] }
 0x2a7   : > { %v4767_v16 = vpop.permute.xlu1 %1816  ;;  %v4769_v14 = vpop.permute.xlu0 %1828 }
 0x2a8   : > { %2136 = vperm.xlu1 %3240, %v3312_v7   ;;  %2148 = vperm.xlu0 %3241, %v3313_v13   ;;  %v3317_v7 = vld [vmem:[%s3785_s29 + $0x60] sm:$0xff] }
 0x2ab   : > { %v4773_v18 = vpop.permute.xlu1 %1824  ;;  %v4775_v15 = vpop.permute.xlu0 %1836 }
 0x2ac   : > { %2144 = vperm.xlu1 %3240, %v3314_v28   ;;  %2156 = vperm.xlu0 %3241, %v3315_v41   ;;  %v3319_v28 = vld [vmem:[%s3785_s29 + $0x70] sm:$0xff] }
 0x2af   : > { %v4779_v35 = vpop.permute.xlu1 %1832  ;;  %v4781_v34 = vpop.permute.xlu0 %1844 }
 0x2b0   : > { %2152 = vperm.xlu1 %3240, %v3316_v52   ;;  %2164 = vperm.xlu0 %3241, %v3317_v7   ;;  %v3321_v52 = vld [vmem:[%s3785_s29 + $0x80] sm:$0xff] }
 0x2b3   : > { %v4785_v13 = vpop.permute.xlu1 %1840  ;;  %v4787_v12 = vpop.permute.xlu0 %1852 }
 0x2b4   : > { %2160 = vperm.xlu1 %3240, %v3318_v5   ;;  %2172 = vperm.xlu0 %3241, %v3319_v28   ;;  %v3323_v5 = vld [vmem:[%s3785_s29 + $0x90] sm:$0xff] }
 0x2b7   : > { %v4791_v41 = vpop.permute.xlu1 %1848  ;;  %v4793_v29 = vpop.permute.xlu0 %1860 }
 0x2b8   : > { %6498 = vst [vmem:[#allocation222_spill] sm:$0xff] %v4791_v41  ;;  %6499 = vst [vmem:[#allocation223_spill] sm:$0xff] %v4793_v29  ;;  %2168 = vperm.xlu1 %3240, %v3320_v20   ;;  %2180 = vperm.xlu0 %3241, %v3321_v52   ;;  %v3324_v29 = vld [vmem:[%s3785_s29 + $0x88] sm:$0xff]  ;;  %v3325_v20 = vld [vmem:[%s3785_s29 + $0xa0] sm:$0xff] }
 0x2bb   : > { %v4797_v7 = vpop.permute.xlu1 %1856  ;;  %v4799_v36 = vpop.permute.xlu0 %1868 }
 0x2bc   : > { %6500 = vst [vmem:[#allocation224_spill] sm:$0xff] %v4797_v7  ;;  %6501 = vst [vmem:[#allocation225_spill] sm:$0xff] %v4799_v36  ;;  %2176 = vperm.xlu1 %3240, %v3322_v50   ;;  %2188 = vperm.xlu0 %3241, %v3323_v5   ;;  %v3326_v36 = vld [vmem:[%s3785_s29 + $0x98] sm:$0xff]  ;;  %v3327_v50 = vld [vmem:[%s3785_s29 + $0xb0] sm:$0xff] }
 0x2bf   : > { %v4803_v28 = vpop.permute.xlu1 %1864  ;;  %v4805_v41 = vpop.permute.xlu0 %1876 }
 0x2c0   : > { %6502 = vst [vmem:[#allocation226_spill] sm:$0xff] %v4803_v28  ;;  %6503 = vst [vmem:[#allocation227_spill] sm:$0xff] %v4805_v41  ;;  %2184 = vperm.xlu1 %3240, %v3324_v29   ;;  %2196 = vperm.xlu0 %3241, %v3325_v20   ;;  %v3328_v41 = vld [vmem:[%s3785_s29 + $0xa8] sm:$0xff]  ;;  %v3329_v29 = vld [vmem:[%s3785_s29 + $0xc0] sm:$0xff] }
 0x2c3   : > { %v4809_v52 = vpop.permute.xlu1 %1872  ;;  %v4811_v7 = vpop.permute.xlu0 %1884 }
 0x2c4   : > { %6504 = vst [vmem:[#allocation228_spill] sm:$0xff] %v4809_v52  ;;  %6505 = vst [vmem:[#allocation229_spill] sm:$0xff] %v4811_v7  ;;  %2192 = vperm.xlu1 %3240, %v3326_v36   ;;  %2204 = vperm.xlu0 %3241, %v3327_v50   ;;  %v3330_v7 = vld [vmem:[%s3785_s29 + $0xb8] sm:$0xff]  ;;  %v3331_v36 = vld [vmem:[%s3785_s29 + $0xd0] sm:$0xff] }
 0x2c7   : > { %v4815_v5 = vpop.permute.xlu1 %1880  ;;  %v4817_v28 = vpop.permute.xlu0 %1892 }
 0x2c8   : > { %6506 = vst [vmem:[#allocation230_spill] sm:$0xff] %v4815_v5  ;;  %6507 = vst [vmem:[#allocation231_spill] sm:$0xff] %v4817_v28  ;;  %2200 = vperm.xlu1 %3240, %v3328_v41   ;;  %2212 = vperm.xlu0 %3241, %v3329_v29   ;;  %v3332_v28 = vld [vmem:[%s3785_s29 + $0xc8] sm:$0xff]  ;;  %v3333_v41 = vld [vmem:[%s3785_s29 + $0xe0] sm:$0xff] }
 0x2cb   : > { %v4821_v20 = vpop.permute.xlu1 %1888  ;;  %v4823_v52 = vpop.permute.xlu0 %1900 }
 0x2cc   : > { %6508 = vst [vmem:[#allocation232_spill] sm:$0xff] %v4821_v20  ;;  %6509 = vst [vmem:[#allocation233_spill] sm:$0xff] %v4823_v52  ;;  %2208 = vperm.xlu1 %3240, %v3330_v7   ;;  %2220 = vperm.xlu0 %3241, %v3331_v36   ;;  %v3334_v52 = vld [vmem:[%s3785_s29 + $0xd8] sm:$0xff]  ;;  %v3335_v7 = vld [vmem:[%s3785_s29 + $0xf0] sm:$0xff] }
 0x2cf   : > { %v4827_v50 = vpop.permute.xlu1 %1896  ;;  %v4829_v5 = vpop.permute.xlu0 %1908 }
 0x2d0   : > { %6510 = vst [vmem:[#allocation234_spill] sm:$0xff] %v4827_v50  ;;  %6511 = vst [vmem:[#allocation235_spill] sm:$0xff] %v4829_v5  ;;  %2216 = vperm.xlu1 %3240, %v3332_v28   ;;  %2228 = vperm.xlu0 %3241, %v3333_v41   ;;  %v3336_v5 = vld [vmem:[%s3785_s29 + $0xe8] sm:$0xff]  ;;  %v3337_v28 = vld [vmem:[%s3785_s29 + $0x100] sm:$0xff] }
 0x2d3   : > { %v4833_v29 = vpop.permute.xlu1 %1904  ;;  %v4835_v20 = vpop.permute.xlu0 %1916 }
 0x2d4   : > { %6512 = vst [vmem:[#allocation236_spill] sm:$0xff] %v4833_v29  ;;  %6513 = vst [vmem:[#allocation237_spill] sm:$0xff] %v4835_v20  ;;  %2224 = vperm.xlu1 %3240, %v3334_v52   ;;  %2236 = vperm.xlu0 %3241, %v3335_v7   ;;  %v3338_v20 = vld [vmem:[%s3785_s29 + $0xf8] sm:$0xff]  ;;  %v3339_v52 = vld [vmem:[%s3785_s29 + $0x110] sm:$0xff] }
 0x2d7   : > { %v4839_v36 = vpop.permute.xlu1 %1912  ;;  %v4841_v50 = vpop.permute.xlu0 %1924 }
 0x2d8   : > { %6514 = vst [vmem:[#allocation238_spill] sm:$0xff] %v4839_v36  ;;  %6515 = vst [vmem:[#allocation239_spill] sm:$0xff] %v4841_v50  ;;  %2232 = vperm.xlu1 %3240, %v3336_v5   ;;  %2244 = vperm.xlu0 %3241, %v3337_v28   ;;  %v3340_v50 = vld [vmem:[%s3785_s29 + $0x108] sm:$0xff]  ;;  %v3341_v5 = vld [vmem:[%s3785_s29 + $0x120] sm:$0xff] }
 0x2db   : > { %v4845_v41 = vpop.permute.xlu1 %1920  ;;  %v4847_v29 = vpop.permute.xlu0 %1932 }
 0x2dc   : > { %6516 = vst [vmem:[#allocation240_spill] sm:$0xff] %v4845_v41  ;;  %6517 = vst [vmem:[#allocation241_spill] sm:$0xff] %v4847_v29  ;;  %2240 = vperm.xlu1 %3240, %v3338_v20   ;;  %2252 = vperm.xlu0 %3241, %v3339_v52   ;;  %v3342_v29 = vld [vmem:[%s3785_s29 + $0x118] sm:$0xff]  ;;  %v3343_v20 = vld [vmem:[%s3785_s29 + $0x130] sm:$0xff] }
 0x2df   : > { %v4851_v7 = vpop.permute.xlu1 %1928  ;;  %v4853_v36 = vpop.permute.xlu0 %1940 }
 0x2e0   : > { %6518 = vst [vmem:[#allocation242_spill] sm:$0xff] %v4851_v7  ;;  %6519 = vst [vmem:[#allocation243_spill] sm:$0xff] %v4853_v36  ;;  %2248 = vperm.xlu1 %3240, %v3340_v50   ;;  %2260 = vperm.xlu0 %3241, %v3341_v5   ;;  %v3344_v36 = vld [vmem:[%s3785_s29 + $0x128] sm:$0xff]  ;;  %v3345_v50 = vld [vmem:[%s3785_s29 + $0x140] sm:$0xff] }
 0x2e3   : > { %v4857_v28 = vpop.permute.xlu1 %1936  ;;  %v4859_v41 = vpop.permute.xlu0 %1948 }
 0x2e4   : > { %6520 = vst [vmem:[#allocation244_spill] sm:$0xff] %v4857_v28  ;;  %6521 = vst [vmem:[#allocation245_spill] sm:$0xff] %v4859_v41  ;;  %2256 = vperm.xlu1 %3240, %v3342_v29   ;;  %2268 = vperm.xlu0 %3241, %v3343_v20   ;;  %v3346_v41 = vld [vmem:[%s3785_s29 + $0x138] sm:$0xff]  ;;  %v3347_v29 = vld [vmem:[%s3785_s29 + $0x150] sm:$0xff] }
 0x2e7   : > { %v4863_v52 = vpop.permute.xlu1 %1944  ;;  %v4865_v7 = vpop.permute.xlu0 %1956 }
 0x2e8   : > { %6522 = vst [vmem:[#allocation246_spill] sm:$0xff] %v4863_v52  ;;  %6523 = vst [vmem:[#allocation247_spill] sm:$0xff] %v4865_v7  ;;  %2264 = vperm.xlu1 %3240, %v3344_v36   ;;  %2276 = vperm.xlu0 %3241, %v3345_v50   ;;  %v3348_v7 = vld [vmem:[%s3785_s29 + $0x148] sm:$0xff]  ;;  %v3349_v36 = vld [vmem:[%s3785_s29 + $0x160] sm:$0xff]  ;;  %v234_v50 = vlaneseq }
 0x2eb   : > { %v4869_v5 = vpop.permute.xlu1 %1952  ;;  %v4871_v28 = vpop.permute.xlu0 %1964 }
 0x2ec   : > { %6524 = vst [vmem:[#allocation248_spill] sm:$0xff] %v4869_v5  ;;  %6525 = vst [vmem:[#allocation249_spill] sm:$0xff] %v4871_v28  ;;  %2272 = vperm.xlu1 %3240, %v3346_v41   ;;  %2284 = vperm.xlu0 %3241, %v3347_v29   ;;  %v3350_v5 = vld [vmem:[%s3785_s29 + $0x158] sm:$0xff]  ;;  %v3351_v41 = vld [vmem:[%s3785_s29 + $0x170] sm:$0xff]  ;;  %v235_v29 = vand.u32 127, %v234_v50 }
 0x2ed   : > { %v3354_v50 = vld [vmem:[%s3785_s29 + $0x178] sm:$0xff] }
 0x2ef   : > { %v4875_v20 = vpop.permute.xlu1 %1960  ;;  %v4877_v52 = vpop.permute.xlu0 %1972 }
 0x2f0   : > { %6526 = vst [vmem:[#allocation250_spill] sm:$0xff] %v4875_v20  ;;  %6527 = vst [vmem:[#allocation251_spill] sm:$0xff] %v4877_v52  ;;  %2280 = vperm.xlu1 %3240, %v3348_v7   ;;  %2292 = vperm.xlu0 %3241, %v3349_v36   ;;  %v3352_v7 = vld [vmem:[%s3785_s29 + $0x168] sm:$0xff]  ;;  %v3353_v36 = vld [vmem:[%s3785_s29 + $0x180] sm:$0xff] }
 0x2f3   : > { %v4881_v10 = vpop.permute.xlu1 %1968  ;;  %v4883_v28 = vpop.permute.xlu0 %1980 }
 0x2f4   : > { %6528 = vst [vmem:[#allocation252_spill] sm:$0xff] %v4881_v10  ;;  %6529 = vst [vmem:[#allocation253_spill] sm:$0xff] %v4883_v28  ;;  %2288 = vperm.xlu1 %3240, %v3350_v5   ;;  %2300 = vperm.xlu0 %3241, %v3351_v41   ;;  %v4893_v10 = vmul.u32.u64.low 2863311531, %v235_v29  ;;  %v4894_v3 = vmul.u32.u64.high 2863311531, %v235_v29, %v4893_v10  ;;  %v3355_v41 = vld [vmem:[%s3785_s29 + $0x190] sm:$0xff] }
 0x2f6   : > { %v242_v10 = vshrl.u32 %v4894_v3, 1  ;;  %v3361_v3 = vld [vmem:[%s3785_s29 + $0x1c0] sm:$0xff] }
 0x2f7   : > { %v4887_v20 = vpop.permute.xlu1 %1976  ;;  %v4889_v52 = vpop.permute.xlu0 %1988 }
 0x2f8   : > { %6530 = vst [vmem:[#allocation254_spill] sm:$0xff] %v4887_v20  ;;  %6531 = vst [vmem:[#allocation255_spill] sm:$0xff] %v4889_v52  ;;  %2296 = vperm.xlu1 %3240, %v3352_v7   ;;  %2308 = vperm.xlu0 %3241, %v3353_v36   ;;  %v3356_v7 = vld [vmem:[%s3785_s29 + $0x188] sm:$0xff]  ;;  %v3357_v36 = vld [vmem:[%s3785_s29 + $0x1a0] sm:$0xff] }
 0x2fb   : > { %v4896_v28 = vpop.permute.xlu1 %1984  ;;  %v4898_v5 = vpop.permute.xlu0 %1996 }
 0x2fc   : > { %6532 = vst [vmem:[#allocation256_spill] sm:$0xff] %v4896_v28  ;;  %6533 = vst [vmem:[#allocation257_spill] sm:$0xff] %v4898_v5  ;;  %2304 = vperm.xlu1 %3240, %v3354_v50   ;;  %2316 = vperm.xlu0 %3241, %v3355_v41   ;;  %v3358_v50 = vld [vmem:[%s3785_s29 + $0x198] sm:$0xff]  ;;  %v3359_v41 = vld [vmem:[%s3785_s29 + $0x1b0] sm:$0xff] }
 0x2ff   : > { %v4902_v20 = vpop.permute.xlu1 %1992  ;;  %v4904_v52 = vpop.permute.xlu0 %2004 }
 0x300   : > { %6534 = vst [vmem:[#allocation258_spill] sm:$0xff] %v4902_v20  ;;  %6535 = vst [vmem:[#allocation259_spill] sm:$0xff] %v4904_v52  ;;  %2312 = vperm.xlu1 %3240, %v3356_v7   ;;  %2324 = vperm.xlu0 %3241, %v3357_v36   ;;  %v243_v20 = vmul.u32 3, %v242_v10  ;;  %v3360_v7 = vld [vmem:[%s3785_s29 + $0x1a8] sm:$0xff]  ;;  %v3363_v10 = vld [vmem:[%s3785_s29 + $0x1d0] sm:$0xff] }
 0x302   : > { %v244_v36 = vsub.s32 %v235_v29, %v243_v20  ;;  %v3365_v20 = vld [vmem:[%s3785_s29 + $0x1e0] sm:$0xff] }
 0x303   : > { %v4909_v28 = vpop.permute.xlu1 %2000  ;;  %v4911_v5 = vpop.permute.xlu0 %2012 }
 0x304   : > { %6536 = vst [vmem:[#allocation260_spill] sm:$0xff] %v4909_v28  ;;  %6537 = vst [vmem:[#allocation261_spill] sm:$0xff] %v4911_v5  ;;  %2320 = vperm.xlu1 %3240, %v3358_v50   ;;  %2332 = vperm.xlu0 %3241, %v3359_v41   ;;  %vm247_vm0 = vcmp.ne.s32.totalorder %v244_v36, 0  ;;  %vm248_vm1 = vcmp.lt.s32.totalorder %v244_v36, 0  ;;  %v250_v29 = vadd.s32 3, %v244_v36 }
 0x305   : > { %vm249_vm2 = vmand %vm248_vm1, %vm247_vm0 }
 0x307   : > { %v4915_v24 = vpop.permute.xlu1 %2008  ;;  %v4917_v52 = vpop.permute.xlu0 %2020 }
 0x308   : > { %6538 = vst [vmem:[#allocation262_spill] sm:$0xff] %v4917_v52  ;;  %2328 = vperm.xlu1 %3240, %v3360_v7   ;;  %2340 = vperm.xlu0 %3241, %v3361_v3   ;;  %v3364_v7 = vld [vmem:[%s3785_s29 + $0x1c8] sm:$0xff]  ;;  %v6547_v52 = vld [vmem:[#allocation14_spill] sm:$0xff] }
 0x30b   : > { %v4921_v28 = vpop.permute.xlu1 %2016  ;;  %v4923_v5 = vpop.permute.xlu0 %2028 }
 0x30c   : > { %6539 = vst [vmem:[#allocation263_spill] sm:$0xff] %v4921_v28  ;;  %6540 = vst [vmem:[#allocation264_spill] sm:$0xff] %v4923_v5  ;;  %2336 = vperm.xlu1 %3240, %v3362_v26   ;;  %2348 = vperm.xlu0 %3241, %v3363_v10   ;;  %v3366_v26 = vld [vmem:[%s3785_s29 + $0x1d8] sm:$0xff]  ;;  %v3367_v10 = vld [vmem:[%s3785_s29 + $0x1f0] sm:$0xff]  ;;  %v4940_v28 = vsel %vm249_vm2, %v250_v29, %v244_v36 }
 0x30d   : > { %vm2436_vm3 = vcmp.eq.s32.totalorder %v4940_v28, 1  ;;  %vm2435_vm4 = vcmp.eq.s32.totalorder %v4940_v28, 0 }
 0x30f   : > { %v4927_v50 = vpop.permute.xlu1 %2024  ;;  %v4929_v41 = vpop.permute.xlu0 %2036 }
 0x310   : > { %6541 = vst [vmem:[#allocation265_spill] sm:$0xff] %v4927_v50  ;;  %6542 = vst [vmem:[#allocation266_spill] sm:$0xff] %v4929_v41  ;;  %2344 = vperm.xlu1 %3240, %v3364_v7   ;;  %2356 = vperm.xlu0 %3241, %v3365_v20   ;;  %v4945_v7 = vld [vmem:[%s6064_s0] ss:$0 sm:$0xff]  ;;  %v3368_v50 = vld [vmem:[%s3785_s29 + $0x1e8] sm:$0xff] }
 0x311   : > { %v1411_v20 = vmul.f32 %v4945_v7, %v4367_v53 }
 0x313   : > { %v4933_v3 = vpop.permute.xlu1 %2032  ;;  %v4935_v5 = vpop.permute.xlu0 %2044  ;;  %v1731_v29 = vadd.f32 %v4557_v25, %v1411_v20  ;;  %v709_v25 = vmul.f32 %v4945_v7, %v6547_v52  ;;  %v1412_v52 = vmul.f32 %v4945_v7, %v4365_v54 }
 0x314   : > { %6543 = vst [vmem:[#allocation267_spill] sm:$0xff] %v4933_v3  ;;  %6544 = vst [vmem:[#allocation268_spill] sm:$0xff] %v4935_v5  ;;  %2352 = vperm.xlu1 %3240, %v3366_v26   ;;  %2364 = vperm.xlu0 %3241, %v3367_v10   ;;  %v2051_v3 = vmul.f32 %v4945_v7, %v4749_v39  ;;  %v6545_v5 = vld [vmem:[#allocation15_spill] sm:$0xff]  ;;  %v1413_v39 = vmul.f32 %v4945_v7, %v4371_v56 }
 0x315   : > { %v707_v41 = vmul.f32 %v4945_v7, %v6545_v5  ;;  %v2053_v5 = vmul.f32 %v4945_v7, %v4755_v9  ;;  %v3369_v9 = vld [vmem:[%s3785_s29 + $0x1f8] sm:$0xff] }
 0x317   : > { %v4953_v26 = vpop.permute.xlu1 %2040  ;;  %v2117_v36 = vpop.permute.xlu0 %2116  ;;  %v1091_v53 = vadd.f32 %v4175_v55, %v707_v41  ;;  %v1733_v55 = vadd.f32 %v4563_v17, %v1413_v39  ;;  %v1093_v41 = vadd.f32 %v4181_v0, %v709_v25  ;;  %v2052_v17 = vmul.f32 %v4945_v7, %v4751_v37  ;;  %v6549_v39 = vld [vmem:[#allocation23_spill] sm:$0xff] }
 0x318   : > { %6546 = vst [vmem:[#allocation15_spill] sm:$0xff] %v4953_v26  ;;  %v2371_v10 = vadd.f32 %v2117_v36, %v2051_v3  ;;  %2360 = vperm.xlu1 %3240, %v3368_v50   ;;  %v2055_v36 = vmul.f32 %v4945_v7, %v4757_v11  ;;  %v711_v0 = vmul.f32 %v4945_v7, %v6549_v39 }
 0x319   : > { %v1732_v25 = vadd.f32 %v4559_v22, %v1412_v52  ;;  %v2054_v22 = vmul.f32 %v4945_v7, %v4761_v30 }
 0x31a   : > { %v2439_v26 = vsel %vm2436_vm3, %v1731_v29, %v2371_v10  ;;  %v6548_v10 = vld [vmem:[#allocation19_spill] sm:$0xff] }
 0x31b   : > { %v2505_v3 = vsel %vm2435_vm4, %v1091_v53, %v2439_v26  ;;  %v4970_v20 = vpop.permute.xlu1 %2048  ;;  %v2125_v50 = vpop.permute.xlu0 %2124  ;;  %v1415_v26 = vmul.f32 %v4945_v7, %v4377_v51  ;;  %v708_v53 = vmul.f32 %v4945_v7, %v6548_v10 }
 0x31c   : > { %2570 = vst.msk [vmem:[%s4973_s7] sm:$0xff] %vm2569_vm5, %v2505_v3  ;;  %v2373_v56 = vadd.f32 %v2125_v50, %v2053_v5  ;;  %2368 = vperm.xlu1 %3240, %v3369_v9   ;;  %v6550_v50 = vld [vmem:[#allocation137_spill] sm:$0xff]  ;;  %v1414_v9 = vmul.f32 %v4945_v7, %v4373_v49 }
 0x31d   : > { %v1735_v37 = vadd.f32 %v4569_v21, %v1415_v26  ;;  %v2057_v21 = vmul.f32 %v4945_v7, %v4763_v32 }
 0x31e   : > { %v2441_v29 = vsel %vm2436_vm3, %v1733_v55, %v2373_v56  ;;  %v1092_v55 = vadd.f32 %v6550_v50, %v708_v53  ;;  %v1095_v56 = vadd.f32 %v4187_v58, %v711_v0  ;;  %v6551_v58 = vld [vmem:[#allocation18_spill] sm:$0xff]  ;;  %v1734_v10 = vadd.f32 %v4565_v63, %v1414_v9 }
 0x31f   : > { %v2507_v54 = vsel %vm2435_vm4, %v1093_v41, %v2441_v29  ;;  %v2121_v5 = vpop.permute.xlu1 %2120  ;;  %v2133_v51 = vpop.permute.xlu0 %2132  ;;  %v1417_v41 = vmul.f32 %v4945_v7, %v4383_v46  ;;  %v1419_v63 = vmul.f32 %v4945_v7, %v4389_v44 }
 0x320   : > { %2572 = vst.msk [vmem:[%s4973_s7 + $0x10] sm:$0xff] %vm2569_vm5, %v2507_v54  ;;  %v2372_v11 = vadd.f32 %v2121_v5, %v2052_v17  ;;  %v2375_v3 = vadd.f32 %v2133_v51, %v2055_v36  ;;  %v710_v17 = vmul.f32 %v4945_v7, %v6551_v58  ;;  %v6552_v36 = vld [vmem:[#allocation27_spill] sm:$0xff]  ;;  %v1416_v51 = vmul.f32 %v4945_v7, %v4379_v45 }
 0x321   : > { %v713_v49 = vmul.f32 %v4945_v7, %v6552_v36  ;;  %v1737_v53 = vadd.f32 %v4575_v23, %v1417_v41  ;;  %v2056_v23 = vmul.f32 %v4945_v7, %v4767_v16  ;;  %v6556_v36 = vld [vmem:[#allocation35_spill] sm:$0xff] }
 0x322   : > { %v2440_v52 = vsel %vm2436_vm3, %v1732_v25, %v2372_v11  ;;  %v2443_v26 = vsel %vm2436_vm3, %v1735_v37, %v2375_v3  ;;  %v1094_v54 = vadd.f32 %v4179_v59, %v710_v17  ;;  %v2059_v25 = vmul.f32 %v4945_v7, %v4769_v14  ;;  %v6554_v3 = vld [vmem:[#allocation31_spill] sm:$0xff] }
 0x323   : > { %v2506_v46 = vsel %vm2435_vm4, %v1092_v55, %v2440_v52  ;;  %v2509_v30 = vsel %vm2435_vm4, %v1095_v56, %v2443_v26  ;;  %v2129_v29 = vpop.permute.xlu1 %2128  ;;  %v2141_v32 = vpop.permute.xlu0 %2140  ;;  %v1097_v5 = vadd.f32 %v4193_v4, %v713_v49  ;;  %v6553_v4 = vld [vmem:[#allocation22_spill] sm:$0xff]  ;;  %v715_v45 = vmul.f32 %v4945_v7, %v6554_v3 }
 0x324   : > { %2571 = vst.msk [vmem:[%s4973_s7 + $0x8] sm:$0xff] %vm2569_vm5, %v2506_v46  ;;  %2574 = vst.msk [vmem:[%s4973_s7 + $0x20] sm:$0xff] %vm2569_vm5, %v2509_v30  ;;  %v2374_v39 = vadd.f32 %v2129_v29, %v2054_v22  ;;  %v2377_v0 = vadd.f32 %v2141_v32, %v2057_v21  ;;  %v712_v11 = vmul.f32 %v4945_v7, %v6553_v4 }
 0x325   : > { %v1736_v55 = vadd.f32 %v4571_v19, %v1416_v51  ;;  %v1739_v56 = vadd.f32 %v4581_v33, %v1419_v63  ;;  %v1099_v21 = vadd.f32 %v4199_v1, %v715_v45  ;;  %v1418_v52 = vmul.f32 %v4945_v7, %v4385_v47  ;;  %v6555_v1 = vld [vmem:[#allocation26_spill] sm:$0xff]  ;;  %v6558_v51 = vld [vmem:[#allocation39_spill] sm:$0xff] }
 0x326   : > { %v2442_v37 = vsel %vm2436_vm3, %v1734_v10, %v2374_v39  ;;  %v2445_v59 = vsel %vm2436_vm3, %v1737_v53, %v2377_v0  ;;  %v1096_v22 = vadd.f32 %v4185_v57, %v712_v11  ;;  %v1421_v19 = vmul.f32 %v4945_v7, %v4395_v42 }
 0x327   : > { %v2508_v44 = vsel %vm2435_vm4, %v1094_v54, %v2442_v37  ;;  %v2511_v16 = vsel %vm2435_vm4, %v1097_v5, %v2445_v59  ;;  %v2137_v50 = vpop.permute.xlu1 %2136  ;;  %v2149_v14 = vpop.permute.xlu0 %2148  ;;  %v2058_v33 = vmul.f32 %v4945_v7, %v4773_v18  ;;  %v2061_v26 = vmul.f32 %v4945_v7, %v4775_v15 }
 0x328   : > { %2573 = vst.msk [vmem:[%s4973_s7 + $0x18] sm:$0xff] %vm2569_vm5, %v2508_v44  ;;  %2576 = vst.msk [vmem:[%s4973_s7 + $0x30] sm:$0xff] %vm2569_vm5, %v2511_v16  ;;  %v2376_v9 = vadd.f32 %v2137_v50, %v2056_v23  ;;  %v2379_v41 = vadd.f32 %v2149_v14, %v2059_v25  ;;  %v714_v17 = vmul.f32 %v4945_v7, %v6555_v1  ;;  %v6560_v50 = vld [vmem:[#allocation43_spill] sm:$0xff]  ;;  %v6566_v1 = vld [vmem:[#allocation13_spill] sm:$0xff] }
 0x329   : > { %v717_v47 = vmul.f32 %v4945_v7, %v6556_v36  ;;  %v1738_v46 = vadd.f32 %v4577_v27, %v1418_v52  ;;  %v1741_v30 = vadd.f32 %v4587_v60, %v1421_v19  ;;  %v1420_v39 = vmul.f32 %v4945_v7, %v4391_v43  ;;  %v6563_v52 = vld [vmem:[#allocation138_spill] sm:$0xff] }
 0x32a   : > { %v2444_v58 = vsel %vm2436_vm3, %v1736_v55, %v2376_v9  ;;  %v2447_v57 = vsel %vm2436_vm3, %v1739_v56, %v2379_v41  ;;  %v1098_v10 = vadd.f32 %v4191_v61, %v714_v17  ;;  %v1423_v27 = vmul.f32 %v4945_v7, %v4401_v40  ;;  %v6561_v55 = vld [vmem:[#allocation109_spill] sm:$0xff]  ;;  %v6567_v36 = vld [vmem:[#allocation222_spill] sm:$0xff] }
 0x32b   : > { %v2510_v42 = vsel %vm2435_vm4, %v1096_v22, %v2444_v58  ;;  %v2513_v18 = vsel %vm2435_vm4, %v1099_v21, %v2447_v57  ;;  %v2145_v49 = vpop.permute.xlu1 %2144  ;;  %v2157_v15 = vpop.permute.xlu0 %2156  ;;  %v1101_v53 = vadd.f32 %v4205_v6, %v717_v47  ;;  %v2060_v60 = vmul.f32 %v4945_v7, %v4779_v35  ;;  %v6557_v6 = vld [vmem:[#allocation30_spill] sm:$0xff]  ;;  %v6562_v9 = vld [vmem:[#allocation113_spill] sm:$0xff]  ;;  %v6565_v58 = vld [vmem:[#allocation11_spill] sm:$0xff] }
 0x32c   : > { %2575 = vst.msk [vmem:[%s4973_s7 + $0x28] sm:$0xff] %vm2569_vm5, %v2510_v42  ;;  %2578 = vst.msk [vmem:[%s4973_s7 + $0x40] sm:$0xff] %vm2569_vm5, %v2513_v18  ;;  %v2378_v29 = vadd.f32 %v2145_v49, %v2058_v33  ;;  %v2381_v32 = vadd.f32 %v2157_v15, %v2061_v26  ;;  %v2063_v0 = vmul.f32 %v4945_v7, %v4781_v34  ;;  %v6564_v33 = vld [vmem:[#allocation141_spill] sm:$0xff]  ;;  %v6568_v42 = vld [vmem:[#allocation223_spill] sm:$0xff] }
 0x32d   : > { %v716_v5 = vmul.f32 %v4945_v7, %v6557_v6  ;;  %v719_v43 = vmul.f32 %v4945_v7, %v6558_v51  ;;  %v1740_v23 = vadd.f32 %v4583_v31, %v1420_v39  ;;  %v1743_v25 = vadd.f32 %v4593_v62, %v1423_v27  ;;  %v6573_v51 = vld [vmem:[#allocation139_spill] sm:$0xff] }
 0x32e   : > { %v2446_v54 = vsel %vm2436_vm3, %v1738_v46, %v2378_v29  ;;  %v2449_v61 = vsel %vm2436_vm3, %v1741_v30, %v2381_v32  ;;  %v1422_v3 = vmul.f32 %v4945_v7, %v4397_v48  ;;  %v1425_v31 = vmul.f32 %v4945_v7, %v4407_v38  ;;  %v6569_v46 = vld [vmem:[#allocation38_spill] sm:$0xff]  ;;  %v6570_v29 = vld [vmem:[#allocation47_spill] sm:$0xff] }
 0x32f   : > { %v2512_v40 = vsel %vm2435_vm4, %v1098_v10, %v2446_v54  ;;  %v2515_v35 = vsel %vm2435_vm4, %v1101_v53, %v2449_v61  ;;  %v2153_v63 = vpop.permute.xlu1 %2152  ;;  %v2165_v34 = vpop.permute.xlu0 %2164  ;;  %v1100_v4 = vadd.f32 %v4197_v2, %v716_v5  ;;  %v1103_v11 = vadd.f32 %v4211_v8, %v719_v43  ;;  %v6559_v8 = vld [vmem:[#allocation34_spill] sm:$0xff]  ;;  %v6572_v54 = vld [vmem:[#allocation117_spill] sm:$0xff] }
 0x330   : > { %2577 = vst.msk [vmem:[%s4973_s7 + $0x38] sm:$0xff] %vm2569_vm5, %v2512_v40  ;;  %2580 = vst.msk [vmem:[%s4973_s7 + $0x50] sm:$0xff] %vm2569_vm5, %v2515_v35  ;;  %v2380_v37 = vadd.f32 %v2153_v63, %v2060_v60  ;;  %v2383_v59 = vadd.f32 %v2165_v34, %v2063_v0  ;;  %v2062_v62 = vmul.f32 %v4945_v7, %v4785_v13  ;;  %v6571_v60 = vld [vmem:[#allocation108_spill] sm:$0xff]  ;;  %v6574_v40 = vld [vmem:[#allocation143_spill] sm:$0xff] }
 0x331   : > { %v2065_v45 = vmul.f32 %v4945_v7, %v4787_v12  ;;  %v718_v16 = vmul.f32 %v4945_v7, %v6559_v8  ;;  %v721_v48 = vmul.f32 %v4945_v7, %v6560_v50  ;;  %v1742_v56 = vadd.f32 %v6561_v55, %v1422_v3  ;;  %v6575_v63 = vld [vmem:[#allocation10_spill] sm:$0xff] }
 0x332   : > { %v2448_v44 = vsel %vm2436_vm3, %v1740_v23, %v2380_v37  ;;  %v2451_v2 = vsel %vm2436_vm3, %v1743_v25, %v2383_v59  ;;  %v1745_v41 = vadd.f32 %v6562_v9, %v1425_v31  ;;  %v1424_v57 = vmul.f32 %v4945_v7, %v6565_v58  ;;  %v6576_v23 = vld [vmem:[#allocation17_spill] sm:$0xff]  ;;  %v6577_v37 = vld [vmem:[#allocation224_spill] sm:$0xff]  ;;  %v6587_v58 = vld [vmem:[#allocation226_spill] sm:$0xff] }
 0x333   : > { %v2514_v38 = vsel %vm2435_vm4, %v1100_v4, %v2448_v44  ;;  %v2517_v13 = vsel %vm2435_vm4, %v1103_v11, %v2451_v2  ;;  %v2161_v14 = vpop.permute.xlu1 %2160  ;;  %v2173_v12 = vpop.permute.xlu0 %2172  ;;  %v1102_v19 = vadd.f32 %v6563_v52, %v718_v16  ;;  %v1105_v26 = vadd.f32 %v6564_v33, %v721_v48  ;;  %v6578_v4 = vld [vmem:[#allocation225_spill] sm:$0xff]  ;;  %v6580_v44 = vld [vmem:[#allocation51_spill] sm:$0xff]  ;;  %v6583_v9 = vld [vmem:[#allocation140_spill] sm:$0xff] }
 0x334   : > { %2579 = vst.msk [vmem:[%s4973_s7 + $0x48] sm:$0xff] %vm2569_vm5, %v2514_v38  ;;  %2582 = vst.msk [vmem:[%s4973_s7 + $0x60] sm:$0xff] %vm2569_vm5, %v2517_v13  ;;  %v2382_v22 = vadd.f32 %v2161_v14, %v2062_v62  ;;  %v2385_v21 = vadd.f32 %v2173_v12, %v2065_v45  ;;  %v1427_v17 = vmul.f32 %v4945_v7, %v6566_v1  ;;  %v6579_v62 = vld [vmem:[#allocation42_spill] sm:$0xff]  ;;  %v6581_v38 = vld [vmem:[#allocation112_spill] sm:$0xff] }
 0x335   : > { %v2064_v47 = vmul.f32 %v4945_v7, %v6567_v36  ;;  %v2067_v18 = vmul.f32 %v4945_v7, %v6568_v42  ;;  %v720_v30 = vmul.f32 %v4945_v7, %v6569_v46  ;;  %v723_v32 = vmul.f32 %v4945_v7, %v6570_v29  ;;  %v6582_v14 = vld [vmem:[#allocation121_spill] sm:$0xff]  ;;  %v6585_v52 = vld [vmem:[#allocation12_spill] sm:$0xff]  ;;  %v6588_v1 = vld [vmem:[#allocation227_spill] sm:$0xff] }
 0x336   : > { %v2450_v49 = vsel %vm2436_vm3, %v1742_v56, %v2382_v22  ;;  %v2453_v15 = vsel %vm2436_vm3, %v1745_v41, %v2385_v21  ;;  %v1744_v0 = vadd.f32 %v6571_v60, %v1424_v57  ;;  %v1747_v61 = vadd.f32 %v6572_v54, %v1427_v17  ;;  %v6584_v22 = vld [vmem:[#allocation145_spill] sm:$0xff]  ;;  %v6589_v42 = vld [vmem:[#allocation46_spill] sm:$0xff] }
 0x337   : > { %v2516_v10 = vsel %vm2435_vm4, %v1102_v19, %v2450_v49  ;;  %v2519_v53 = vsel %vm2435_vm4, %v1105_v26, %v2453_v15  ;;  %v2169_v39 = vpop.permute.xlu1 %2168  ;;  %v2181_v27 = vpop.permute.xlu0 %2180  ;;  %v1104_v43 = vadd.f32 %v6573_v51, %v720_v30  ;;  %v1107_v35 = vadd.f32 %v6574_v40, %v723_v32  ;;  %v6586_v33 = vld [vmem:[#allocation21_spill] sm:$0xff]  ;;  %v6590_v49 = vld [vmem:[#allocation55_spill] sm:$0xff]  ;;  %v6593_v54 = vld [vmem:[#allocation142_spill] sm:$0xff] }
 0x338   : > { %2581 = vst.msk [vmem:[%s4973_s7 + $0x58] sm:$0xff] %vm2569_vm5, %v2516_v10  ;;  %2584 = vst.msk [vmem:[%s4973_s7 + $0x70] sm:$0xff] %vm2569_vm5, %v2519_v53  ;;  %v2384_v6 = vadd.f32 %v2169_v39, %v2064_v47  ;;  %v2387_v5 = vadd.f32 %v2181_v27, %v2067_v18  ;;  %v1426_v34 = vmul.f32 %v4945_v7, %v6575_v63  ;;  %v6591_v10 = vld [vmem:[#allocation116_spill] sm:$0xff]  ;;  %v6592_v39 = vld [vmem:[#allocation125_spill] sm:$0xff] }
 0x339   : > { %v1429_v25 = vmul.f32 %v4945_v7, %v6576_v23  ;;  %v2066_v59 = vmul.f32 %v4945_v7, %v6577_v37  ;;  %v2069_v11 = vmul.f32 %v4945_v7, %v6578_v4  ;;  %v722_v45 = vmul.f32 %v4945_v7, %v6579_v62  ;;  %v6595_v51 = vld [vmem:[#allocation16_spill] sm:$0xff]  ;;  %v6596_v40 = vld [vmem:[#allocation25_spill] sm:$0xff]  ;;  %v6599_v4 = vld [vmem:[#allocation50_spill] sm:$0xff] }
 0x33a   : > { %v2452_v3 = vsel %vm2436_vm3, %v1744_v0, %v2384_v6  ;;  %v2455_v31 = vsel %vm2436_vm3, %v1747_v61, %v2387_v5  ;;  %v725_v2 = vmul.f32 %v4945_v7, %v6580_v44  ;;  %v1746_v13 = vadd.f32 %v6581_v38, %v1426_v34  ;;  %v6594_v6 = vld [vmem:[#allocation147_spill] sm:$0xff]  ;;  %v6597_v63 = vld [vmem:[#allocation228_spill] sm:$0xff]  ;;  %v6598_v23 = vld [vmem:[#allocation229_spill] sm:$0xff] }
 0x33b   : > { %v2518_v8 = vsel %vm2435_vm4, %v1104_v43, %v2452_v3  ;;  %v2521_v16 = vsel %vm2435_vm4, %v1107_v35, %v2455_v31  ;;  %v2177_v50 = vpop.permute.xlu1 %2176  ;;  %v2189_v48 = vpop.permute.xlu0 %2188  ;;  %v1749_v12 = vadd.f32 %v6582_v14, %v1429_v25  ;;  %v1106_v41 = vadd.f32 %v6583_v9, %v722_v45  ;;  %v6600_v3 = vld [vmem:[#allocation59_spill] sm:$0xff]  ;;  %v6603_v14 = vld [vmem:[#allocation144_spill] sm:$0xff] }
 0x33c   : > { %2583 = vst.msk [vmem:[%s4973_s7 + $0x68] sm:$0xff] %vm2569_vm5, %v2518_v8  ;;  %2586 = vst.msk [vmem:[%s4973_s7 + $0x80] sm:$0xff] %vm2569_vm5, %v2521_v16  ;;  %v2386_v55 = vadd.f32 %v2177_v50, %v2066_v59  ;;  %v2389_v56 = vadd.f32 %v2189_v48, %v2069_v11  ;;  %v1109_v21 = vadd.f32 %v6584_v22, %v725_v2  ;;  %v6601_v8 = vld [vmem:[#allocation120_spill] sm:$0xff]  ;;  %v6602_v50 = vld [vmem:[#allocation129_spill] sm:$0xff] }
 0x33d   : > { %v1428_v19 = vmul.f32 %v4945_v7, %v6585_v52  ;;  %v1431_v26 = vmul.f32 %v4945_v7, %v6586_v33  ;;  %v2068_v57 = vmul.f32 %v4945_v7, %v6587_v58  ;;  %v2071_v17 = vmul.f32 %v4945_v7, %v6588_v1  ;;  %v6605_v9 = vld [vmem:[#allocation20_spill] sm:$0xff]  ;;  %v6606_v22 = vld [vmem:[#allocation29_spill] sm:$0xff]  ;;  %v6607_v52 = vld [vmem:[#allocation230_spill] sm:$0xff] }
 0x33e   : > { %v2454_v36 = vsel %vm2436_vm3, %v1746_v13, %v2386_v55  ;;  %v2457_v47 = vsel %vm2436_vm3, %v1749_v12, %v2389_v56  ;;  %v724_v18 = vmul.f32 %v4945_v7, %v6589_v42  ;;  %v727_v15 = vmul.f32 %v4945_v7, %v6590_v49  ;;  %v6604_v55 = vld [vmem:[#allocation149_spill] sm:$0xff]  ;;  %v6608_v33 = vld [vmem:[#allocation231_spill] sm:$0xff]  ;;  %v6609_v1 = vld [vmem:[#allocation54_spill] sm:$0xff] }
 0x33f   : > { %v2520_v46 = vsel %vm2435_vm4, %v1106_v41, %v2454_v36  ;;  %v2523_v30 = vsel %vm2435_vm4, %v1109_v21, %v2457_v47  ;;  %v2185_v29 = vpop.permute.xlu1 %2184  ;;  %v2197_v32 = vpop.permute.xlu0 %2196  ;;  %v1748_v53 = vadd.f32 %v6591_v10, %v1428_v19  ;;  %v1751_v27 = vadd.f32 %v6592_v39, %v1431_v26  ;;  %v6610_v36 = vld [vmem:[#allocation63_spill] sm:$0xff]  ;;  %v6613_v39 = vld [vmem:[#allocation146_spill] sm:$0xff] }
 0x340   : > { %2585 = vst.msk [vmem:[%s4973_s7 + $0x78] sm:$0xff] %vm2569_vm5, %v2520_v46  ;;  %2588 = vst.msk [vmem:[%s4973_s7 + $0x90] sm:$0xff] %vm2569_vm5, %v2523_v30  ;;  %v2388_v60 = vadd.f32 %v2185_v29, %v2068_v57  ;;  %v2391_v0 = vadd.f32 %v2197_v32, %v2071_v17  ;;  %v1108_v61 = vadd.f32 %v6593_v54, %v724_v18  ;;  %v6611_v46 = vld [vmem:[#allocation124_spill] sm:$0xff] }
 0x341   : > { %v1111_v5 = vadd.f32 %v6594_v6, %v727_v15  ;;  %v1430_v43 = vmul.f32 %v4945_v7, %v6595_v51  ;;  %v1433_v35 = vmul.f32 %v4945_v7, %v6596_v40  ;;  %v2070_v34 = vmul.f32 %v4945_v7, %v6597_v63  ;;  %v6612_v29 = vld [vmem:[#allocation132_spill] sm:$0xff]  ;;  %v6616_v6 = vld [vmem:[#allocation33_spill] sm:$0xff] }
 0x342   : > { %v2073_v25 = vmul.f32 %v4945_v7, %v6598_v23  ;;  %v2456_v37 = vsel %vm2436_vm3, %v1748_v53, %v2388_v60  ;;  %v2459_v59 = vsel %vm2436_vm3, %v1751_v27, %v2391_v0  ;;  %v726_v11 = vmul.f32 %v4945_v7, %v6599_v4  ;;  %v6614_v60 = vld [vmem:[#allocation151_spill] sm:$0xff]  ;;  %v6615_v54 = vld [vmem:[#allocation24_spill] sm:$0xff]  ;;  %v6618_v40 = vld [vmem:[#allocation233_spill] sm:$0xff] }
 0x343   : > { %v729_v31 = vmul.f32 %v4945_v7, %v6600_v3  ;;  %v2522_v62 = vsel %vm2435_vm4, %v1108_v61, %v2456_v37  ;;  %v2525_v45 = vsel %vm2435_vm4, %v1111_v5, %v2459_v59  ;;  %v2193_v44 = vpop.permute.xlu1 %2192  ;;  %v2205_v2 = vpop.permute.xlu0 %2204  ;;  %v1750_v16 = vadd.f32 %v6601_v8, %v1430_v43  ;;  %v6617_v51 = vld [vmem:[#allocation232_spill] sm:$0xff]  ;;  %v6619_v23 = vld [vmem:[#allocation58_spill] sm:$0xff]  ;;  %v6620_v37 = vld [vmem:[#allocation67_spill] sm:$0xff] }
 0x344   : > { %v1753_v48 = vadd.f32 %v6602_v50, %v1433_v35  ;;  %2587 = vst.msk [vmem:[%s4973_s7 + $0x88] sm:$0xff] %vm2569_vm5, %v2522_v62  ;;  %2590 = vst.msk [vmem:[%s4973_s7 + $0xa0] sm:$0xff] %vm2569_vm5, %v2525_v45  ;;  %v2390_v38 = vadd.f32 %v2193_v44, %v2070_v34  ;;  %v2393_v13 = vadd.f32 %v2205_v2, %v2073_v25  ;;  %v6621_v62 = vld [vmem:[#allocation128_spill] sm:$0xff] }
 0x345   : > { %v1110_v12 = vadd.f32 %v6603_v14, %v726_v11  ;;  %v1113_v56 = vadd.f32 %v6604_v55, %v729_v31  ;;  %v1432_v41 = vmul.f32 %v4945_v7, %v6605_v9  ;;  %v1435_v21 = vmul.f32 %v4945_v7, %v6606_v22  ;;  %v6622_v44 = vld [vmem:[#allocation184_spill] sm:$0xff]  ;;  %v6626_v55 = vld [vmem:[#allocation37_spill] sm:$0xff]  ;;  %v6627_v9 = vld [vmem:[#allocation234_spill] sm:$0xff] }
 0x346   : > { %v2072_v19 = vmul.f32 %v4945_v7, %v6607_v52  ;;  %v2075_v26 = vmul.f32 %v4945_v7, %v6608_v33  ;;  %v2458_v58 = vsel %vm2436_vm3, %v1750_v16, %v2390_v38  ;;  %v2461_v57 = vsel %vm2436_vm3, %v1753_v48, %v2393_v13  ;;  %v6623_v50 = vld [vmem:[#allocation148_spill] sm:$0xff]  ;;  %v6624_v38 = vld [vmem:[#allocation153_spill] sm:$0xff]  ;;  %v6628_v22 = vld [vmem:[#allocation235_spill] sm:$0xff] }
 0x347   : > { %v728_v17 = vmul.f32 %v4945_v7, %v6609_v1  ;;  %v731_v47 = vmul.f32 %v4945_v7, %v6610_v36  ;;  %v2524_v42 = vsel %vm2435_vm4, %v1110_v12, %v2458_v58  ;;  %v2527_v18 = vsel %vm2435_vm4, %v1113_v56, %v2461_v57  ;;  %v2201_v49 = vpop.permute.xlu1 %2200  ;;  %v2213_v15 = vpop.permute.xlu0 %2212  ;;  %v6625_v14 = vld [vmem:[#allocation28_spill] sm:$0xff]  ;;  %v6629_v33 = vld [vmem:[#allocation62_spill] sm:$0xff]  ;;  %v6630_v58 = vld [vmem:[#allocation71_spill] sm:$0xff] }
 0x348   : > { %v1752_v30 = vadd.f32 %v6611_v46, %v1432_v41  ;;  %v1755_v32 = vadd.f32 %v6612_v29, %v1435_v21  ;;  %2589 = vst.msk [vmem:[%s4973_s7 + $0x98] sm:$0xff] %vm2569_vm5, %v2524_v42  ;;  %2592 = vst.msk [vmem:[%s4973_s7 + $0xb0] sm:$0xff] %vm2569_vm5, %v2527_v18  ;;  %v2392_v10 = vadd.f32 %v2201_v49, %v2072_v19  ;;  %v6631_v42 = vld [vmem:[#allocation183_spill] sm:$0xff]  ;;  %v6632_v49 = vld [vmem:[#allocation186_spill] sm:$0xff] }
 0x349   : > { %v2395_v53 = vadd.f32 %v2213_v15, %v2075_v26  ;;  %v1112_v27 = vadd.f32 %v6613_v39, %v728_v17  ;;  %v1115_v0 = vadd.f32 %v6614_v60, %v731_v47  ;;  %v1434_v61 = vmul.f32 %v4945_v7, %v6615_v54  ;;  %v6633_v29 = vld [vmem:[#allocation150_spill] sm:$0xff]  ;;  %v6635_v39 = vld [vmem:[#allocation32_spill] sm:$0xff]  ;;  %v6636_v60 = vld [vmem:[#allocation41_spill] sm:$0xff] }
 0x34a   : > { %v1437_v5 = vmul.f32 %v4945_v7, %v6616_v6  ;;  %v2074_v43 = vmul.f32 %v4945_v7, %v6617_v51  ;;  %v2077_v35 = vmul.f32 %v4945_v7, %v6618_v40  ;;  %v2460_v63 = vsel %vm2436_vm3, %v1752_v30, %v2392_v10  ;;  %v6634_v10 = vld [vmem:[#allocation155_spill] sm:$0xff]  ;;  %v6637_v54 = vld [vmem:[#allocation236_spill] sm:$0xff]  ;;  %v6638_v6 = vld [vmem:[#allocation237_spill] sm:$0xff] }
 0x34b   : > { %v2463_v34 = vsel %vm2436_vm3, %v1755_v32, %v2395_v53  ;;  %v730_v25 = vmul.f32 %v4945_v7, %v6619_v23  ;;  %v733_v59 = vmul.f32 %v4945_v7, %v6620_v37  ;;  %v2526_v4 = vsel %vm2435_vm4, %v1112_v27, %v2460_v63  ;;  %v2209_v3 = vpop.permute.xlu1 %2208  ;;  %v2221_v31 = vpop.permute.xlu0 %2220  ;;  %v6639_v40 = vld [vmem:[#allocation66_spill] sm:$0xff]  ;;  %v6640_v63 = vld [vmem:[#allocation75_spill] sm:$0xff] }
 0x34c   : > { %v2529_v11 = vsel %vm2435_vm4, %v1115_v0, %v2463_v34  ;;  %v1754_v45 = vadd.f32 %v6621_v62, %v1434_v61  ;;  %v1757_v2 = vadd.f32 %v6622_v44, %v1437_v5  ;;  %2591 = vst.msk [vmem:[%s4973_s7 + $0xa8] sm:$0xff] %vm2569_vm5, %v2526_v4  ;;  %v2394_v8 = vadd.f32 %v2209_v3, %v2074_v43  ;;  %v6641_v4 = vld [vmem:[#allocation185_spill] sm:$0xff]  ;;  %v6642_v3 = vld [vmem:[#allocation188_spill] sm:$0xff] }
 0x34d   : > { %2594 = vst.msk [vmem:[%s4973_s7 + $0xc0] sm:$0xff] %vm2569_vm5, %v2529_v11  ;;  %v2397_v16 = vadd.f32 %v2221_v31, %v2077_v35  ;;  %v1114_v48 = vadd.f32 %v6623_v50, %v730_v25  ;;  %v1117_v13 = vadd.f32 %v6624_v38, %v733_v59  ;;  %v1436_v12 = vmul.f32 %v4945_v7, %v6625_v14  ;;  %v6643_v44 = vld [vmem:[#allocation152_spill] sm:$0xff]  ;;  %v6646_v38 = vld [vmem:[#allocation45_spill] sm:$0xff]  ;;  %v6647_v14 = vld [vmem:[#allocation238_spill] sm:$0xff] }
 0x34e   : > { %v1439_v56 = vmul.f32 %v4945_v7, %v6626_v55  ;;  %v2076_v41 = vmul.f32 %v4945_v7, %v6627_v9  ;;  %v2079_v21 = vmul.f32 %v4945_v7, %v6628_v22  ;;  %v2462_v52 = vsel %vm2436_vm3, %v1754_v45, %v2394_v8  ;;  %v6644_v8 = vld [vmem:[#allocation157_spill] sm:$0xff]  ;;  %v6645_v50 = vld [vmem:[#allocation36_spill] sm:$0xff]  ;;  %v6648_v55 = vld [vmem:[#allocation239_spill] sm:$0xff] }
 0x34f   : > { %v2465_v19 = vsel %vm2436_vm3, %v1757_v2, %v2397_v16  ;;  %v732_v26 = vmul.f32 %v4945_v7, %v6629_v33  ;;  %v735_v57 = vmul.f32 %v4945_v7, %v6630_v58  ;;  %v2528_v1 = vsel %vm2435_vm4, %v1114_v48, %v2462_v52  ;;  %v2217_v36 = vpop.permute.xlu1 %2216  ;;  %v2229_v47 = vpop.permute.xlu0 %2228  ;;  %v6649_v22 = vld [vmem:[#allocation70_spill] sm:$0xff]  ;;  %v6650_v52 = vld [vmem:[#allocation79_spill] sm:$0xff] }
 0x350   : > { %v2531_v17 = vsel %vm2435_vm4, %v1117_v13, %v2465_v19  ;;  %v1756_v18 = vadd.f32 %v6631_v42, %v1436_v12  ;;  %v1759_v15 = vadd.f32 %v6632_v49, %v1439_v56  ;;  %2593 = vst.msk [vmem:[%s4973_s7 + $0xb8] sm:$0xff] %vm2569_vm5, %v2528_v1  ;;  %v2396_v46 = vadd.f32 %v2217_v36, %v2076_v41  ;;  %v6651_v1 = vld [vmem:[#allocation187_spill] sm:$0xff]  ;;  %v6652_v36 = vld [vmem:[#allocation190_spill] sm:$0xff] }
 0x351   : > { %2596 = vst.msk [vmem:[%s4973_s7 + $0xd0] sm:$0xff] %vm2569_vm5, %v2531_v17  ;;  %v2399_v30 = vadd.f32 %v2229_v47, %v2079_v21  ;;  %v1116_v32 = vadd.f32 %v6633_v29, %v732_v26  ;;  %v1119_v53 = vadd.f32 %v6634_v10, %v735_v57  ;;  %v1438_v27 = vmul.f32 %v4945_v7, %v6635_v39  ;;  %v6653_v49 = vld [vmem:[#allocation154_spill] sm:$0xff]  ;;  %v6655_v29 = vld [vmem:[#allocation40_spill] sm:$0xff]  ;;  %v6656_v10 = vld [vmem:[#allocation49_spill] sm:$0xff] }
 0x352   : > { %v1441_v0 = vmul.f32 %v4945_v7, %v6636_v60  ;;  %v2078_v61 = vmul.f32 %v4945_v7, %v6637_v54  ;;  %v2081_v5 = vmul.f32 %v4945_v7, %v6638_v6  ;;  %v2464_v51 = vsel %vm2436_vm3, %v1756_v18, %v2396_v46  ;;  %v6654_v46 = vld [vmem:[#allocation159_spill] sm:$0xff]  ;;  %v6657_v39 = vld [vmem:[#allocation240_spill] sm:$0xff]  ;;  %v6658_v60 = vld [vmem:[#allocation241_spill] sm:$0xff] }
 0x353   : > { %v2467_v43 = vsel %vm2436_vm3, %v1759_v15, %v2399_v30  ;;  %v734_v35 = vmul.f32 %v4945_v7, %v6639_v40  ;;  %v737_v34 = vmul.f32 %v4945_v7, %v6640_v63  ;;  %v2530_v23 = vsel %vm2435_vm4, %v1116_v32, %v2464_v51  ;;  %v2225_v37 = vpop.permute.xlu1 %2224  ;;  %v2237_v59 = vpop.permute.xlu0 %2236  ;;  %v6659_v6 = vld [vmem:[#allocation74_spill] sm:$0xff]  ;;  %v6660_v51 = vld [vmem:[#allocation83_spill] sm:$0xff] }
 0x354   : > { %v2533_v25 = vsel %vm2435_vm4, %v1119_v53, %v2467_v43  ;;  %v1758_v11 = vadd.f32 %v6641_v4, %v1438_v27  ;;  %v1761_v31 = vadd.f32 %v6642_v3, %v1441_v0  ;;  %2595 = vst.msk [vmem:[%s4973_s7 + $0xc8] sm:$0xff] %vm2569_vm5, %v2530_v23  ;;  %v2398_v62 = vadd.f32 %v2225_v37, %v2078_v61  ;;  %v6661_v23 = vld [vmem:[#allocation189_spill] sm:$0xff]  ;;  %v6662_v37 = vld [vmem:[#allocation192_spill] sm:$0xff] }
 0x355   : > { %2598 = vst.msk [vmem:[%s4973_s7 + $0xe0] sm:$0xff] %vm2569_vm5, %v2533_v25  ;;  %v2401_v45 = vadd.f32 %v2237_v59, %v2081_v5  ;;  %v1118_v2 = vadd.f32 %v6643_v44, %v734_v35  ;;  %v1121_v16 = vadd.f32 %v6644_v8, %v737_v34  ;;  %v1440_v48 = vmul.f32 %v4945_v7, %v6645_v50  ;;  %v6663_v3 = vld [vmem:[#allocation156_spill] sm:$0xff]  ;;  %v6666_v8 = vld [vmem:[#allocation53_spill] sm:$0xff]  ;;  %v6667_v50 = vld [vmem:[#allocation242_spill] sm:$0xff] }
 0x356   : > { %v1443_v13 = vmul.f32 %v4945_v7, %v6646_v38  ;;  %v2080_v12 = vmul.f32 %v4945_v7, %v6647_v14  ;;  %v2083_v56 = vmul.f32 %v4945_v7, %v6648_v55  ;;  %v2466_v9 = vsel %vm2436_vm3, %v1758_v11, %v2398_v62  ;;  %v6664_v62 = vld [vmem:[#allocation161_spill] sm:$0xff]  ;;  %v6665_v44 = vld [vmem:[#allocation44_spill] sm:$0xff]  ;;  %v6668_v38 = vld [vmem:[#allocation243_spill] sm:$0xff] }
 0x357   : > { %v2469_v41 = vsel %vm2436_vm3, %v1761_v31, %v2401_v45  ;;  %v736_v21 = vmul.f32 %v4945_v7, %v6649_v22  ;;  %v739_v19 = vmul.f32 %v4945_v7, %v6650_v52  ;;  %v2532_v33 = vsel %vm2435_vm4, %v1118_v2, %v2466_v9  ;;  %v2233_v58 = vpop.permute.xlu1 %2232  ;;  %v2245_v57 = vpop.permute.xlu0 %2244  ;;  %v6669_v55 = vld [vmem:[#allocation78_spill] sm:$0xff]  ;;  %v6670_v9 = vld [vmem:[#allocation87_spill] sm:$0xff] }
 0x358   : > { %v2535_v26 = vsel %vm2435_vm4, %v1121_v16, %v2469_v41  ;;  %v1760_v17 = vadd.f32 %v6651_v1, %v1440_v48  ;;  %v1763_v47 = vadd.f32 %v6652_v36, %v1443_v13  ;;  %2597 = vst.msk [vmem:[%s4973_s7 + $0xd8] sm:$0xff] %vm2569_vm5, %v2532_v33  ;;  %v2400_v42 = vadd.f32 %v2233_v58, %v2080_v12  ;;  %v6671_v33 = vld [vmem:[#allocation191_spill] sm:$0xff]  ;;  %v6672_v58 = vld [vmem:[#allocation194_spill] sm:$0xff] }
 0x359   : > { %2600 = vst.msk [vmem:[%s4973_s7 + $0xf0] sm:$0xff] %vm2569_vm5, %v2535_v26  ;;  %v2403_v18 = vadd.f32 %v2245_v57, %v2083_v56  ;;  %v1120_v15 = vadd.f32 %v6653_v49, %v736_v21  ;;  %v1123_v30 = vadd.f32 %v6654_v46, %v739_v19  ;;  %v1442_v32 = vmul.f32 %v4945_v7, %v6655_v29  ;;  %v6673_v36 = vld [vmem:[#allocation158_spill] sm:$0xff]  ;;  %v6675_v49 = vld [vmem:[#allocation48_spill] sm:$0xff]  ;;  %v6676_v46 = vld [vmem:[#allocation57_spill] sm:$0xff] }
 0x35a   : > { %v1445_v53 = vmul.f32 %v4945_v7, %v6656_v10  ;;  %v2082_v27 = vmul.f32 %v4945_v7, %v6657_v39  ;;  %v2085_v0 = vmul.f32 %v4945_v7, %v6658_v60  ;;  %v2468_v54 = vsel %vm2436_vm3, %v1760_v17, %v2400_v42  ;;  %v6674_v42 = vld [vmem:[#allocation163_spill] sm:$0xff]  ;;  %v6677_v29 = vld [vmem:[#allocation244_spill] sm:$0xff]  ;;  %v6678_v10 = vld [vmem:[#allocation245_spill] sm:$0xff] }
 0x35b   : > { %v2471_v61 = vsel %vm2436_vm3, %v1763_v47, %v2403_v18  ;;  %v738_v5 = vmul.f32 %v4945_v7, %v6659_v6  ;;  %v741_v43 = vmul.f32 %v4945_v7, %v6660_v51  ;;  %v2534_v40 = vsel %vm2435_vm4, %v1120_v15, %v2468_v54  ;;  %v2241_v63 = vpop.permute.xlu1 %2240  ;;  %v2253_v34 = vpop.permute.xlu0 %2252  ;;  %v6679_v60 = vld [vmem:[#allocation82_spill] sm:$0xff]  ;;  %v6680_v54 = vld [vmem:[#allocation91_spill] sm:$0xff] }
 0x35c   : > { %v2537_v35 = vsel %vm2435_vm4, %v1123_v30, %v2471_v61  ;;  %v1762_v25 = vadd.f32 %v6661_v23, %v1442_v32  ;;  %v1765_v59 = vadd.f32 %v6662_v37, %v1445_v53  ;;  %2599 = vst.msk [vmem:[%s4973_s7 + $0xe8] sm:$0xff] %vm2569_vm5, %v2534_v40  ;;  %v2402_v4 = vadd.f32 %v2241_v63, %v2082_v27  ;;  %v6681_v40 = vld [vmem:[#allocation193_spill] sm:$0xff]  ;;  %v6682_v63 = vld [vmem:[#allocation196_spill] sm:$0xff] }
 0x35d   : > { %2602 = vst.msk [vmem:[%s4973_s7 + $0x100] sm:$0xff] %vm2569_vm5, %v2537_v35  ;;  %v2405_v11 = vadd.f32 %v2253_v34, %v2085_v0  ;;  %v1122_v31 = vadd.f32 %v6663_v3, %v738_v5  ;;  %v1125_v45 = vadd.f32 %v6664_v62, %v741_v43  ;;  %v1444_v2 = vmul.f32 %v4945_v7, %v6665_v44  ;;  %v6683_v37 = vld [vmem:[#allocation160_spill] sm:$0xff]  ;;  %v6686_v62 = vld [vmem:[#allocation61_spill] sm:$0xff]  ;;  %v6687_v44 = vld [vmem:[#allocation246_spill] sm:$0xff] }
 0x35e   : > { %v1447_v16 = vmul.f32 %v4945_v7, %v6666_v8  ;;  %v2084_v48 = vmul.f32 %v4945_v7, %v6667_v50  ;;  %v2087_v13 = vmul.f32 %v4945_v7, %v6668_v38  ;;  %v2470_v14 = vsel %vm2436_vm3, %v1762_v25, %v2402_v4  ;;  %v6684_v4 = vld [vmem:[#allocation165_spill] sm:$0xff]  ;;  %v6685_v3 = vld [vmem:[#allocation52_spill] sm:$0xff]  ;;  %v6688_v8 = vld [vmem:[#allocation247_spill] sm:$0xff] }
 0x35f   : > { %v2473_v12 = vsel %vm2436_vm3, %v1765_v59, %v2405_v11  ;;  %v740_v56 = vmul.f32 %v4945_v7, %v6669_v55  ;;  %v743_v41 = vmul.f32 %v4945_v7, %v6670_v9  ;;  %v2536_v22 = vsel %vm2435_vm4, %v1122_v31, %v2470_v14  ;;  %v2249_v52 = vpop.permute.xlu1 %2248  ;;  %v2261_v19 = vpop.permute.xlu0 %2260  ;;  %v6689_v38 = vld [vmem:[#allocation86_spill] sm:$0xff]  ;;  %v6690_v14 = vld [vmem:[#allocation95_spill] sm:$0xff] }
 0x360   : > { %v2539_v21 = vsel %vm2435_vm4, %v1125_v45, %v2473_v12  ;;  %v1764_v26 = vadd.f32 %v6671_v33, %v1444_v2  ;;  %v1767_v57 = vadd.f32 %v6672_v58, %v1447_v16  ;;  %2601 = vst.msk [vmem:[%s4973_s7 + $0xf8] sm:$0xff] %vm2569_vm5, %v2536_v22  ;;  %v2404_v1 = vadd.f32 %v2249_v52, %v2084_v48  ;;  %v6691_v22 = vld [vmem:[#allocation195_spill] sm:$0xff]  ;;  %v6692_v52 = vld [vmem:[#allocation198_spill] sm:$0xff] }
 0x361   : > { %2604 = vst.msk [vmem:[%s4973_s7 + $0x110] sm:$0xff] %vm2569_vm5, %v2539_v21  ;;  %v2407_v17 = vadd.f32 %v2261_v19, %v2087_v13  ;;  %v1124_v47 = vadd.f32 %v6673_v36, %v740_v56  ;;  %v1127_v18 = vadd.f32 %v6674_v42, %v743_v41  ;;  %v1446_v15 = vmul.f32 %v4945_v7, %v6675_v49  ;;  %v6693_v58 = vld [vmem:[#allocation162_spill] sm:$0xff]  ;;  %v6695_v36 = vld [vmem:[#allocation56_spill] sm:$0xff]  ;;  %v6696_v42 = vld [vmem:[#allocation65_spill] sm:$0xff] }
 0x362   : > { %v1449_v30 = vmul.f32 %v4945_v7, %v6676_v46  ;;  %v2086_v32 = vmul.f32 %v4945_v7, %v6677_v29  ;;  %v2089_v53 = vmul.f32 %v4945_v7, %v6678_v10  ;;  %v2472_v39 = vsel %vm2436_vm3, %v1764_v26, %v2404_v1  ;;  %v6694_v1 = vld [vmem:[#allocation167_spill] sm:$0xff]  ;;  %v6697_v49 = vld [vmem:[#allocation248_spill] sm:$0xff]  ;;  %v6698_v46 = vld [vmem:[#allocation249_spill] sm:$0xff] }
 0x363   : > { %v2475_v27 = vsel %vm2436_vm3, %v1767_v57, %v2407_v17  ;;  %v742_v0 = vmul.f32 %v4945_v7, %v6679_v60  ;;  %v745_v61 = vmul.f32 %v4945_v7, %v6680_v54  ;;  %v2538_v6 = vsel %vm2435_vm4, %v1124_v47, %v2472_v39  ;;  %v2257_v51 = vpop.permute.xlu1 %2256  ;;  %v2269_v43 = vpop.permute.xlu0 %2268  ;;  %v6699_v10 = vld [vmem:[#allocation90_spill] sm:$0xff]  ;;  %v6700_v39 = vld [vmem:[#allocation99_spill] sm:$0xff] }
 0x364   : > { %v2541_v5 = vsel %vm2435_vm4, %v1127_v18, %v2475_v27  ;;  %v1766_v35 = vadd.f32 %v6681_v40, %v1446_v15  ;;  %v1769_v34 = vadd.f32 %v6682_v63, %v1449_v30  ;;  %2603 = vst.msk [vmem:[%s4973_s7 + $0x108] sm:$0xff] %vm2569_vm5, %v2538_v6  ;;  %v2406_v23 = vadd.f32 %v2257_v51, %v2086_v32  ;;  %v6701_v6 = vld [vmem:[#allocation197_spill] sm:$0xff]  ;;  %v6702_v51 = vld [vmem:[#allocation200_spill] sm:$0xff] }
 0x365   : > { %2606 = vst.msk [vmem:[%s4973_s7 + $0x120] sm:$0xff] %vm2569_vm5, %v2541_v5  ;;  %v2409_v25 = vadd.f32 %v2269_v43, %v2089_v53  ;;  %v1126_v59 = vadd.f32 %v6683_v37, %v742_v0  ;;  %v1129_v11 = vadd.f32 %v6684_v4, %v745_v61  ;;  %v1448_v31 = vmul.f32 %v4945_v7, %v6685_v3  ;;  %v6703_v63 = vld [vmem:[#allocation164_spill] sm:$0xff]  ;;  %v6706_v4 = vld [vmem:[#allocation69_spill] sm:$0xff]  ;;  %v6707_v3 = vld [vmem:[#allocation250_spill] sm:$0xff] }
 0x366   : > { %v1451_v45 = vmul.f32 %v4945_v7, %v6686_v62  ;;  %v2088_v2 = vmul.f32 %v4945_v7, %v6687_v44  ;;  %v2091_v16 = vmul.f32 %v4945_v7, %v6688_v8  ;;  %v2474_v50 = vsel %vm2436_vm3, %v1766_v35, %v2406_v23  ;;  %v6704_v23 = vld [vmem:[#allocation169_spill] sm:$0xff]  ;;  %v6705_v37 = vld [vmem:[#allocation60_spill] sm:$0xff]  ;;  %v6708_v62 = vld [vmem:[#allocation251_spill] sm:$0xff] }
 0x367   : > { %v2477_v48 = vsel %vm2436_vm3, %v1769_v34, %v2409_v25  ;;  %v744_v13 = vmul.f32 %v4945_v7, %v6689_v38  ;;  %v747_v12 = vmul.f32 %v4945_v7, %v6690_v14  ;;  %v2540_v55 = vsel %vm2435_vm4, %v1126_v59, %v2474_v50  ;;  %v2265_v9 = vpop.permute.xlu1 %2264  ;;  %v2277_v41 = vpop.permute.xlu0 %2276  ;;  %v6709_v8 = vld [vmem:[#allocation94_spill] sm:$0xff]  ;;  %v6710_v50 = vld [vmem:[#allocation103_spill] sm:$0xff] }
 0x368   : > { %v2543_v56 = vsel %vm2435_vm4, %v1129_v11, %v2477_v48  ;;  %v1768_v21 = vadd.f32 %v6691_v22, %v1448_v31  ;;  %v1771_v19 = vadd.f32 %v6692_v52, %v1451_v45  ;;  %2605 = vst.msk [vmem:[%s4973_s7 + $0x118] sm:$0xff] %vm2569_vm5, %v2540_v55  ;;  %v2408_v33 = vadd.f32 %v2265_v9, %v2088_v2  ;;  %v6711_v55 = vld [vmem:[#allocation199_spill] sm:$0xff]  ;;  %v6712_v9 = vld [vmem:[#allocation202_spill] sm:$0xff] }
 0x369   : > { %2608 = vst.msk [vmem:[%s4973_s7 + $0x130] sm:$0xff] %vm2569_vm5, %v2543_v56  ;;  %v2411_v26 = vadd.f32 %v2277_v41, %v2091_v16  ;;  %v1128_v57 = vadd.f32 %v6693_v58, %v744_v13  ;;  %v1131_v17 = vadd.f32 %v6694_v1, %v747_v12  ;;  %v1450_v47 = vmul.f32 %v4945_v7, %v6695_v36  ;;  %v6713_v52 = vld [vmem:[#allocation166_spill] sm:$0xff]  ;;  %v6715_v58 = vld [vmem:[#allocation64_spill] sm:$0xff]  ;;  %v6716_v1 = vld [vmem:[#allocation73_spill] sm:$0xff] }
 0x36a   : > { %v1453_v18 = vmul.f32 %v4945_v7, %v6696_v42  ;;  %v2090_v15 = vmul.f32 %v4945_v7, %v6697_v49  ;;  %v2093_v30 = vmul.f32 %v4945_v7, %v6698_v46  ;;  %v2476_v29 = vsel %vm2436_vm3, %v1768_v21, %v2408_v33  ;;  %v6714_v33 = vld [vmem:[#allocation171_spill] sm:$0xff]  ;;  %v6717_v36 = vld [vmem:[#allocation252_spill] sm:$0xff]  ;;  %v6718_v42 = vld [vmem:[#allocation253_spill] sm:$0xff] }
 0x36b   : > { %v2479_v32 = vsel %vm2436_vm3, %v1771_v19, %v2411_v26  ;;  %v746_v53 = vmul.f32 %v4945_v7, %v6699_v10  ;;  %v749_v27 = vmul.f32 %v4945_v7, %v6700_v39  ;;  %v2542_v60 = vsel %vm2435_vm4, %v1128_v57, %v2476_v29  ;;  %v2273_v54 = vpop.permute.xlu1 %2272  ;;  %v2285_v61 = vpop.permute.xlu0 %2284  ;;  %v6719_v46 = vld [vmem:[#allocation98_spill] sm:$0xff]  ;;  %v6720_v29 = vld [vmem:[#allocation107_spill] sm:$0xff] }
 0x36c   : > { %v2545_v0 = vsel %vm2435_vm4, %v1131_v17, %v2479_v32  ;;  %v1770_v5 = vadd.f32 %v6701_v6, %v1450_v47  ;;  %v1773_v43 = vadd.f32 %v6702_v51, %v1453_v18  ;;  %2607 = vst.msk [vmem:[%s4973_s7 + $0x128] sm:$0xff] %vm2569_vm5, %v2542_v60  ;;  %v2410_v40 = vadd.f32 %v2273_v54, %v2090_v15  ;;  %v6721_v60 = vld [vmem:[#allocation201_spill] sm:$0xff]  ;;  %v6722_v54 = vld [vmem:[#allocation204_spill] sm:$0xff] }
 0x36d   : > { %2610 = vst.msk [vmem:[%s4973_s7 + $0x140] sm:$0xff] %vm2569_vm5, %v2545_v0  ;;  %v2413_v35 = vadd.f32 %v2285_v61, %v2093_v30  ;;  %v1130_v34 = vadd.f32 %v6703_v63, %v746_v53  ;;  %v1133_v25 = vadd.f32 %v6704_v23, %v749_v27  ;;  %v1452_v59 = vmul.f32 %v4945_v7, %v6705_v37  ;;  %v6723_v51 = vld [vmem:[#allocation168_spill] sm:$0xff]  ;;  %v6726_v23 = vld [vmem:[#allocation77_spill] sm:$0xff]  ;;  %v6727_v37 = vld [vmem:[#allocation254_spill] sm:$0xff] }
 0x36e   : > { %v1455_v11 = vmul.f32 %v4945_v7, %v6706_v4  ;;  %v2092_v31 = vmul.f32 %v4945_v7, %v6707_v3  ;;  %v2095_v45 = vmul.f32 %v4945_v7, %v6708_v62  ;;  %v2478_v44 = vsel %vm2436_vm3, %v1770_v5, %v2410_v40  ;;  %v6724_v40 = vld [vmem:[#allocation173_spill] sm:$0xff]  ;;  %v6725_v63 = vld [vmem:[#allocation68_spill] sm:$0xff]  ;;  %v6728_v4 = vld [vmem:[#allocation255_spill] sm:$0xff] }
 0x36f   : > { %v2481_v2 = vsel %vm2436_vm3, %v1773_v43, %v2413_v35  ;;  %v748_v16 = vmul.f32 %v4945_v7, %v6709_v8  ;;  %v751_v48 = vmul.f32 %v4945_v7, %v6710_v50  ;;  %v2544_v38 = vsel %vm2435_vm4, %v1130_v34, %v2478_v44  ;;  %v2281_v14 = vpop.permute.xlu1 %2280  ;;  %v2293_v12 = vpop.permute.xlu0 %2292  ;;  %v6729_v62 = vld [vmem:[#allocation102_spill] sm:$0xff]  ;;  %v6730_v44 = vld [vmem:[#allocation111_spill] sm:$0xff] }
 0x370   : > { %v2547_v13 = vsel %vm2435_vm4, %v1133_v25, %v2481_v2  ;;  %v1772_v56 = vadd.f32 %v6711_v55, %v1452_v59  ;;  %v1775_v41 = vadd.f32 %v6712_v9, %v1455_v11  ;;  %2609 = vst.msk [vmem:[%s4973_s7 + $0x138] sm:$0xff] %vm2569_vm5, %v2544_v38  ;;  %v2412_v22 = vadd.f32 %v2281_v14, %v2092_v31  ;;  %v6731_v38 = vld [vmem:[#allocation203_spill] sm:$0xff]  ;;  %v6732_v14 = vld [vmem:[#allocation206_spill] sm:$0xff] }
 0x371   : > { %2612 = vst.msk [vmem:[%s4973_s7 + $0x150] sm:$0xff] %vm2569_vm5, %v2547_v13  ;;  %v2415_v21 = vadd.f32 %v2293_v12, %v2095_v45  ;;  %v1132_v19 = vadd.f32 %v6713_v52, %v748_v16  ;;  %v1135_v26 = vadd.f32 %v6714_v33, %v751_v48  ;;  %v1454_v57 = vmul.f32 %v4945_v7, %v6715_v58  ;;  %v6733_v9 = vld [vmem:[#allocation170_spill] sm:$0xff]  ;;  %v6735_v52 = vld [vmem:[#allocation72_spill] sm:$0xff]  ;;  %v6736_v33 = vld [vmem:[#allocation81_spill] sm:$0xff] }
 0x372   : > { %v1457_v17 = vmul.f32 %v4945_v7, %v6716_v1  ;;  %v2094_v47 = vmul.f32 %v4945_v7, %v6717_v36  ;;  %v2097_v18 = vmul.f32 %v4945_v7, %v6718_v42  ;;  %v2480_v49 = vsel %vm2436_vm3, %v1772_v56, %v2412_v22  ;;  %v6734_v22 = vld [vmem:[#allocation175_spill] sm:$0xff]  ;;  %v6737_v58 = vld [vmem:[#allocation256_spill] sm:$0xff]  ;;  %v6738_v1 = vld [vmem:[#allocation257_spill] sm:$0xff] }
 0x373   : > { %v2483_v15 = vsel %vm2436_vm3, %v1775_v41, %v2415_v21  ;;  %v750_v30 = vmul.f32 %v4945_v7, %v6719_v46  ;;  %v753_v32 = vmul.f32 %v4945_v7, %v6720_v29  ;;  %v2546_v10 = vsel %vm2435_vm4, %v1132_v19, %v2480_v49  ;;  %v2289_v39 = vpop.permute.xlu1 %2288  ;;  %v2301_v27 = vpop.permute.xlu0 %2300  ;;  %v6739_v42 = vld [vmem:[#allocation106_spill] sm:$0xff]  ;;  %v6740_v49 = vld [vmem:[#allocation115_spill] sm:$0xff] }
 0x374   : > { %v2549_v53 = vsel %vm2435_vm4, %v1135_v26, %v2483_v15  ;;  %v1774_v0 = vadd.f32 %v6721_v60, %v1454_v57  ;;  %v1777_v61 = vadd.f32 %v6722_v54, %v1457_v17  ;;  %2611 = vst.msk [vmem:[%s4973_s7 + $0x148] sm:$0xff] %vm2569_vm5, %v2546_v10  ;;  %v2414_v6 = vadd.f32 %v2289_v39, %v2094_v47  ;;  %v6741_v10 = vld [vmem:[#allocation205_spill] sm:$0xff]  ;;  %v6742_v39 = vld [vmem:[#allocation208_spill] sm:$0xff] }
 0x375   : > { %2614 = vst.msk [vmem:[%s4973_s7 + $0x160] sm:$0xff] %vm2569_vm5, %v2549_v53  ;;  %v2417_v5 = vadd.f32 %v2301_v27, %v2097_v18  ;;  %v1134_v43 = vadd.f32 %v6723_v51, %v750_v30  ;;  %v1137_v35 = vadd.f32 %v6724_v40, %v753_v32  ;;  %v1456_v34 = vmul.f32 %v4945_v7, %v6725_v63  ;;  %v6743_v54 = vld [vmem:[#allocation172_spill] sm:$0xff]  ;;  %v6746_v40 = vld [vmem:[#allocation85_spill] sm:$0xff]  ;;  %v6747_v63 = vld [vmem:[#allocation258_spill] sm:$0xff] }
 0x376   : > { %v1459_v25 = vmul.f32 %v4945_v7, %v6726_v23  ;;  %v2096_v59 = vmul.f32 %v4945_v7, %v6727_v37  ;;  %v2099_v11 = vmul.f32 %v4945_v7, %v6728_v4  ;;  %v2482_v3 = vsel %vm2436_vm3, %v1774_v0, %v2414_v6  ;;  %v6744_v6 = vld [vmem:[#allocation177_spill] sm:$0xff]  ;;  %v6745_v51 = vld [vmem:[#allocation76_spill] sm:$0xff]  ;;  %v6748_v23 = vld [vmem:[#allocation259_spill] sm:$0xff] }
 0x377   : > { %v2485_v31 = vsel %vm2436_vm3, %v1777_v61, %v2417_v5  ;;  %v752_v45 = vmul.f32 %v4945_v7, %v6729_v62  ;;  %v755_v2 = vmul.f32 %v4945_v7, %v6730_v44  ;;  %v2548_v8 = vsel %vm2435_vm4, %v1134_v43, %v2482_v3  ;;  %v2297_v50 = vpop.permute.xlu1 %2296  ;;  %v2309_v48 = vpop.permute.xlu0 %2308  ;;  %v6749_v4 = vld [vmem:[#allocation110_spill] sm:$0xff]  ;;  %v6750_v3 = vld [vmem:[#allocation119_spill] sm:$0xff] }
 0x378   : > { %v2551_v16 = vsel %vm2435_vm4, %v1137_v35, %v2485_v31  ;;  %v1776_v13 = vadd.f32 %v6731_v38, %v1456_v34  ;;  %v1779_v12 = vadd.f32 %v6732_v14, %v1459_v25  ;;  %2613 = vst.msk [vmem:[%s4973_s7 + $0x158] sm:$0xff] %vm2569_vm5, %v2548_v8  ;;  %v2416_v55 = vadd.f32 %v2297_v50, %v2096_v59  ;;  %v6751_v8 = vld [vmem:[#allocation207_spill] sm:$0xff]  ;;  %v6752_v50 = vld [vmem:[#allocation210_spill] sm:$0xff] }
 0x379   : > { %2616 = vst.msk [vmem:[%s4973_s7 + $0x170] sm:$0xff] %vm2569_vm5, %v2551_v16  ;;  %v2419_v56 = vadd.f32 %v2309_v48, %v2099_v11  ;;  %v1136_v41 = vadd.f32 %v6733_v9, %v752_v45  ;;  %v1139_v21 = vadd.f32 %v6734_v22, %v755_v2  ;;  %v1458_v19 = vmul.f32 %v4945_v7, %v6735_v52  ;;  %v6753_v14 = vld [vmem:[#allocation174_spill] sm:$0xff]  ;;  %v6755_v9 = vld [vmem:[#allocation80_spill] sm:$0xff]  ;;  %v6756_v22 = vld [vmem:[#allocation89_spill] sm:$0xff] }
 0x37a   : > { %v1461_v26 = vmul.f32 %v4945_v7, %v6736_v33  ;;  %v2098_v57 = vmul.f32 %v4945_v7, %v6737_v58  ;;  %v2101_v17 = vmul.f32 %v4945_v7, %v6738_v1  ;;  %v2484_v36 = vsel %vm2436_vm3, %v1776_v13, %v2416_v55  ;;  %v6757_v52 = vld [vmem:[#allocation260_spill] sm:$0xff]  ;;  %v6758_v33 = vld [vmem:[#allocation261_spill] sm:$0xff]  ;;  %v6759_v1 = vld [vmem:[#allocation114_spill] sm:$0xff] }
 0x37b   : > { %v2487_v47 = vsel %vm2436_vm3, %v1779_v12, %v2419_v56  ;;  %v754_v18 = vmul.f32 %v4945_v7, %v6739_v42  ;;  %v757_v15 = vmul.f32 %v4945_v7, %v6740_v49  ;;  %v2550_v46 = vsel %vm2435_vm4, %v1136_v41, %v2484_v36  ;;  %v2305_v29 = vpop.permute.xlu1 %2304  ;;  %v2317_v32 = vpop.permute.xlu0 %2316  ;;  %v6754_v12 = vld [vmem:[#allocation179_spill] sm:$0xff] }
 0x37c   : > { %v2553_v30 = vsel %vm2435_vm4, %v1139_v21, %v2487_v47  ;;  %v1778_v53 = vadd.f32 %v6741_v10, %v1458_v19  ;;  %v1781_v27 = vadd.f32 %v6742_v39, %v1461_v26  ;;  %2615 = vst.msk [vmem:[%s4973_s7 + $0x168] sm:$0xff] %vm2569_vm5, %v2550_v46  ;;  %v2418_v60 = vadd.f32 %v2305_v29, %v2098_v57  ;;  %v5676_v56 = vld [vmem:[%s6064_s0] ss:$0 sm:$0xff]  ;;  %v6761_v46 = vld [vmem:[#allocation209_spill] sm:$0xff]  ;;  %v6762_v29 = vld [vmem:[#allocation212_spill] sm:$0xff] }
 0x37d   : > { %2618 = vst.msk [vmem:[%s4973_s7 + $0x180] sm:$0xff] %vm2569_vm5, %v2553_v30  ;;  %v2421_v0 = vadd.f32 %v2317_v32, %v2101_v17  ;;  %v1138_v61 = vadd.f32 %v6743_v54, %v754_v18  ;;  %v1141_v5 = vadd.f32 %v6744_v6, %v757_v15  ;;  %v1460_v43 = vmul.f32 %v4945_v7, %v6745_v51  ;;  %v6760_v36 = vld [vmem:[#allocation123_spill] sm:$0xff]  ;;  %v6763_v39 = vld [vmem:[#allocation176_spill] sm:$0xff]  ;;  %v6766_v6 = vld [vmem:[#allocation93_spill] sm:$0xff] }
 0x37e   : > { %v1463_v35 = vmul.f32 %v4945_v7, %v6746_v40  ;;  %v2100_v34 = vmul.f32 %v4945_v7, %v6747_v63  ;;  %v2103_v25 = vmul.f32 %v4945_v7, %v6748_v23  ;;  %v2486_v37 = vsel %vm2436_vm3, %v1778_v53, %v2418_v60  ;;  %v6764_v60 = vld [vmem:[#allocation181_spill] sm:$0xff]  ;;  %v6765_v54 = vld [vmem:[#allocation84_spill] sm:$0xff] }
 0x37f   : > { %v2489_v59 = vsel %vm2436_vm3, %v1781_v27, %v2421_v0  ;;  %v756_v11 = vmul.f32 %v4945_v7, %v6749_v4  ;;  %v759_v31 = vmul.f32 %v4945_v7, %v6750_v3  ;;  %v2552_v62 = vsel %vm2435_vm4, %v1138_v61, %v2486_v37  ;;  %v2313_v44 = vpop.permute.xlu1 %2312  ;;  %v2325_v2 = vpop.permute.xlu0 %2324  ;;  %v6770_v3 = vld [vmem:[#allocation211_spill] sm:$0xff] }
 0x380   : > { %v2555_v45 = vsel %vm2435_vm4, %v1141_v5, %v2489_v59  ;;  %v1780_v16 = vadd.f32 %v6751_v8, %v1460_v43  ;;  %v1783_v48 = vadd.f32 %v6752_v50, %v1463_v35  ;;  %2617 = vst.msk [vmem:[%s4973_s7 + $0x178] sm:$0xff] %vm2569_vm5, %v2552_v62  ;;  %v2420_v38 = vadd.f32 %v2313_v44, %v2100_v34  ;;  %v6767_v43 = vld [vmem:[#allocation262_spill] sm:$0xff] }
 0x381   : > { %2620 = vst.msk [vmem:[%s4973_s7 + $0x190] sm:$0xff] %vm2569_vm5, %v2555_v45  ;;  %v2423_v13 = vadd.f32 %v2325_v2, %v2103_v25  ;;  %v1140_v7 = vadd.f32 %v6753_v14, %v756_v11  ;;  %v1143_v55 = vadd.f32 %v6754_v12, %v759_v31  ;;  %v1462_v41 = vmul.f32 %v5676_v56, %v6755_v9  ;;  %v6768_v34 = vld [vmem:[#allocation118_spill] sm:$0xff]  ;;  %v6769_v25 = vld [vmem:[#allocation127_spill] sm:$0xff]  ;;  %v6775_v14 = vld [vmem:[#allocation97_spill] sm:$0xff] }
 0x382   : > { %v1465_v21 = vmul.f32 %v5676_v56, %v6756_v22  ;;  %v2102_v19 = vmul.f32 %v5676_v56, %v6757_v52  ;;  %v2105_v26 = vmul.f32 %v5676_v56, %v6758_v33  ;;  %v2488_v58 = vsel %vm2436_vm3, %v1780_v16, %v2420_v38  ;;  %v6771_v62 = vld [vmem:[#allocation214_spill] sm:$0xff]  ;;  %v6774_v38 = vld [vmem:[#allocation88_spill] sm:$0xff]  ;;  %v6776_v12 = vld [vmem:[#allocation263_spill] sm:$0xff] }
 0x383   : > { %v2491_v57 = vsel %vm2436_vm3, %v1783_v48, %v2423_v13  ;;  %v758_v17 = vmul.f32 %v5676_v56, %v6759_v1  ;;  %v761_v47 = vmul.f32 %v5676_v56, %v6760_v36  ;;  %v2554_v42 = vsel %vm2435_vm4, %v1140_v7, %v2488_v58  ;;  %v2321_v49 = vpop.permute.xlu1 %2320  ;;  %v2333_v15 = vpop.permute.xlu0 %2332  ;;  %v6772_v8 = vld [vmem:[#allocation178_spill] sm:$0xff]  ;;  %v6777_v9 = vld [vmem:[#allocation264_spill] sm:$0xff]  ;;  %v6779_v33 = vld [vmem:[#allocation131_spill] sm:$0xff] }
 0x384   : > { %v2557_v18 = vsel %vm2435_vm4, %v1143_v55, %v2491_v57  ;;  %v1782_v30 = vadd.f32 %v6761_v46, %v1462_v41  ;;  %v1785_v32 = vadd.f32 %v6762_v29, %v1465_v21  ;;  %2619 = vst.msk [vmem:[%s4973_s7 + $0x188] sm:$0xff] %vm2569_vm5, %v2554_v42  ;;  %v2422_v10 = vadd.f32 %v2321_v49, %v2102_v19  ;;  %v6773_v50 = vld [vmem:[#allocation182_spill] sm:$0xff]  ;;  %v6780_v36 = vld [vmem:[#allocation213_spill] sm:$0xff]  ;;  %v6781_v42 = vld [vmem:[#allocation216_spill] sm:$0xff] }
 0x385   : > { %2622 = vst.msk [vmem:[%s4973_s7 + $0x1a0] sm:$0xff] %vm2569_vm5, %v2557_v18  ;;  %v2425_v53 = vadd.f32 %v2333_v15, %v2105_v26  ;;  %v1142_v27 = vadd.f32 %v6763_v39, %v758_v17  ;;  %v1145_v0 = vadd.f32 %v6764_v60, %v761_v47  ;;  %v1464_v61 = vmul.f32 %v5676_v56, %v6765_v54  ;;  %v6778_v52 = vld [vmem:[#allocation122_spill] sm:$0xff]  ;;  %v6782_v46 = vld [vmem:[#allocation180_spill] sm:$0xff]  ;;  %v6785_v39 = vld [vmem:[#allocation101_spill] sm:$0xff] }
 0x386   : > { %v1467_v5 = vmul.f32 %v5676_v56, %v6766_v6  ;;  %v2104_v51 = vmul.f32 %v5676_v56, %v4915_v24  ;;  %v2107_v40 = vmul.f32 %v5676_v56, %v6767_v43  ;;  %v2490_v35 = vsel %vm2436_vm3, %v1782_v30, %v2422_v10  ;;  %v6783_v29 = vld [vmem:[#allocation4_spill] sm:$0xff]  ;;  %v6786_v60 = vld [vmem:[#allocation265_spill] sm:$0xff]  ;;  %v6787_v54 = vld [vmem:[#allocation266_spill] sm:$0xff] }
 0x387   : > { %v2493_v63 = vsel %vm2436_vm3, %v1785_v32, %v2425_v53  ;;  %v760_v23 = vmul.f32 %v5676_v56, %v6768_v34  ;;  %v763_v37 = vmul.f32 %v5676_v56, %v6769_v25  ;;  %v2556_v59 = vsel %vm2435_vm4, %v1142_v27, %v2490_v35  ;;  %v2329_v4 = vpop.permute.xlu1 %2328  ;;  %v2341_v11 = vpop.permute.xlu0 %2340  ;;  %v6784_v10 = vld [vmem:[#allocation92_spill] sm:$0xff] }
 0x388   : > { %v2559_v24 = vsel %vm2435_vm4, %v1145_v0, %v2493_v63  ;;  %v1784_v31 = vadd.f32 %v6770_v3, %v1464_v61  ;;  %v1787_v45 = vadd.f32 %v6771_v62, %v1467_v5  ;;  %2621 = vst.msk [vmem:[%s4973_s7 + $0x198] sm:$0xff] %vm2569_vm5, %v2556_v59  ;;  %v2424_v44 = vadd.f32 %v2329_v4, %v2104_v51  ;;  %v6788_v51 = vld [vmem:[#allocation126_spill] sm:$0xff] }
 0x389   : > { %2624 = vst.msk [vmem:[%s4973_s7 + $0x1b0] sm:$0xff] %vm2569_vm5, %v2559_v24  ;;  %v2427_v2 = vadd.f32 %v2341_v11, %v2107_v40  ;;  %v1144_v16 = vadd.f32 %v6772_v8, %v760_v23  ;;  %v1147_v48 = vadd.f32 %v6773_v50, %v763_v37  ;;  %v1466_v13 = vmul.f32 %v5676_v56, %v6774_v38  ;;  %v6789_v40 = vld [vmem:[#allocation134_spill] sm:$0xff]  ;;  %v6790_v37 = vld [vmem:[#allocation215_spill] sm:$0xff] }
 0x38a   : > { %v1469_v7 = vmul.f32 %v5676_v56, %v6775_v14  ;;  %v2106_v55 = vmul.f32 %v5676_v56, %v6776_v12  ;;  %v2109_v41 = vmul.f32 %v5676_v56, %v6777_v9  ;;  %v2492_v22 = vsel %vm2436_vm3, %v1784_v31, %v2424_v44  ;;  %v6791_v24 = vld [vmem:[#allocation218_spill] sm:$0xff]  ;;  %v6792_v31 = vld [vmem:[#allocation3_spill] sm:$0xff] }
 0x38b   : > { %v2495_v21 = vsel %vm2436_vm3, %v1787_v45, %v2427_v2  ;;  %v762_v19 = vmul.f32 %v5676_v56, %v6778_v52  ;;  %v765_v26 = vmul.f32 %v5676_v56, %v6779_v33  ;;  %v2558_v58 = vsel %vm2435_vm4, %v1144_v16, %v2492_v22  ;;  %v2337_v1 = vpop.permute.xlu1 %2336  ;;  %v2349_v17 = vpop.permute.xlu0 %2348  ;;  %v6793_v45 = vld [vmem:[#allocation6_spill] sm:$0xff]  ;;  %v6794_v2 = vld [vmem:[#allocation96_spill] sm:$0xff]  ;;  %v6795_v16 = vld [vmem:[#allocation105_spill] sm:$0xff] }
 0x38c   : > { %v2561_v57 = vsel %vm2435_vm4, %v1147_v48, %v2495_v21  ;;  %v1786_v47 = vadd.f32 %v6780_v36, %v1466_v13  ;;  %v1789_v18 = vadd.f32 %v6781_v42, %v1469_v7  ;;  %2623 = vst.msk [vmem:[%s4973_s7 + $0x1a8] sm:$0xff] %vm2569_vm5, %v2558_v58  ;;  %v2426_v49 = vadd.f32 %v2337_v1, %v2106_v55  ;;  %v6796_v48 = vld [vmem:[#allocation267_spill] sm:$0xff]  ;;  %v6797_v13 = vld [vmem:[#allocation268_spill] sm:$0xff]  ;;  %v6798_v55 = vld [vmem:[#allocation130_spill] sm:$0xff] }
 0x38d   : > { %2626 = vst.msk [vmem:[%s4973_s7 + $0x1c0] sm:$0xff] %vm2569_vm5, %v2561_v57  ;;  %v2429_v15 = vadd.f32 %v2349_v17, %v2109_v41  ;;  %v1146_v30 = vadd.f32 %v6782_v46, %v762_v19  ;;  %v1149_v32 = vadd.f32 %v6783_v29, %v765_v26  ;;  %v1468_v53 = vmul.f32 %v5676_v56, %v6784_v10  ;;  %v6799_v41 = vld [vmem:[#allocation136_spill] sm:$0xff]  ;;  %v6800_v26 = vld [vmem:[#allocation217_spill] sm:$0xff] }
 0x38e   : > { %v1471_v27 = vmul.f32 %v5676_v56, %v6785_v39  ;;  %v2108_v0 = vmul.f32 %v5676_v56, %v6786_v60  ;;  %v2111_v61 = vmul.f32 %v5676_v56, %v6787_v54  ;;  %v2494_v6 = vsel %vm2436_vm3, %v1786_v47, %v2426_v49  ;;  %v6801_v57 = vld [vmem:[#allocation220_spill] sm:$0xff]  ;;  %v6802_v47 = vld [vmem:[#allocation5_spill] sm:$0xff]  ;;  %v6807_v54 = vld [vmem:[#allocation219_spill] sm:$0xff] }
 0x38f   : > { %v2497_v5 = vsel %vm2436_vm3, %v1789_v18, %v2429_v15  ;;  %v764_v43 = vmul.f32 %v5676_v56, %v6788_v51  ;;  %v767_v35 = vmul.f32 %v5676_v56, %v6789_v40  ;;  %v2560_v63 = vsel %vm2435_vm4, %v1146_v30, %v2494_v6  ;;  %v2345_v23 = vpop.permute.xlu1 %2344  ;;  %v2357_v25 = vpop.permute.xlu0 %2356  ;;  %v6803_v18 = vld [vmem:[#allocation8_spill] sm:$0xff]  ;;  %v6805_v30 = vld [vmem:[#allocation15_spill] sm:$0xff] }
 0x390   : > { %v2563_v34 = vsel %vm2435_vm4, %v1149_v32, %v2497_v5  ;;  %v1788_v59 = vadd.f32 %v6790_v37, %v1468_v53  ;;  %v1791_v4 = vadd.f32 %v6791_v24, %v1471_v27  ;;  %2625 = vst.msk [vmem:[%s4973_s7 + $0x1b8] sm:$0xff] %vm2569_vm5, %v2560_v63  ;;  %v2428_v11 = vadd.f32 %v2345_v23, %v2108_v0  ;;  %v6804_v15 = vld [vmem:[#allocation100_spill] sm:$0xff]  ;;  %v6806_v53 = vld [vmem:[#allocation133_spill] sm:$0xff]  ;;  %v6808_v5 = vld [vmem:[#allocation7_spill] sm:$0xff] }
 0x391   : > { %2628 = vst.msk [vmem:[%s4973_s7 + $0x1d0] sm:$0xff] %vm2569_vm5, %v2563_v34  ;;  %v2431_v3 = vadd.f32 %v2357_v25, %v2111_v61  ;;  %v1148_v62 = vadd.f32 %v6792_v31, %v764_v43  ;;  %v1151_v44 = vadd.f32 %v6793_v45, %v767_v35  ;;  %v1470_v8 = vmul.f32 %v5676_v56, %v6794_v2  ;;  %v6809_v43 = vld [vmem:[#allocation104_spill] sm:$0xff]  ;;  %v6810_v34 = vld [vmem:[#allocation135_spill] sm:$0xff] }
 0x392   : > { %v1473_v50 = vmul.f32 %v5676_v56, %v6795_v16  ;;  %v2110_v38 = vmul.f32 %v5676_v56, %v6796_v48  ;;  %v2113_v14 = vmul.f32 %v5676_v56, %v6797_v13  ;;  %v2496_v7 = vsel %vm2436_vm3, %v1788_v59, %v2428_v11  ;;  %v6811_v59 = vld [vmem:[#allocation221_spill] sm:$0xff] }
 0x393   : > { %v2499_v12 = vsel %vm2436_vm3, %v1791_v4, %v2431_v3  ;;  %v766_v9 = vmul.f32 %v5676_v56, %v6798_v55  ;;  %v769_v22 = vmul.f32 %v5676_v56, %v6799_v41  ;;  %v2562_v21 = vsel %vm2435_vm4, %v1148_v62, %v2496_v7  ;;  %v2353_v19 = vpop.permute.xlu1 %2352  ;;  %v2365_v33 = vpop.permute.xlu0 %2364  ;;  %v6812_v11 = vld [vmem:[#allocation9_spill] sm:$0xff] }
 0x394   : > { %v2565_v52 = vsel %vm2435_vm4, %v1151_v44, %v2499_v12  ;;  %v1790_v58 = vadd.f32 %v6800_v26, %v1470_v8  ;;  %v1793_v1 = vadd.f32 %v6801_v57, %v1473_v50  ;;  %2627 = vst.msk [vmem:[%s4973_s7 + $0x1c8] sm:$0xff] %vm2569_vm5, %v2562_v21  ;;  %v2430_v17 = vadd.f32 %v2353_v19, %v2110_v38 }
 0x395   : > { %2630 = vst.msk [vmem:[%s4973_s7 + $0x1e0] sm:$0xff] %vm2569_vm5, %v2565_v52  ;;  %v2433_v36 = vadd.f32 %v2365_v33, %v2113_v14  ;;  %v1150_v42 = vadd.f32 %v6802_v47, %v766_v9  ;;  %v1153_v49 = vadd.f32 %v6803_v18, %v769_v22  ;;  %v1472_v46 = vmul.f32 %v5676_v56, %v6804_v15 }
 0x396   : > { %v2112_v29 = vmul.f32 %v5676_v56, %v6805_v30  ;;  %v2498_v32 = vsel %vm2436_vm3, %v1790_v58, %v2430_v17  ;;  %v768_v39 = vmul.f32 %v5676_v56, %v6806_v53  ;;  %v1474_v40 = vmul.f32 %v5676_v56, %v6809_v43 }
 0x397   : > { %v2501_v10 = vsel %vm2436_vm3, %v1793_v1, %v2433_v36  ;;  %v2564_v27 = vsel %vm2435_vm4, %v1150_v42, %v2498_v32  ;;  %v2361_v0 = vpop.permute.xlu1 %2360  ;;  %v1792_v61 = vadd.f32 %v6807_v54, %v1472_v46  ;;  %v2114_v35 = vmul.f32 %v5676_v56, %v4970_v20 }
 0x398   : > { %v2567_v60 = vsel %vm2435_vm4, %v1153_v49, %v2501_v10  ;;  %2629 = vst.msk [vmem:[%s4973_s7 + $0x1d8] sm:$0xff] %vm2569_vm5, %v2564_v27  ;;  %v2432_v6 = vadd.f32 %v2361_v0, %v2112_v29  ;;  %v1152_v51 = vadd.f32 %v6808_v5, %v768_v39  ;;  %v770_v23 = vmul.f32 %v5676_v56, %v6810_v34 }
 0x399   : > { %2632 = vst.msk [vmem:[%s4973_s7 + $0x1f0] sm:$0xff] %vm2569_vm5, %v2567_v60  ;;  %v1794_v24 = vadd.f32 %v6811_v59, %v1474_v40 }
 0x39a   : > { %v2500_v63 = vsel %vm2436_vm3, %v1792_v61, %v2432_v6  ;;  %v1154_v3 = vadd.f32 %v6812_v11, %v770_v23  ;;  %2640 = sbr.rel (!%p3507_p4) target bundleno = 1001 (0x3e9), region = 36 }
 0x39b   : > { %v2566_v25 = vsel %vm2435_vm4, %v1152_v51, %v2500_v63  ;;  %v2369_v37 = vpop.permute.xlu1 %2368 }
 0x39c   : > { %2631 = vst.msk [vmem:[%s4973_s7 + $0x1e8] sm:$0xff] %vm2569_vm5, %v2566_v25  ;;  %v2434_v4 = vadd.f32 %v2369_v37, %v2114_v35 }
 0x39e   : > { %v2502_v20 = vsel %vm2436_vm3, %v1794_v24, %v2434_v4 }
 0x39f   : > { %v2568_v31 = vsel %vm2435_vm4, %v1154_v3, %v2502_v20 }
 0x3a0   : > { %2633 = vst.msk [vmem:[%s4973_s7 + $0x1f8] sm:$0xff] %vm2569_vm5, %v2568_v31 }
 0x3a1   : > { %s6822_s10 = smov (!%p2643_p8, %s2642_s10), 64 }
 0x3a2   : > { %s3125_s18 = sshll.u32 %s6822_s10, 7 }
 0x3a3   : > { %p3128_p9 = scmp.eq.s32.totalorder %s3125_s18, 0 }
 0x3a4   : > { %s5871_s22 = sshrl.u32 (!%p3128_p9), %s6822_s10, 6 }
 0x3a5   : > { %2651 = sbr.rel (%p3128_p9) target bundleno = 1001 (0x3e9), region = 40  ;;  %p3129_p10 = scmp.le.s32.totalorder (!%p3128_p9), %s5871_s22, 0 }
 0x3ac   : > { %3063 = sbr.rel (%p3129_p10) target bundleno = 980 (0x3d4), region = 119  ;;  %s6813_s15 = smov (!%p3129_p10), %s5865_s17 }
 0x3ad   : > { %s6814_s20 = smov (!%p3129_p10), %s4973_s7  ;;  %s5880_s21 = smov (!%p3129_p10), 0  }
 0x3ae   : > { %s5882_s23 = smov (!%p3129_p10), 0  }
 0x3b3 LB: >> { %v2839_v28 = vld [vmem:[%s3433_s20] sm:$0xff]  ;;  %v2841_v56 = vld [vmem:[%s3433_s20 + $0x8] sm:$0xff]  ;;  %v2843_v62 = vld [vmem:[%s3433_s20 + $0x10] sm:$0xff]  ;;  %s2967_s24 = sadd.s32 1, %s3437_s21  ;;  %s2833_s23 = sadd.s32 1, %s3441_s23   ;;  %s3441_s23 = sphi %s5882_s23, %s2833_s23   ;;  %s3437_s21 = sphi %s5880_s21, %s6817_s21   ;;  %s3433_s20 = sphi %s6814_s20, %s6816_s20   ;;  %s3429_s15 = sphi %s6813_s15, %s6815_s15  }
 0x3b4   : >> { %2840 = vst [vmem:[%s3429_s15] sm:$0xff] %v2839_v28  ;;  %2842 = vst [vmem:[%s3429_s15 + $0x8] sm:$0xff] %v2841_v56  ;;  %v2845_v45 = vld [vmem:[%s3433_s20 + $0x18] sm:$0xff]  ;;  %v2847_v44 = vld [vmem:[%s3433_s20 + $0x20] sm:$0xff]  ;;  %p2968_p11 = scmp.ge.s32.totalorder %s2967_s24, %s5871_s22  ;;  %p2832_p12 = scmp.ge.s32.totalorder %s2833_s23, %s5871_s22 }
 0x3b5   : >> { %2844 = vst [vmem:[%s3429_s15 + $0x10] sm:$0xff] %v2843_v62  ;;  %v2849_v2 = vld [vmem:[%s3433_s20 + $0x28] sm:$0xff]  ;;  %2846 = vst [vmem:[%s3429_s15 + $0x18] sm:$0xff] %v2845_v45  ;;  %v2851_v8 = vld [vmem:[%s3433_s20 + $0x30] sm:$0xff] }
 0x3b6   : >> { %2848 = vst [vmem:[%s3429_s15 + $0x20] sm:$0xff] %v2847_v44  ;;  %2850 = vst [vmem:[%s3429_s15 + $0x28] sm:$0xff] %v2849_v2  ;;  %v2853_v16 = vld [vmem:[%s3433_s20 + $0x38] sm:$0xff]  ;;  %v2855_v50 = vld [vmem:[%s3433_s20 + $0x40] sm:$0xff]  ;;  %s6824_s24 = smov (%p2968_p11, %s2967_s24), 0 }
 0x3b7   : >> { %2852 = vst [vmem:[%s3429_s15 + $0x30] sm:$0xff] %v2851_v8  ;;  %2854 = vst [vmem:[%s3429_s15 + $0x38] sm:$0xff] %v2853_v16  ;;  %v2857_v48 = vld [vmem:[%s3433_s20 + $0x48] sm:$0xff]  ;;  %v2859_v38 = vld [vmem:[%s3433_s20 + $0x50] sm:$0xff]  ;;  %s3130_s25 = sshll.u32 %s6824_s24, 9  ;;  %s6817_s21 = smov %s6824_s24 }
 0x3b8   : >> { %2856 = vst [vmem:[%s3429_s15 + $0x40] sm:$0xff] %v2855_v50  ;;  %v2861_v13 = vld [vmem:[%s3433_s20 + $0x58] sm:$0xff]  ;;  %2858 = vst [vmem:[%s3429_s15 + $0x48] sm:$0xff] %v2857_v48  ;;  %v2863_v14 = vld [vmem:[%s3433_s20 + $0x60] sm:$0xff]  ;;  %s5938_s26 = scalar_lea.vmem %s4973_s7, %s3130_s25 [#allocation2]   ;;  %s5941_s27 = scalar_lea.vmem %s5865_s17, %s3130_s25  }
 0x3b9   : >> { %2860 = vst [vmem:[%s3429_s15 + $0x50] sm:$0xff] %v2859_v38  ;;  %2862 = vst [vmem:[%s3429_s15 + $0x58] sm:$0xff] %v2861_v13  ;;  %v2865_v7 = vld [vmem:[%s3433_s20 + $0x68] sm:$0xff]  ;;  %v2867_v12 = vld [vmem:[%s3433_s20 + $0x70] sm:$0xff] }
 0x3ba   : >> { %2864 = vst [vmem:[%s3429_s15 + $0x60] sm:$0xff] %v2863_v14  ;;  %2866 = vst [vmem:[%s3429_s15 + $0x68] sm:$0xff] %v2865_v7  ;;  %v2869_v55 = vld [vmem:[%s3433_s20 + $0x78] sm:$0xff]  ;;  %v2871_v9 = vld [vmem:[%s3433_s20 + $0x80] sm:$0xff] }
 0x3bb   : >> { %2868 = vst [vmem:[%s3429_s15 + $0x70] sm:$0xff] %v2867_v12  ;;  %v2873_v41 = vld [vmem:[%s3433_s20 + $0x88] sm:$0xff]  ;;  %2870 = vst [vmem:[%s3429_s15 + $0x78] sm:$0xff] %v2869_v55  ;;  %v2875_v22 = vld [vmem:[%s3433_s20 + $0x90] sm:$0xff] }
 0x3bc   : >> { %2872 = vst [vmem:[%s3429_s15 + $0x80] sm:$0xff] %v2871_v9  ;;  %2874 = vst [vmem:[%s3429_s15 + $0x88] sm:$0xff] %v2873_v41  ;;  %v2877_v21 = vld [vmem:[%s3433_s20 + $0x98] sm:$0xff]  ;;  %v2879_v52 = vld [vmem:[%s3433_s20 + $0xa0] sm:$0xff] }
 0x3bd   : >> { %2876 = vst [vmem:[%s3429_s15 + $0x90] sm:$0xff] %v2875_v22  ;;  %2878 = vst [vmem:[%s3429_s15 + $0x98] sm:$0xff] %v2877_v21  ;;  %v2881_v19 = vld [vmem:[%s3433_s20 + $0xa8] sm:$0xff]  ;;  %v2883_v33 = vld [vmem:[%s3433_s20 + $0xb0] sm:$0xff] }
 0x3be   : >> { %2880 = vst [vmem:[%s3429_s15 + $0xa0] sm:$0xff] %v2879_v52  ;;  %v2885_v26 = vld [vmem:[%s3433_s20 + $0xb8] sm:$0xff]  ;;  %2882 = vst [vmem:[%s3429_s15 + $0xa8] sm:$0xff] %v2881_v19  ;;  %v2887_v58 = vld [vmem:[%s3433_s20 + $0xc0] sm:$0xff] }
 0x3bf   : >> { %2884 = vst [vmem:[%s3429_s15 + $0xb0] sm:$0xff] %v2883_v33  ;;  %2886 = vst [vmem:[%s3429_s15 + $0xb8] sm:$0xff] %v2885_v26  ;;  %v2889_v57 = vld [vmem:[%s3433_s20 + $0xc8] sm:$0xff]  ;;  %v2891_v1 = vld [vmem:[%s3433_s20 + $0xd0] sm:$0xff] }
 0x3c0   : >> { %2888 = vst [vmem:[%s3429_s15 + $0xc0] sm:$0xff] %v2887_v58  ;;  %2890 = vst [vmem:[%s3429_s15 + $0xc8] sm:$0xff] %v2889_v57  ;;  %v2893_v17 = vld [vmem:[%s3433_s20 + $0xd8] sm:$0xff]  ;;  %v2895_v36 = vld [vmem:[%s3433_s20 + $0xe0] sm:$0xff] }
 0x3c1   : >> { %2892 = vst [vmem:[%s3429_s15 + $0xd0] sm:$0xff] %v2891_v1  ;;  %v2897_v47 = vld [vmem:[%s3433_s20 + $0xe8] sm:$0xff]  ;;  %2894 = vst [vmem:[%s3429_s15 + $0xd8] sm:$0xff] %v2893_v17  ;;  %v2899_v42 = vld [vmem:[%s3433_s20 + $0xf0] sm:$0xff] }
 0x3c2   : >> { %2896 = vst [vmem:[%s3429_s15 + $0xe0] sm:$0xff] %v2895_v36  ;;  %2898 = vst [vmem:[%s3429_s15 + $0xe8] sm:$0xff] %v2897_v47  ;;  %v2901_v18 = vld [vmem:[%s3433_s20 + $0xf8] sm:$0xff]  ;;  %v2903_v49 = vld [vmem:[%s3433_s20 + $0x100] sm:$0xff] }
 0x3c3   : >> { %2900 = vst [vmem:[%s3429_s15 + $0xf0] sm:$0xff] %v2899_v42  ;;  %2902 = vst [vmem:[%s3429_s15 + $0xf8] sm:$0xff] %v2901_v18  ;;  %v2905_v15 = vld [vmem:[%s3433_s20 + $0x108] sm:$0xff]  ;;  %v2907_v46 = vld [vmem:[%s3433_s20 + $0x110] sm:$0xff] }
 0x3c4   : >> { %2904 = vst [vmem:[%s3429_s15 + $0x100] sm:$0xff] %v2903_v49  ;;  %v2909_v30 = vld [vmem:[%s3433_s20 + $0x118] sm:$0xff]  ;;  %2906 = vst [vmem:[%s3429_s15 + $0x108] sm:$0xff] %v2905_v15  ;;  %v2911_v29 = vld [vmem:[%s3433_s20 + $0x120] sm:$0xff] }
 0x3c5   : >> { %2908 = vst [vmem:[%s3429_s15 + $0x110] sm:$0xff] %v2907_v46  ;;  %2910 = vst [vmem:[%s3429_s15 + $0x118] sm:$0xff] %v2909_v30  ;;  %v2913_v32 = vld [vmem:[%s3433_s20 + $0x128] sm:$0xff]  ;;  %v2915_v10 = vld [vmem:[%s3433_s20 + $0x130] sm:$0xff] }
 0x3c6   : >> { %2912 = vst [vmem:[%s3429_s15 + $0x120] sm:$0xff] %v2911_v29  ;;  %2914 = vst [vmem:[%s3429_s15 + $0x128] sm:$0xff] %v2913_v32  ;;  %v2917_v53 = vld [vmem:[%s3433_s20 + $0x138] sm:$0xff]  ;;  %v2919_v39 = vld [vmem:[%s3433_s20 + $0x140] sm:$0xff] }
 0x3c7   : >> { %2916 = vst [vmem:[%s3429_s15 + $0x130] sm:$0xff] %v2915_v10  ;;  %v2921_v27 = vld [vmem:[%s3433_s20 + $0x148] sm:$0xff]  ;;  %2918 = vst [vmem:[%s3429_s15 + $0x138] sm:$0xff] %v2917_v53  ;;  %v2923_v60 = vld [vmem:[%s3433_s20 + $0x150] sm:$0xff] }
 0x3c8   : >> { %2920 = vst [vmem:[%s3429_s15 + $0x140] sm:$0xff] %v2919_v39  ;;  %2922 = vst [vmem:[%s3429_s15 + $0x148] sm:$0xff] %v2921_v27  ;;  %v2925_v0 = vld [vmem:[%s3433_s20 + $0x158] sm:$0xff]  ;;  %v2927_v54 = vld [vmem:[%s3433_s20 + $0x160] sm:$0xff] }
 0x3c9   : >> { %2924 = vst [vmem:[%s3429_s15 + $0x150] sm:$0xff] %v2923_v60  ;;  %2926 = vst [vmem:[%s3429_s15 + $0x158] sm:$0xff] %v2925_v0  ;;  %v2929_v61 = vld [vmem:[%s3433_s20 + $0x168] sm:$0xff]  ;;  %v2931_v6 = vld [vmem:[%s3433_s20 + $0x170] sm:$0xff] }
 0x3ca   : >> { %2928 = vst [vmem:[%s3429_s15 + $0x160] sm:$0xff] %v2927_v54  ;;  %v2933_v5 = vld [vmem:[%s3433_s20 + $0x178] sm:$0xff]  ;;  %2930 = vst [vmem:[%s3429_s15 + $0x168] sm:$0xff] %v2929_v61  ;;  %v2935_v51 = vld [vmem:[%s3433_s20 + $0x180] sm:$0xff] }
 0x3cb   : >> { %2932 = vst [vmem:[%s3429_s15 + $0x170] sm:$0xff] %v2931_v6  ;;  %2934 = vst [vmem:[%s3429_s15 + $0x178] sm:$0xff] %v2933_v5  ;;  %v2937_v43 = vld [vmem:[%s3433_s20 + $0x188] sm:$0xff]  ;;  %v2939_v40 = vld [vmem:[%s3433_s20 + $0x190] sm:$0xff] }
 0x3cc   : >> { %2936 = vst [vmem:[%s3429_s15 + $0x180] sm:$0xff] %v2935_v51  ;;  %2938 = vst [vmem:[%s3429_s15 + $0x188] sm:$0xff] %v2937_v43  ;;  %v2941_v35 = vld [vmem:[%s3433_s20 + $0x198] sm:$0xff]  ;;  %v2943_v63 = vld [vmem:[%s3433_s20 + $0x1a0] sm:$0xff] }
 0x3cd   : >> { %2940 = vst [vmem:[%s3429_s15 + $0x190] sm:$0xff] %v2939_v40  ;;  %v2945_v34 = vld [vmem:[%s3433_s20 + $0x1a8] sm:$0xff]  ;;  %2942 = vst [vmem:[%s3429_s15 + $0x198] sm:$0xff] %v2941_v35  ;;  %v2947_v23 = vld [vmem:[%s3433_s20 + $0x1b0] sm:$0xff]  ;;  %2835 = sbr.rel (!%p2832_p12) target bundleno = 947 (0x3b3), region = 125 }
 0x3ce   : >> { %2944 = vst [vmem:[%s3429_s15 + $0x1a0] sm:$0xff] %v2943_v63  ;;  %2946 = vst [vmem:[%s3429_s15 + $0x1a8] sm:$0xff] %v2945_v34  ;;  %v2949_v25 = vld [vmem:[%s3433_s20 + $0x1b8] sm:$0xff]  ;;  %v2951_v37 = vld [vmem:[%s3433_s20 + $0x1c0] sm:$0xff] }
 0x3cf   : >> { %2948 = vst [vmem:[%s3429_s15 + $0x1b0] sm:$0xff] %v2947_v23  ;;  %2950 = vst [vmem:[%s3429_s15 + $0x1b8] sm:$0xff] %v2949_v25  ;;  %v2953_v59 = vld [vmem:[%s3433_s20 + $0x1c8] sm:$0xff]  ;;  %v2955_v24 = vld [vmem:[%s3433_s20 + $0x1d0] sm:$0xff] }
 0x3d0   : >> { %2952 = vst [vmem:[%s3429_s15 + $0x1c0] sm:$0xff] %v2951_v37  ;;  %v2957_v4 = vld [vmem:[%s3433_s20 + $0x1d8] sm:$0xff]  ;;  %2954 = vst [vmem:[%s3429_s15 + $0x1c8] sm:$0xff] %v2953_v59  ;;  %v2959_v11 = vld [vmem:[%s3433_s20 + $0x1e0] sm:$0xff] }
 0x3d1   : >> { %2956 = vst [vmem:[%s3429_s15 + $0x1d0] sm:$0xff] %v2955_v24  ;;  %2958 = vst [vmem:[%s3429_s15 + $0x1d8] sm:$0xff] %v2957_v4  ;;  %v2961_v3 = vld [vmem:[%s3433_s20 + $0x1e8] sm:$0xff]  ;;  %v2963_v20 = vld [vmem:[%s3433_s20 + $0x1f0] sm:$0xff] }
 0x3d2   : >> { %2960 = vst [vmem:[%s3429_s15 + $0x1e0] sm:$0xff] %v2959_v11  ;;  %2962 = vst [vmem:[%s3429_s15 + $0x1e8] sm:$0xff] %v2961_v3  ;;  %v2965_v31 = vld [vmem:[%s3433_s20 + $0x1f8] sm:$0xff]  ;;  %s6816_s20 = smov %s5938_s26 }
 0x3d3   : >> { %2964 = vst [vmem:[%s3429_s15 + $0x1f0] sm:$0xff] %v2963_v20  ;;  %2966 = vst [vmem:[%s3429_s15 + $0x1f8] sm:$0xff] %v2965_v31  ;;  %s6815_s15 = smov %s5941_s27 }
 0x3d4 PF: > { %s6046_s28 = sand.u32 63, %s6822_s10   ;;  %s3141_s29 = sshll.u32 %s5871_s22, 9 }
 0x3d5   : > { %s2978_s30 = scalar_lea.vmem %s4973_s7, %s3141_s29 [#allocation2]   ;;  %s2980_s4 = scalar_lea.vmem %s5865_s17, %s3141_s29  }
 0x3d6   : > { %p3135_p13 = scmp.le.s32.totalorder %s6046_s28, 0 }
 0x3d7   : > { %s3443_s5 = smov (!%p3135_p13), %s2980_s4   ;;  %s3447_s6 = smov (!%p3135_p13), %s2978_s30  }
 0x3d8   : > { %3077 = sbr.rel (%p3135_p13) target bundleno = 1001 (0x3e9), region = 130  ;;  %s3451_s8 = smov (!%p3135_p13), 0  }
 0x3d9   : > { %s3455_s9 = smov (!%p3135_p13), 0  }
 0x3df LB: >> { %v2990_v28 = vld [vmem:[%s3449_s6] sm:$0xff]  ;;  %s2992_s10 = sadd.s32 1, %s3453_s8  ;;  %s2984_s9 = sadd.s32 1, %s3457_s9   ;;  %s3457_s9 = sphi %s3455_s9, %s2984_s9   ;;  %s3453_s8 = sphi %s3451_s8, %s3452_s8   ;;  %s3449_s6 = sphi %s3447_s6, %s2997_s6   ;;  %s3445_s5 = sphi %s3443_s5, %s2998_s5  }
 0x3e0   : >> { %2991 = vst [vmem:[%s3445_s5] sm:$0xff] %v2990_v28  ;;  %p2993_p0 = scmp.ge.s32.totalorder %s2992_s10, %s6046_s28  ;;  %p2983_p1 = scmp.ge.s32.totalorder %s2984_s9, %s6046_s28 }
 0x3e2   : >> { %s6826_s10 = smov (%p2993_p0, %s2992_s10), 0  ;;  %2986 = sbr.rel (!%p2983_p1) target bundleno = 991 (0x3df), region = 136 }
 0x3e3   : >> { %s3136_s7 = sshll.u32 %s6826_s10, 3  ;;  %s3452_s8 = smov %s6826_s10  }
 0x3e4   : >> { %s2997_s6 = scalar_lea.vmem %s2978_s30, %s3136_s7 [#allocation2]   ;;  %s2998_s5 = scalar_lea.vmem %s2980_s4, %s3136_s7  }
 0x3e9 PF: > { %p10_p2 = scmp.ge.s32.totalorder %s3497_s16, 4   ;;  %s6818_s12 = smov %s3421_s13 }
 0x3ea   : > { %s6819_s13 = smov %s3505_s19  ;;  %s6820_s14 = smov %s3497_s16 }
 0x3eb   :  { %12 = sbr.rel (!%p10_p2) target bundleno = 2 (0x2), region = 147 }

</bundles_post_ra>
